<compile_context>
chip_gen: v7x
topology: tpu7x:2x2x1
jax: 0.10.0
libtpu: 0.0.40
codegen_flags: <defaults>
</compile_context>

<pallas_src>
import jax
import jax.numpy as jnp
from jax import lax
from jax.experimental import pallas as pl
from jax.experimental.pallas import tpu as pltpu

# ----------------------------- config ---------------------------------------
IMG_H, IMG_W = 32, 32
PATCH = 16
GRID_H, GRID_W = IMG_H // PATCH, IMG_W // PATCH
N_PATCH = GRID_H * GRID_W                 # patches per frame
EMBED = 32
NUM_HEADS = 4
HEAD_DIM = EMBED // NUM_HEADS
DEPTH = 2
MLP_HIDDEN = 4 * EMBED                    # 128
HEAD_HIDDEN = 1024
SEQ = 1 + 2 * N_PATCH                     # cls + keyframe tokens + target tokens
K_PATCH = 4 * PATCH * PATCH               # unfolded patch length (Cin*P*P)
LN_EPS = 1e-6                             # timm ViT uses LayerNorm(eps=1e-6)
BATCH = 2
ATTN_SCALE = 1.0 / (HEAD_DIM ** 0.5)
MASK_NEG = -1e30


# --------------------------- in-kernel helpers -------------------------------
def _gelu(x):
    # exact GELU (matches torch.nn.GELU default)
    return 0.5 * x * (1.0 + lax.erf(x * 0.7071067811865476))


def _layernorm(x, w, b):
    mu = jnp.mean(x, axis=-1, keepdims=True)
    var = jnp.mean((x - mu) ** 2, axis=-1, keepdims=True)
    return (x - mu) * lax.rsqrt(var + LN_EPS) * w + b


# ------------------------------ fused kernel ---------------------------------
def fused_forward_kernel(tok_ref, add_ref, mask_ref, pw_ref,
                         wqkv_ref, wproj_ref, w1_ref, w2_ref, cvec_ref,
                         hw1_ref, hb1_ref, hw2_ref, fvec_ref,
                         out_ref):
    BS = tok_ref.shape[0]                                          # B * SEQ
    mask = mask_ref[...]                                           # (BS, BS) f32

    # --- patch embed (bf16 MXU, f32 accumulate) + cls/pos/bias additive term --
    x = jnp.dot(tok_ref[...], pw_ref[...],
                preferred_element_type=jnp.float32) + add_ref[...]  # (BS, C) f32

    # --- transformer blocks (depth unrolled; weights depth-stacked) ----------
    for d in range(DEPTH):
        cv = cvec_ref[d]                                           # (8, 128) f32

        # ---------------- attention branch ----------------
        y = _layernorm(x, cv[0:1, :EMBED], cv[1:2, :EMBED])
        # fused lane-dense QKV GEMM; attention scale pre-folded into q columns
        qkv = jnp.dot(y.astype(jnp.bfloat16), wqkv_ref[d],
                      preferred_element_type=jnp.float32) + cv[2:3, :3 * EMBED]

        attn = jnp.zeros((BS, EMBED), jnp.float32)
        for h in range(NUM_HEADS):
            lo = h * HEAD_DIM
            qh = qkv[:, lo:lo + HEAD_DIM]                          # (BS, Dh)
            kh = qkv[:, EMBED + lo:EMBED + lo + HEAD_DIM]
            vh = qkv[:, 2 * EMBED + lo:2 * EMBED + lo + HEAD_DIM]
            # q @ k^T over the whole folded batch; cross-batch pairs masked out
            s = lax.dot_general(qh, kh, (((1,), (1,)), ((), ())),
                                preferred_element_type=jnp.float32) + mask
            s = s - jnp.max(s, axis=-1, keepdims=True)
            p = jnp.exp(s)
            p = p * pl.reciprocal(jnp.sum(p, axis=-1, keepdims=True), approx=True)
            oh = jnp.dot(p, vh, preferred_element_type=jnp.float32)   # (BS, Dh)
            # per-head, sublane-aligned slice of the original (C, C) proj weight
            wp_h = wproj_ref[d, lo:lo + HEAD_DIM, :]               # (Dh, C) bf16
            attn = attn + jnp.dot(oh.astype(jnp.bfloat16), wp_h,
                                  preferred_element_type=jnp.float32)
        x = x + attn + cv[3:4, :EMBED]

        # ---------------- MLP branch ----------------
        y = _layernorm(x, cv[4:5, :EMBED], cv[5:6, :EMBED])
        h1 = _gelu(jnp.dot(y.astype(jnp.bfloat16), w1_ref[d],
                           preferred_element_type=jnp.float32)
                   + cv[6:7, :MLP_HIDDEN])
        x = x + jnp.dot(h1.astype(jnp.bfloat16), w2_ref[d],
                        preferred_element_type=jnp.float32) + cv[7:8, :EMBED]

    # --- final LayerNorm (CLS rows only) + CLS MLP head -----------------------
    fv = fvec_ref[...]                                             # (8, 128) f32
    n_cls = out_ref.shape[0]                                       # = B (rows 0..B-1)
    cls = _layernorm(x[:n_cls, :], fv[0:1, :EMBED], fv[1:2, :EMBED])
    hh = _gelu(jnp.dot(cls.astype(jnp.bfloat16), hw1_ref[...],
                       preferred_element_type=jnp.float32) + hb1_ref[...])
    out_ref[...] = (jnp.dot(hh.astype(jnp.bfloat16), hw2_ref[...],
                            preferred_element_type=jnp.float32)
                    + fv[2:3, :])                                  # (B, 128)


# ----------------------------- wrappers --------------------------------------
def _unfold_patches(x_nchw):
    """(B,4,H,W) -> (B, N, 4*P*P), Conv2d(kernel=stride=P) == matmul layout.

    NOTE: features are flattened in (Cin, ph, pw) order; porting real Conv2d
    weights requires weight.reshape(C_out, C_in*P*P).T to match.
    """
    B, Cin, H, W = x_nchw.shape
    p = x_nchw.reshape(B, Cin, GRID_H, PATCH, GRID_W, PATCH)
    p = p.transpose(0, 2, 4, 1, 3, 5).reshape(B, N_PATCH, Cin * PATCH * PATCH)
    return p


def prep_params(params):
    """One-time re-layout of module parameters into kernel-ready arrays.

    Called once (outside the hot path) so the per-call wrapper does no weight
    restacking.  All MXU weight operands are cast to bf16 here.
    """
    f32, b16 = jnp.float32, jnp.bfloat16
    blocks = params['blocks']

    def stack(name):                       # (D, 1, n) -> (D, n)
        return jnp.stack([blk[name] for blk in blocks])[:, 0, :]

    def stack_w(name):                     # (D, rows, cols)
        return jnp.stack([blk[name] for blk in blocks])

    # fold the attention scale into the q columns of the fused qkv weight/bias
    colscale = jnp.concatenate([jnp.full((EMBED,), ATTN_SCALE, f32),
                                jnp.ones((2 * EMBED,), f32)])
    wqkv = stack_w('wqkv') * colscale[None, None, :]               # (D, C, 3C)
    bqkv = stack('bqkv') * colscale[None, :]                       # (D, 3C)

    def pad_lane(v):                                               # (D, n) -> (D, 128)
        return jnp.pad(v, ((0, 0), (0, 128 - v.shape[-1])))

    # per-depth small vectors packed into one (D, 8, 128) blob
    cvec = jnp.stack([
        pad_lane(stack('ln1_w')), pad_lane(stack('ln1_b')),
        pad_lane(bqkv),           pad_lane(stack('bproj')),
        pad_lane(stack('ln2_w')), pad_lane(stack('ln2_b')),
        pad_lane(stack('b1')),    pad_lane(stack('b2')),
    ], axis=1).astype(f32)                                         # (D, 8, 128)

    # final LN + head-output bias packed into one (8, 128) blob
    fvec = jnp.zeros((8, 128), f32)
    fvec = fvec.at[0, :EMBED].set(params['norm_w'][0])
    fvec = fvec.at[1, :EMBED].set(params['norm_b'][0])
    fvec = fvec.at[2, :6].set(params['head_b2'][0])

    # lane-dense padded head output weight (1024, 6) -> (1024, 128)
    head_w2p = jnp.zeros((HEAD_HIDDEN, 128), f32).at[:, :6].set(params['head_w2'])

    return {
        'patch_w': params['patch_w'].astype(b16),                  # (Kp, C)
        'wqkv': wqkv.astype(b16),                                  # (D, C, 3C)
        'wproj': stack_w('wproj').astype(b16),                     # (D, C, C)
        'w1': stack_w('w1').astype(b16),                           # (D, C, 4C)
        'w2': stack_w('w2').astype(b16),                           # (D, 4C, C)
        'cvec': cvec,                                              # (D, 8, 128) f32
        'head_w1': params['head_w1'].astype(b16),                  # (C, 1024)
        'head_b1': params['head_b1'].astype(f32),                  # (1, 1024)
        'head_w2p': head_w2p.astype(b16),                          # (1024, 128)
        'fvec': fvec,                                              # (8, 128) f32
        # f32 pieces used to build the per-call additive term
        'add_cls': (params['cls_token'] + params['pe_cls'])[0, 0],          # (C,)
        'add_tok': params['patch_b'][0][None, :]
                   + jnp.tile(params['pe_patch'][0], (2, 1)),                # (2N, C)
    }


def forward(prepped, rgb0, d0, rgbi, di, fid_emb=None):
    B = rgb0.shape[0]
    n_tok = 2 * N_PATCH

    # unfold both frames; row layout: [B CLS slots (zero patches)] ++ tokens
    p0 = _unfold_patches(jnp.concatenate([rgb0, d0], axis=1))      # (B, N, Kp)
    pi = _unfold_patches(jnp.concatenate([rgbi, di], axis=1))
    tok = jnp.concatenate([p0, pi], axis=1).reshape(B * n_tok, K_PATCH)
    tokens = jnp.concatenate([jnp.zeros((B, K_PATCH), jnp.float32), tok],
                             axis=0).astype(jnp.bfloat16)          # (B*S, Kp)

    # additive term: cls_token + pos embed + patch-embed bias (+ optional fid,
    # added to every non-CLS token, matching the reference `x[:, 1:] += fid`)
    add_tok = jnp.broadcast_to(prepped['add_tok'][None], (B, n_tok, EMBED))
    if fid_emb is not None:
        add_tok = add_tok + fid_emb[:, None, :]
    add = jnp.concatenate(
        [jnp.broadcast_to(prepped['add_cls'][None], (B, EMBED)),
         add_tok.reshape(B * n_tok, EMBED)], axis=0)               # (B*S, C)

    # additive block mask so tokens only attend within their own batch element
    bid = jnp.concatenate([jnp.arange(B, dtype=jnp.int32),
                           jnp.repeat(jnp.arange(B, dtype=jnp.int32), n_tok)])
    mask = jnp.where(bid[:, None] == bid[None, :], 0.0, MASK_NEG).astype(jnp.float32)

    out = pl.pallas_call(
        fused_forward_kernel,
        out_shape=jax.ShapeDtypeStruct((B, 128), jnp.float32),
        in_specs=[pl.BlockSpec(memory_space=pltpu.MemorySpace.VMEM)] * 13,
        out_specs=pl.BlockSpec(memory_space=pltpu.MemorySpace.VMEM),
    )(tokens, add, mask, prepped['patch_w'],
      prepped['wqkv'], prepped['wproj'], prepped['w1'], prepped['w2'],
      prepped['cvec'], prepped['head_w1'], prepped['head_b1'],
      prepped['head_w2p'], prepped['fvec'])
    # TODO(synk): on v7x, split the folded batch over a 2-wide "parallel" grid
    # so both TensorCores are used; the single-step form is optimal on v5e/v6e.
    return out[:, :6]                                              # (B, 6)


# --------------------------- parameters --------------------------------------
def init_params(key):
    # TODO(synk): pretrained timm weight loading / bilinear pos-embed resize is
    # a one-time host-side init step, not part of the runtime forward.
    def nrm(k, shape, std=0.02):
        return std * jax.random.normal(k, shape, jnp.float32)

    keys = iter(jax.random.split(key, 64))
    params = {
        'patch_w': nrm(next(keys), (K_PATCH, EMBED)),
        'patch_b': nrm(next(keys), (1, EMBED)),
        'cls_token': nrm(next(keys), (1, 1, EMBED)),
        'pe_cls': nrm(next(keys), (1, 1, EMBED)),
        'pe_patch': nrm(next(keys), (1, N_PATCH, EMBED)),
        'norm_w': jnp.ones((1, EMBED), jnp.float32),
        'norm_b': jnp.zeros((1, EMBED), jnp.float32),
        'head_w1': nrm(next(keys), (EMBED, HEAD_HIDDEN)),
        'head_b1': jnp.zeros((1, HEAD_HIDDEN), jnp.float32),
        'head_w2': nrm(next(keys), (HEAD_HIDDEN, 6)),
        'head_b2': jnp.zeros((1, 6), jnp.float32),
        'blocks': [],
    }
    for _ in range(DEPTH):
        params['blocks'].append({
            'ln1_w': jnp.ones((1, EMBED), jnp.float32),
            'ln1_b': jnp.zeros((1, EMBED), jnp.float32),
            'wqkv': nrm(next(keys), (EMBED, 3 * EMBED)),
            'bqkv': jnp.zeros((1, 3 * EMBED), jnp.float32),
            'wproj': nrm(next(keys), (EMBED, EMBED)),
            'bproj': jnp.zeros((1, EMBED), jnp.float32),
            'ln2_w': jnp.ones((1, EMBED), jnp.float32),
            'ln2_b': jnp.zeros((1, EMBED), jnp.float32),
            'w1': nrm(next(keys), (EMBED, MLP_HIDDEN)),
            'b1': jnp.zeros((1, MLP_HIDDEN), jnp.float32),
            'w2': nrm(next(keys), (MLP_HIDDEN, EMBED)),
            'b2': jnp.zeros((1, EMBED), jnp.float32),
        })
    return params


# ------------------------------- main -----------------------------------------
if __name__ == "__main__":
    key = jax.random.PRNGKey(0)
    k_params, k0, k1, k2, k3 = jax.random.split(key, 5)
    params = init_params(k_params)
    prepped = prep_params(params)          # one-time weight re-layout (hoisted)

    rgb0 = jax.random.normal(k0, (BATCH, 3, IMG_H, IMG_W), jnp.float32)
    d0 = jax.random.normal(k1, (BATCH, 1, IMG_H, IMG_W), jnp.float32)
    rgbi = jax.random.normal(k2, (BATCH, 3, IMG_H, IMG_W), jnp.float32)
    di = jax.random.normal(k3, (BATCH, 1, IMG_H, IMG_W), jnp.float32)

    delta = jax.jit(forward)(prepped, rgb0, d0, rgbi, di)
    jax.block_until_ready(delta)
    assert delta.shape == (BATCH, 6) and delta.dtype == jnp.float32
    print("KERNEL_OK")
</pallas_src>

<mosaic_0001>
module attributes {stable_mosaic.version = 11 : i64} {
  func.func @fused_forward_kernel(%arg0: memref<18x1024xbf16, #tpu.memory_space<vmem>>, %arg1: memref<18x32xf32, #tpu.memory_space<vmem>>, %arg2: memref<18x18xf32, #tpu.memory_space<vmem>>, %arg3: memref<1024x32xbf16, #tpu.memory_space<vmem>>, %arg4: memref<2x32x96xbf16, #tpu.memory_space<vmem>>, %arg5: memref<2x32x32xbf16, #tpu.memory_space<vmem>>, %arg6: memref<2x32x128xbf16, #tpu.memory_space<vmem>>, %arg7: memref<2x128x32xbf16, #tpu.memory_space<vmem>>, %arg8: memref<2x8x128xf32, #tpu.memory_space<vmem>>, %arg9: memref<32x1024xbf16, #tpu.memory_space<vmem>>, %arg10: memref<1x1024xf32, #tpu.memory_space<vmem>>, %arg11: memref<1024x128xbf16, #tpu.memory_space<vmem>>, %arg12: memref<8x128xf32, #tpu.memory_space<vmem>>, %arg13: memref<2x128xf32, #tpu.memory_space<vmem>>) attributes {dimension_semantics = [], scalar_prefetch = 0 : i64, scratch_operands = 0 : i64, tpu.core_type = #tpu.core_type<tc>} {
    %c0 = arith.constant 0 : index
    %c0_0 = arith.constant 0 : index
    %0 = vector.load %arg2[%c0, %c0_0] : memref<18x18xf32, #tpu.memory_space<vmem>>, vector<18x18xf32>
    %c0_1 = arith.constant 0 : index
    %c0_2 = arith.constant 0 : index
    %1 = vector.load %arg0[%c0_1, %c0_2] : memref<18x1024xbf16, #tpu.memory_space<vmem>>, vector<18x1024xbf16>
    %c0_3 = arith.constant 0 : index
    %c0_4 = arith.constant 0 : index
    %2 = vector.load %arg3[%c0_3, %c0_4] : memref<1024x32xbf16, #tpu.memory_space<vmem>>, vector<1024x32xbf16>
    %cst = arith.constant dense<0.000000e+00> : vector<18x32xf32>
    %3 = tpu.matmul %1, %2, %cst {dimension_numbers = #tpu.dot_dimension_numbers<[1], [0], [0], [1], [0, 0, 1, 1], [], []>} : vector<18x1024xbf16>, vector<1024x32xbf16>, vector<18x32xf32> -> vector<18x32xf32>
    %c0_5 = arith.constant 0 : index
    %c0_6 = arith.constant 0 : index
    %4 = vector.load %arg1[%c0_5, %c0_6] : memref<18x32xf32, #tpu.memory_space<vmem>>, vector<18x32xf32>
    %5 = arith.addf %3, %4 : vector<18x32xf32>
    %c0_7 = arith.constant 0 : index
    %c0_8 = arith.constant 0 : index
    %c0_9 = arith.constant 0 : index
    %6 = vector.load %arg8[%c0_7, %c0_8, %c0_9] : memref<2x8x128xf32, #tpu.memory_space<vmem>>, vector<1x8x128xf32>
    %7 = vector.shape_cast %6 : vector<1x8x128xf32> to vector<8x128xf32>
    %8 = vector.extract_strided_slice %7 {offsets = [0, 0], sizes = [1, 32], strides = [1, 1]} : vector<8x128xf32> to vector<1x32xf32>
    %9 = vector.extract_strided_slice %7 {offsets = [1, 0], sizes = [1, 32], strides = [1, 1]} : vector<8x128xf32> to vector<1x32xf32>
    %cst_10 = arith.constant dense<0.000000e+00> : vector<18xf32>
    %10 = vector.multi_reduction <add>, %5, %cst_10 [1] : vector<18x32xf32> to vector<18xf32>
    %11 = vector.shape_cast %10 : vector<18xf32> to vector<18x1xf32>
    %cst_11 = arith.constant 3.200000e+01 : f32
    %12 = vector.broadcast %cst_11 : f32 to vector<18x1xf32>
    %13 = arith.divf %11, %12 : vector<18x1xf32>
    %14 = vector.broadcast %13 : vector<18x1xf32> to vector<18x32xf32>
    %15 = arith.subf %5, %14 : vector<18x32xf32>
    %16 = arith.mulf %15, %15 : vector<18x32xf32>
    %cst_12 = arith.constant dense<0.000000e+00> : vector<18xf32>
    %17 = vector.multi_reduction <add>, %16, %cst_12 [1] : vector<18x32xf32> to vector<18xf32>
    %18 = vector.shape_cast %17 : vector<18xf32> to vector<18x1xf32>
    %cst_13 = arith.constant 3.200000e+01 : f32
    %19 = vector.broadcast %cst_13 : f32 to vector<18x1xf32>
    %20 = arith.divf %18, %19 : vector<18x1xf32>
    %21 = vector.broadcast %13 : vector<18x1xf32> to vector<18x32xf32>
    %22 = arith.subf %5, %21 : vector<18x32xf32>
    %cst_14 = arith.constant 9.99999997E-7 : f32
    %23 = vector.broadcast %cst_14 : f32 to vector<18x1xf32>
    %24 = arith.addf %20, %23 : vector<18x1xf32>
    %25 = math.rsqrt %24 : vector<18x1xf32>
    %26 = vector.broadcast %25 : vector<18x1xf32> to vector<18x32xf32>
    %27 = arith.mulf %22, %26 : vector<18x32xf32>
    %28 = vector.broadcast %8 : vector<1x32xf32> to vector<18x32xf32>
    %29 = arith.mulf %27, %28 : vector<18x32xf32>
    %30 = vector.broadcast %9 : vector<1x32xf32> to vector<18x32xf32>
    %31 = arith.addf %29, %30 : vector<18x32xf32>
    %32 = arith.truncf %31 : vector<18x32xf32> to vector<18x32xbf16>
    %c0_15 = arith.constant 0 : index
    %c0_16 = arith.constant 0 : index
    %c0_17 = arith.constant 0 : index
    %33 = vector.load %arg4[%c0_15, %c0_16, %c0_17] : memref<2x32x96xbf16, #tpu.memory_space<vmem>>, vector<1x32x96xbf16>
    %34 = vector.shape_cast %33 : vector<1x32x96xbf16> to vector<32x96xbf16>
    %cst_18 = arith.constant dense<0.000000e+00> : vector<18x96xf32>
    %35 = tpu.matmul %32, %34, %cst_18 {dimension_numbers = #tpu.dot_dimension_numbers<[1], [0], [0], [1], [0, 0, 1, 1], [], []>} : vector<18x32xbf16>, vector<32x96xbf16>, vector<18x96xf32> -> vector<18x96xf32>
    %36 = vector.extract_strided_slice %7 {offsets = [2, 0], sizes = [1, 96], strides = [1, 1]} : vector<8x128xf32> to vector<1x96xf32>
    %37 = vector.broadcast %36 : vector<1x96xf32> to vector<18x96xf32>
    %38 = arith.addf %35, %37 : vector<18x96xf32>
    %cst_19 = arith.constant 0.000000e+00 : f32
    %39 = vector.broadcast %cst_19 : f32 to vector<18x32xf32>
    %40 = vector.extract_strided_slice %38 {offsets = [0, 0], sizes = [18, 8], strides = [1, 1]} : vector<18x96xf32> to vector<18x8xf32>
    %41 = vector.extract_strided_slice %38 {offsets = [0, 32], sizes = [18, 8], strides = [1, 1]} : vector<18x96xf32> to vector<18x8xf32>
    %42 = vector.extract_strided_slice %38 {offsets = [0, 64], sizes = [18, 8], strides = [1, 1]} : vector<18x96xf32> to vector<18x8xf32>
    %cst_20 = arith.constant dense<0.000000e+00> : vector<18x18xf32>
    %43 = tpu.matmul %40, %41, %cst_20 {dimension_numbers = #tpu.dot_dimension_numbers<[1], [1], [0], [0], [0, 0, 1, 0], [], []>} : vector<18x8xf32>, vector<18x8xf32>, vector<18x18xf32> -> vector<18x18xf32>
    %44 = arith.addf %43, %0 : vector<18x18xf32>
    %cst_21 = arith.constant dense<0xFF800000> : vector<18xf32>
    %45 = vector.multi_reduction <maximumf>, %44, %cst_21 [1] : vector<18x18xf32> to vector<18xf32>
    %46 = vector.shape_cast %45 : vector<18xf32> to vector<18x1xf32>
    %47 = vector.broadcast %46 : vector<18x1xf32> to vector<18x18xf32>
    %48 = arith.subf %44, %47 : vector<18x18xf32>
    %49 = math.exp %48 : vector<18x18xf32>
    %cst_22 = arith.constant dense<0.000000e+00> : vector<18xf32>
    %50 = vector.multi_reduction <add>, %49, %cst_22 [1] : vector<18x18xf32> to vector<18xf32>
    %51 = vector.shape_cast %50 : vector<18xf32> to vector<18x1xf32>
    %52 = tpu.reciprocal %51 {approx = true} : vector<18x1xf32> -> vector<18x1xf32>
    %53 = vector.broadcast %52 : vector<18x1xf32> to vector<18x18xf32>
    %54 = arith.mulf %49, %53 : vector<18x18xf32>
    %cst_23 = arith.constant dense<0.000000e+00> : vector<18x8xf32>
    %55 = tpu.matmul %54, %42, %cst_23 {dimension_numbers = #tpu.dot_dimension_numbers<[1], [0], [0], [1], [0, 0, 1, 1], [], []>} : vector<18x18xf32>, vector<18x8xf32>, vector<18x8xf32> -> vector<18x8xf32>
    %c0_24 = arith.constant 0 : index
    %c0_25 = arith.constant 0 : index
    %c0_26 = arith.constant 0 : index
    %56 = vector.load %arg5[%c0_24, %c0_25, %c0_26] : memref<2x32x32xbf16, #tpu.memory_space<vmem>>, vector<1x8x32xbf16>
    %57 = vector.shape_cast %56 : vector<1x8x32xbf16> to vector<8x32xbf16>
    %58 = arith.truncf %55 : vector<18x8xf32> to vector<18x8xbf16>
    %cst_27 = arith.constant dense<0.000000e+00> : vector<18x32xf32>
    %59 = tpu.matmul %58, %57, %cst_27 {dimension_numbers = #tpu.dot_dimension_numbers<[1], [0], [0], [1], [0, 0, 1, 1], [], []>} : vector<18x8xbf16>, vector<8x32xbf16>, vector<18x32xf32> -> vector<18x32xf32>
    %60 = arith.addf %39, %59 : vector<18x32xf32>
    %61 = vector.extract_strided_slice %38 {offsets = [0, 8], sizes = [18, 8], strides = [1, 1]} : vector<18x96xf32> to vector<18x8xf32>
    %62 = vector.extract_strided_slice %38 {offsets = [0, 40], sizes = [18, 8], strides = [1, 1]} : vector<18x96xf32> to vector<18x8xf32>
    %63 = vector.extract_strided_slice %38 {offsets = [0, 72], sizes = [18, 8], strides = [1, 1]} : vector<18x96xf32> to vector<18x8xf32>
    %cst_28 = arith.constant dense<0.000000e+00> : vector<18x18xf32>
    %64 = tpu.matmul %61, %62, %cst_28 {dimension_numbers = #tpu.dot_dimension_numbers<[1], [1], [0], [0], [0, 0, 1, 0], [], []>} : vector<18x8xf32>, vector<18x8xf32>, vector<18x18xf32> -> vector<18x18xf32>
    %65 = arith.addf %64, %0 : vector<18x18xf32>
    %cst_29 = arith.constant dense<0xFF800000> : vector<18xf32>
    %66 = vector.multi_reduction <maximumf>, %65, %cst_29 [1] : vector<18x18xf32> to vector<18xf32>
    %67 = vector.shape_cast %66 : vector<18xf32> to vector<18x1xf32>
    %68 = vector.broadcast %67 : vector<18x1xf32> to vector<18x18xf32>
    %69 = arith.subf %65, %68 : vector<18x18xf32>
    %70 = math.exp %69 : vector<18x18xf32>
    %cst_30 = arith.constant dense<0.000000e+00> : vector<18xf32>
    %71 = vector.multi_reduction <add>, %70, %cst_30 [1] : vector<18x18xf32> to vector<18xf32>
    %72 = vector.shape_cast %71 : vector<18xf32> to vector<18x1xf32>
    %73 = tpu.reciprocal %72 {approx = true} : vector<18x1xf32> -> vector<18x1xf32>
    %74 = vector.broadcast %73 : vector<18x1xf32> to vector<18x18xf32>
    %75 = arith.mulf %70, %74 : vector<18x18xf32>
    %cst_31 = arith.constant dense<0.000000e+00> : vector<18x8xf32>
    %76 = tpu.matmul %75, %63, %cst_31 {dimension_numbers = #tpu.dot_dimension_numbers<[1], [0], [0], [1], [0, 0, 1, 1], [], []>} : vector<18x18xf32>, vector<18x8xf32>, vector<18x8xf32> -> vector<18x8xf32>
    %c0_32 = arith.constant 0 : index
    %c8 = arith.constant 8 : index
    %c0_33 = arith.constant 0 : index
    %77 = vector.load %arg5[%c0_32, %c8, %c0_33] : memref<2x32x32xbf16, #tpu.memory_space<vmem>>, vector<1x8x32xbf16>
    %78 = vector.shape_cast %77 : vector<1x8x32xbf16> to vector<8x32xbf16>
    %79 = arith.truncf %76 : vector<18x8xf32> to vector<18x8xbf16>
    %cst_34 = arith.constant dense<0.000000e+00> : vector<18x32xf32>
    %80 = tpu.matmul %79, %78, %cst_34 {dimension_numbers = #tpu.dot_dimension_numbers<[1], [0], [0], [1], [0, 0, 1, 1], [], []>} : vector<18x8xbf16>, vector<8x32xbf16>, vector<18x32xf32> -> vector<18x32xf32>
    %81 = arith.addf %60, %80 : vector<18x32xf32>
    %82 = vector.extract_strided_slice %38 {offsets = [0, 16], sizes = [18, 8], strides = [1, 1]} : vector<18x96xf32> to vector<18x8xf32>
    %83 = vector.extract_strided_slice %38 {offsets = [0, 48], sizes = [18, 8], strides = [1, 1]} : vector<18x96xf32> to vector<18x8xf32>
    %84 = vector.extract_strided_slice %38 {offsets = [0, 80], sizes = [18, 8], strides = [1, 1]} : vector<18x96xf32> to vector<18x8xf32>
    %cst_35 = arith.constant dense<0.000000e+00> : vector<18x18xf32>
    %85 = tpu.matmul %82, %83, %cst_35 {dimension_numbers = #tpu.dot_dimension_numbers<[1], [1], [0], [0], [0, 0, 1, 0], [], []>} : vector<18x8xf32>, vector<18x8xf32>, vector<18x18xf32> -> vector<18x18xf32>
    %86 = arith.addf %85, %0 : vector<18x18xf32>
    %cst_36 = arith.constant dense<0xFF800000> : vector<18xf32>
    %87 = vector.multi_reduction <maximumf>, %86, %cst_36 [1] : vector<18x18xf32> to vector<18xf32>
    %88 = vector.shape_cast %87 : vector<18xf32> to vector<18x1xf32>
    %89 = vector.broadcast %88 : vector<18x1xf32> to vector<18x18xf32>
    %90 = arith.subf %86, %89 : vector<18x18xf32>
    %91 = math.exp %90 : vector<18x18xf32>
    %cst_37 = arith.constant dense<0.000000e+00> : vector<18xf32>
    %92 = vector.multi_reduction <add>, %91, %cst_37 [1] : vector<18x18xf32> to vector<18xf32>
    %93 = vector.shape_cast %92 : vector<18xf32> to vector<18x1xf32>
    %94 = tpu.reciprocal %93 {approx = true} : vector<18x1xf32> -> vector<18x1xf32>
    %95 = vector.broadcast %94 : vector<18x1xf32> to vector<18x18xf32>
    %96 = arith.mulf %91, %95 : vector<18x18xf32>
    %cst_38 = arith.constant dense<0.000000e+00> : vector<18x8xf32>
    %97 = tpu.matmul %96, %84, %cst_38 {dimension_numbers = #tpu.dot_dimension_numbers<[1], [0], [0], [1], [0, 0, 1, 1], [], []>} : vector<18x18xf32>, vector<18x8xf32>, vector<18x8xf32> -> vector<18x8xf32>
    %c0_39 = arith.constant 0 : index
    %c16 = arith.constant 16 : index
    %c0_40 = arith.constant 0 : index
    %98 = vector.load %arg5[%c0_39, %c16, %c0_40] : memref<2x32x32xbf16, #tpu.memory_space<vmem>>, vector<1x8x32xbf16>
    %99 = vector.shape_cast %98 : vector<1x8x32xbf16> to vector<8x32xbf16>
    %100 = arith.truncf %97 : vector<18x8xf32> to vector<18x8xbf16>
    %cst_41 = arith.constant dense<0.000000e+00> : vector<18x32xf32>
    %101 = tpu.matmul %100, %99, %cst_41 {dimension_numbers = #tpu.dot_dimension_numbers<[1], [0], [0], [1], [0, 0, 1, 1], [], []>} : vector<18x8xbf16>, vector<8x32xbf16>, vector<18x32xf32> -> vector<18x32xf32>
    %102 = arith.addf %81, %101 : vector<18x32xf32>
    %103 = vector.extract_strided_slice %38 {offsets = [0, 24], sizes = [18, 8], strides = [1, 1]} : vector<18x96xf32> to vector<18x8xf32>
    %104 = vector.extract_strided_slice %38 {offsets = [0, 56], sizes = [18, 8], strides = [1, 1]} : vector<18x96xf32> to vector<18x8xf32>
    %105 = vector.extract_strided_slice %38 {offsets = [0, 88], sizes = [18, 8], strides = [1, 1]} : vector<18x96xf32> to vector<18x8xf32>
    %cst_42 = arith.constant dense<0.000000e+00> : vector<18x18xf32>
    %106 = tpu.matmul %103, %104, %cst_42 {dimension_numbers = #tpu.dot_dimension_numbers<[1], [1], [0], [0], [0, 0, 1, 0], [], []>} : vector<18x8xf32>, vector<18x8xf32>, vector<18x18xf32> -> vector<18x18xf32>
    %107 = arith.addf %106, %0 : vector<18x18xf32>
    %cst_43 = arith.constant dense<0xFF800000> : vector<18xf32>
    %108 = vector.multi_reduction <maximumf>, %107, %cst_43 [1] : vector<18x18xf32> to vector<18xf32>
    %109 = vector.shape_cast %108 : vector<18xf32> to vector<18x1xf32>
    %110 = vector.broadcast %109 : vector<18x1xf32> to vector<18x18xf32>
    %111 = arith.subf %107, %110 : vector<18x18xf32>
    %112 = math.exp %111 : vector<18x18xf32>
    %cst_44 = arith.constant dense<0.000000e+00> : vector<18xf32>
    %113 = vector.multi_reduction <add>, %112, %cst_44 [1] : vector<18x18xf32> to vector<18xf32>
    %114 = vector.shape_cast %113 : vector<18xf32> to vector<18x1xf32>
    %115 = tpu.reciprocal %114 {approx = true} : vector<18x1xf32> -> vector<18x1xf32>
    %116 = vector.broadcast %115 : vector<18x1xf32> to vector<18x18xf32>
    %117 = arith.mulf %112, %116 : vector<18x18xf32>
    %cst_45 = arith.constant dense<0.000000e+00> : vector<18x8xf32>
    %118 = tpu.matmul %117, %105, %cst_45 {dimension_numbers = #tpu.dot_dimension_numbers<[1], [0], [0], [1], [0, 0, 1, 1], [], []>} : vector<18x18xf32>, vector<18x8xf32>, vector<18x8xf32> -> vector<18x8xf32>
    %c0_46 = arith.constant 0 : index
    %c24 = arith.constant 24 : index
    %c0_47 = arith.constant 0 : index
    %119 = vector.load %arg5[%c0_46, %c24, %c0_47] : memref<2x32x32xbf16, #tpu.memory_space<vmem>>, vector<1x8x32xbf16>
    %120 = vector.shape_cast %119 : vector<1x8x32xbf16> to vector<8x32xbf16>
    %121 = arith.truncf %118 : vector<18x8xf32> to vector<18x8xbf16>
    %cst_48 = arith.constant dense<0.000000e+00> : vector<18x32xf32>
    %122 = tpu.matmul %121, %120, %cst_48 {dimension_numbers = #tpu.dot_dimension_numbers<[1], [0], [0], [1], [0, 0, 1, 1], [], []>} : vector<18x8xbf16>, vector<8x32xbf16>, vector<18x32xf32> -> vector<18x32xf32>
    %123 = arith.addf %102, %122 : vector<18x32xf32>
    %124 = arith.addf %5, %123 : vector<18x32xf32>
    %125 = vector.extract_strided_slice %7 {offsets = [3, 0], sizes = [1, 32], strides = [1, 1]} : vector<8x128xf32> to vector<1x32xf32>
    %126 = vector.broadcast %125 : vector<1x32xf32> to vector<18x32xf32>
    %127 = arith.addf %124, %126 : vector<18x32xf32>
    %128 = vector.extract_strided_slice %7 {offsets = [4, 0], sizes = [1, 32], strides = [1, 1]} : vector<8x128xf32> to vector<1x32xf32>
    %129 = vector.extract_strided_slice %7 {offsets = [5, 0], sizes = [1, 32], strides = [1, 1]} : vector<8x128xf32> to vector<1x32xf32>
    %cst_49 = arith.constant dense<0.000000e+00> : vector<18xf32>
    %130 = vector.multi_reduction <add>, %127, %cst_49 [1] : vector<18x32xf32> to vector<18xf32>
    %131 = vector.shape_cast %130 : vector<18xf32> to vector<18x1xf32>
    %cst_50 = arith.constant 3.200000e+01 : f32
    %132 = vector.broadcast %cst_50 : f32 to vector<18x1xf32>
    %133 = arith.divf %131, %132 : vector<18x1xf32>
    %134 = vector.broadcast %133 : vector<18x1xf32> to vector<18x32xf32>
    %135 = arith.subf %127, %134 : vector<18x32xf32>
    %136 = arith.mulf %135, %135 : vector<18x32xf32>
    %cst_51 = arith.constant dense<0.000000e+00> : vector<18xf32>
    %137 = vector.multi_reduction <add>, %136, %cst_51 [1] : vector<18x32xf32> to vector<18xf32>
    %138 = vector.shape_cast %137 : vector<18xf32> to vector<18x1xf32>
    %cst_52 = arith.constant 3.200000e+01 : f32
    %139 = vector.broadcast %cst_52 : f32 to vector<18x1xf32>
    %140 = arith.divf %138, %139 : vector<18x1xf32>
    %141 = vector.broadcast %133 : vector<18x1xf32> to vector<18x32xf32>
    %142 = arith.subf %127, %141 : vector<18x32xf32>
    %cst_53 = arith.constant 9.99999997E-7 : f32
    %143 = vector.broadcast %cst_53 : f32 to vector<18x1xf32>
    %144 = arith.addf %140, %143 : vector<18x1xf32>
    %145 = math.rsqrt %144 : vector<18x1xf32>
    %146 = vector.broadcast %145 : vector<18x1xf32> to vector<18x32xf32>
    %147 = arith.mulf %142, %146 : vector<18x32xf32>
    %148 = vector.broadcast %128 : vector<1x32xf32> to vector<18x32xf32>
    %149 = arith.mulf %147, %148 : vector<18x32xf32>
    %150 = vector.broadcast %129 : vector<1x32xf32> to vector<18x32xf32>
    %151 = arith.addf %149, %150 : vector<18x32xf32>
    %152 = arith.truncf %151 : vector<18x32xf32> to vector<18x32xbf16>
    %c0_54 = arith.constant 0 : index
    %c0_55 = arith.constant 0 : index
    %c0_56 = arith.constant 0 : index
    %153 = vector.load %arg6[%c0_54, %c0_55, %c0_56] : memref<2x32x128xbf16, #tpu.memory_space<vmem>>, vector<1x32x128xbf16>
    %154 = vector.shape_cast %153 : vector<1x32x128xbf16> to vector<32x128xbf16>
    %cst_57 = arith.constant dense<0.000000e+00> : vector<18x128xf32>
    %155 = tpu.matmul %152, %154, %cst_57 {dimension_numbers = #tpu.dot_dimension_numbers<[1], [0], [0], [1], [0, 0, 1, 1], [], []>} : vector<18x32xbf16>, vector<32x128xbf16>, vector<18x128xf32> -> vector<18x128xf32>
    %156 = vector.extract_strided_slice %7 {offsets = [6, 0], sizes = [1, 128], strides = [1, 1]} : vector<8x128xf32> to vector<1x128xf32>
    %157 = vector.broadcast %156 : vector<1x128xf32> to vector<18x128xf32>
    %158 = arith.addf %155, %157 : vector<18x128xf32>
    %cst_58 = arith.constant 5.000000e-01 : f32
    %159 = vector.broadcast %cst_58 : f32 to vector<18x128xf32>
    %160 = arith.mulf %159, %158 : vector<18x128xf32>
    %cst_59 = arith.constant 0.707106769 : f32
    %161 = vector.broadcast %cst_59 : f32 to vector<18x128xf32>
    %162 = arith.mulf %158, %161 : vector<18x128xf32>
    %163 = math.erf %162 : vector<18x128xf32>
    %cst_60 = arith.constant 1.000000e+00 : f32
    %164 = vector.broadcast %cst_60 : f32 to vector<18x128xf32>
    %165 = arith.addf %164, %163 : vector<18x128xf32>
    %166 = arith.mulf %160, %165 : vector<18x128xf32>
    %167 = arith.truncf %166 : vector<18x128xf32> to vector<18x128xbf16>
    %c0_61 = arith.constant 0 : index
    %c0_62 = arith.constant 0 : index
    %c0_63 = arith.constant 0 : index
    %168 = vector.load %arg7[%c0_61, %c0_62, %c0_63] : memref<2x128x32xbf16, #tpu.memory_space<vmem>>, vector<1x128x32xbf16>
    %169 = vector.shape_cast %168 : vector<1x128x32xbf16> to vector<128x32xbf16>
    %cst_64 = arith.constant dense<0.000000e+00> : vector<18x32xf32>
    %170 = tpu.matmul %167, %169, %cst_64 {dimension_numbers = #tpu.dot_dimension_numbers<[1], [0], [0], [1], [0, 0, 1, 1], [], []>} : vector<18x128xbf16>, vector<128x32xbf16>, vector<18x32xf32> -> vector<18x32xf32>
    %171 = arith.addf %127, %170 : vector<18x32xf32>
    %172 = vector.extract_strided_slice %7 {offsets = [7, 0], sizes = [1, 32], strides = [1, 1]} : vector<8x128xf32> to vector<1x32xf32>
    %173 = vector.broadcast %172 : vector<1x32xf32> to vector<18x32xf32>
    %174 = arith.addf %171, %173 : vector<18x32xf32>
    %c1 = arith.constant 1 : index
    %c0_65 = arith.constant 0 : index
    %c0_66 = arith.constant 0 : index
    %175 = vector.load %arg8[%c1, %c0_65, %c0_66] : memref<2x8x128xf32, #tpu.memory_space<vmem>>, vector<1x8x128xf32>
    %176 = vector.shape_cast %175 : vector<1x8x128xf32> to vector<8x128xf32>
    %177 = vector.extract_strided_slice %176 {offsets = [0, 0], sizes = [1, 32], strides = [1, 1]} : vector<8x128xf32> to vector<1x32xf32>
    %178 = vector.extract_strided_slice %176 {offsets = [1, 0], sizes = [1, 32], strides = [1, 1]} : vector<8x128xf32> to vector<1x32xf32>
    %cst_67 = arith.constant dense<0.000000e+00> : vector<18xf32>
    %179 = vector.multi_reduction <add>, %174, %cst_67 [1] : vector<18x32xf32> to vector<18xf32>
    %180 = vector.shape_cast %179 : vector<18xf32> to vector<18x1xf32>
    %cst_68 = arith.constant 3.200000e+01 : f32
    %181 = vector.broadcast %cst_68 : f32 to vector<18x1xf32>
    %182 = arith.divf %180, %181 : vector<18x1xf32>
    %183 = vector.broadcast %182 : vector<18x1xf32> to vector<18x32xf32>
    %184 = arith.subf %174, %183 : vector<18x32xf32>
    %185 = arith.mulf %184, %184 : vector<18x32xf32>
    %cst_69 = arith.constant dense<0.000000e+00> : vector<18xf32>
    %186 = vector.multi_reduction <add>, %185, %cst_69 [1] : vector<18x32xf32> to vector<18xf32>
    %187 = vector.shape_cast %186 : vector<18xf32> to vector<18x1xf32>
    %cst_70 = arith.constant 3.200000e+01 : f32
    %188 = vector.broadcast %cst_70 : f32 to vector<18x1xf32>
    %189 = arith.divf %187, %188 : vector<18x1xf32>
    %190 = vector.broadcast %182 : vector<18x1xf32> to vector<18x32xf32>
    %191 = arith.subf %174, %190 : vector<18x32xf32>
    %cst_71 = arith.constant 9.99999997E-7 : f32
    %192 = vector.broadcast %cst_71 : f32 to vector<18x1xf32>
    %193 = arith.addf %189, %192 : vector<18x1xf32>
    %194 = math.rsqrt %193 : vector<18x1xf32>
    %195 = vector.broadcast %194 : vector<18x1xf32> to vector<18x32xf32>
    %196 = arith.mulf %191, %195 : vector<18x32xf32>
    %197 = vector.broadcast %177 : vector<1x32xf32> to vector<18x32xf32>
    %198 = arith.mulf %196, %197 : vector<18x32xf32>
    %199 = vector.broadcast %178 : vector<1x32xf32> to vector<18x32xf32>
    %200 = arith.addf %198, %199 : vector<18x32xf32>
    %201 = arith.truncf %200 : vector<18x32xf32> to vector<18x32xbf16>
    %c1_72 = arith.constant 1 : index
    %c0_73 = arith.constant 0 : index
    %c0_74 = arith.constant 0 : index
    %202 = vector.load %arg4[%c1_72, %c0_73, %c0_74] : memref<2x32x96xbf16, #tpu.memory_space<vmem>>, vector<1x32x96xbf16>
    %203 = vector.shape_cast %202 : vector<1x32x96xbf16> to vector<32x96xbf16>
    %cst_75 = arith.constant dense<0.000000e+00> : vector<18x96xf32>
    %204 = tpu.matmul %201, %203, %cst_75 {dimension_numbers = #tpu.dot_dimension_numbers<[1], [0], [0], [1], [0, 0, 1, 1], [], []>} : vector<18x32xbf16>, vector<32x96xbf16>, vector<18x96xf32> -> vector<18x96xf32>
    %205 = vector.extract_strided_slice %176 {offsets = [2, 0], sizes = [1, 96], strides = [1, 1]} : vector<8x128xf32> to vector<1x96xf32>
    %206 = vector.broadcast %205 : vector<1x96xf32> to vector<18x96xf32>
    %207 = arith.addf %204, %206 : vector<18x96xf32>
    %cst_76 = arith.constant 0.000000e+00 : f32
    %208 = vector.broadcast %cst_76 : f32 to vector<18x32xf32>
    %209 = vector.extract_strided_slice %207 {offsets = [0, 0], sizes = [18, 8], strides = [1, 1]} : vector<18x96xf32> to vector<18x8xf32>
    %210 = vector.extract_strided_slice %207 {offsets = [0, 32], sizes = [18, 8], strides = [1, 1]} : vector<18x96xf32> to vector<18x8xf32>
    %211 = vector.extract_strided_slice %207 {offsets = [0, 64], sizes = [18, 8], strides = [1, 1]} : vector<18x96xf32> to vector<18x8xf32>
    %cst_77 = arith.constant dense<0.000000e+00> : vector<18x18xf32>
    %212 = tpu.matmul %209, %210, %cst_77 {dimension_numbers = #tpu.dot_dimension_numbers<[1], [1], [0], [0], [0, 0, 1, 0], [], []>} : vector<18x8xf32>, vector<18x8xf32>, vector<18x18xf32> -> vector<18x18xf32>
    %213 = arith.addf %212, %0 : vector<18x18xf32>
    %cst_78 = arith.constant dense<0xFF800000> : vector<18xf32>
    %214 = vector.multi_reduction <maximumf>, %213, %cst_78 [1] : vector<18x18xf32> to vector<18xf32>
    %215 = vector.shape_cast %214 : vector<18xf32> to vector<18x1xf32>
    %216 = vector.broadcast %215 : vector<18x1xf32> to vector<18x18xf32>
    %217 = arith.subf %213, %216 : vector<18x18xf32>
    %218 = math.exp %217 : vector<18x18xf32>
    %cst_79 = arith.constant dense<0.000000e+00> : vector<18xf32>
    %219 = vector.multi_reduction <add>, %218, %cst_79 [1] : vector<18x18xf32> to vector<18xf32>
    %220 = vector.shape_cast %219 : vector<18xf32> to vector<18x1xf32>
    %221 = tpu.reciprocal %220 {approx = true} : vector<18x1xf32> -> vector<18x1xf32>
    %222 = vector.broadcast %221 : vector<18x1xf32> to vector<18x18xf32>
    %223 = arith.mulf %218, %222 : vector<18x18xf32>
    %cst_80 = arith.constant dense<0.000000e+00> : vector<18x8xf32>
    %224 = tpu.matmul %223, %211, %cst_80 {dimension_numbers = #tpu.dot_dimension_numbers<[1], [0], [0], [1], [0, 0, 1, 1], [], []>} : vector<18x18xf32>, vector<18x8xf32>, vector<18x8xf32> -> vector<18x8xf32>
    %c1_81 = arith.constant 1 : index
    %c0_82 = arith.constant 0 : index
    %c0_83 = arith.constant 0 : index
    %225 = vector.load %arg5[%c1_81, %c0_82, %c0_83] : memref<2x32x32xbf16, #tpu.memory_space<vmem>>, vector<1x8x32xbf16>
    %226 = vector.shape_cast %225 : vector<1x8x32xbf16> to vector<8x32xbf16>
    %227 = arith.truncf %224 : vector<18x8xf32> to vector<18x8xbf16>
    %cst_84 = arith.constant dense<0.000000e+00> : vector<18x32xf32>
    %228 = tpu.matmul %227, %226, %cst_84 {dimension_numbers = #tpu.dot_dimension_numbers<[1], [0], [0], [1], [0, 0, 1, 1], [], []>} : vector<18x8xbf16>, vector<8x32xbf16>, vector<18x32xf32> -> vector<18x32xf32>
    %229 = arith.addf %208, %228 : vector<18x32xf32>
    %230 = vector.extract_strided_slice %207 {offsets = [0, 8], sizes = [18, 8], strides = [1, 1]} : vector<18x96xf32> to vector<18x8xf32>
    %231 = vector.extract_strided_slice %207 {offsets = [0, 40], sizes = [18, 8], strides = [1, 1]} : vector<18x96xf32> to vector<18x8xf32>
    %232 = vector.extract_strided_slice %207 {offsets = [0, 72], sizes = [18, 8], strides = [1, 1]} : vector<18x96xf32> to vector<18x8xf32>
    %cst_85 = arith.constant dense<0.000000e+00> : vector<18x18xf32>
    %233 = tpu.matmul %230, %231, %cst_85 {dimension_numbers = #tpu.dot_dimension_numbers<[1], [1], [0], [0], [0, 0, 1, 0], [], []>} : vector<18x8xf32>, vector<18x8xf32>, vector<18x18xf32> -> vector<18x18xf32>
    %234 = arith.addf %233, %0 : vector<18x18xf32>
    %cst_86 = arith.constant dense<0xFF800000> : vector<18xf32>
    %235 = vector.multi_reduction <maximumf>, %234, %cst_86 [1] : vector<18x18xf32> to vector<18xf32>
    %236 = vector.shape_cast %235 : vector<18xf32> to vector<18x1xf32>
    %237 = vector.broadcast %236 : vector<18x1xf32> to vector<18x18xf32>
    %238 = arith.subf %234, %237 : vector<18x18xf32>
    %239 = math.exp %238 : vector<18x18xf32>
    %cst_87 = arith.constant dense<0.000000e+00> : vector<18xf32>
    %240 = vector.multi_reduction <add>, %239, %cst_87 [1] : vector<18x18xf32> to vector<18xf32>
    %241 = vector.shape_cast %240 : vector<18xf32> to vector<18x1xf32>
    %242 = tpu.reciprocal %241 {approx = true} : vector<18x1xf32> -> vector<18x1xf32>
    %243 = vector.broadcast %242 : vector<18x1xf32> to vector<18x18xf32>
    %244 = arith.mulf %239, %243 : vector<18x18xf32>
    %cst_88 = arith.constant dense<0.000000e+00> : vector<18x8xf32>
    %245 = tpu.matmul %244, %232, %cst_88 {dimension_numbers = #tpu.dot_dimension_numbers<[1], [0], [0], [1], [0, 0, 1, 1], [], []>} : vector<18x18xf32>, vector<18x8xf32>, vector<18x8xf32> -> vector<18x8xf32>
    %c1_89 = arith.constant 1 : index
    %c8_90 = arith.constant 8 : index
    %c0_91 = arith.constant 0 : index
    %246 = vector.load %arg5[%c1_89, %c8_90, %c0_91] : memref<2x32x32xbf16, #tpu.memory_space<vmem>>, vector<1x8x32xbf16>
    %247 = vector.shape_cast %246 : vector<1x8x32xbf16> to vector<8x32xbf16>
    %248 = arith.truncf %245 : vector<18x8xf32> to vector<18x8xbf16>
    %cst_92 = arith.constant dense<0.000000e+00> : vector<18x32xf32>
    %249 = tpu.matmul %248, %247, %cst_92 {dimension_numbers = #tpu.dot_dimension_numbers<[1], [0], [0], [1], [0, 0, 1, 1], [], []>} : vector<18x8xbf16>, vector<8x32xbf16>, vector<18x32xf32> -> vector<18x32xf32>
    %250 = arith.addf %229, %249 : vector<18x32xf32>
    %251 = vector.extract_strided_slice %207 {offsets = [0, 16], sizes = [18, 8], strides = [1, 1]} : vector<18x96xf32> to vector<18x8xf32>
    %252 = vector.extract_strided_slice %207 {offsets = [0, 48], sizes = [18, 8], strides = [1, 1]} : vector<18x96xf32> to vector<18x8xf32>
    %253 = vector.extract_strided_slice %207 {offsets = [0, 80], sizes = [18, 8], strides = [1, 1]} : vector<18x96xf32> to vector<18x8xf32>
    %cst_93 = arith.constant dense<0.000000e+00> : vector<18x18xf32>
    %254 = tpu.matmul %251, %252, %cst_93 {dimension_numbers = #tpu.dot_dimension_numbers<[1], [1], [0], [0], [0, 0, 1, 0], [], []>} : vector<18x8xf32>, vector<18x8xf32>, vector<18x18xf32> -> vector<18x18xf32>
    %255 = arith.addf %254, %0 : vector<18x18xf32>
    %cst_94 = arith.constant dense<0xFF800000> : vector<18xf32>
    %256 = vector.multi_reduction <maximumf>, %255, %cst_94 [1] : vector<18x18xf32> to vector<18xf32>
    %257 = vector.shape_cast %256 : vector<18xf32> to vector<18x1xf32>
    %258 = vector.broadcast %257 : vector<18x1xf32> to vector<18x18xf32>
    %259 = arith.subf %255, %258 : vector<18x18xf32>
    %260 = math.exp %259 : vector<18x18xf32>
    %cst_95 = arith.constant dense<0.000000e+00> : vector<18xf32>
    %261 = vector.multi_reduction <add>, %260, %cst_95 [1] : vector<18x18xf32> to vector<18xf32>
    %262 = vector.shape_cast %261 : vector<18xf32> to vector<18x1xf32>
    %263 = tpu.reciprocal %262 {approx = true} : vector<18x1xf32> -> vector<18x1xf32>
    %264 = vector.broadcast %263 : vector<18x1xf32> to vector<18x18xf32>
    %265 = arith.mulf %260, %264 : vector<18x18xf32>
    %cst_96 = arith.constant dense<0.000000e+00> : vector<18x8xf32>
    %266 = tpu.matmul %265, %253, %cst_96 {dimension_numbers = #tpu.dot_dimension_numbers<[1], [0], [0], [1], [0, 0, 1, 1], [], []>} : vector<18x18xf32>, vector<18x8xf32>, vector<18x8xf32> -> vector<18x8xf32>
    %c1_97 = arith.constant 1 : index
    %c16_98 = arith.constant 16 : index
    %c0_99 = arith.constant 0 : index
    %267 = vector.load %arg5[%c1_97, %c16_98, %c0_99] : memref<2x32x32xbf16, #tpu.memory_space<vmem>>, vector<1x8x32xbf16>
    %268 = vector.shape_cast %267 : vector<1x8x32xbf16> to vector<8x32xbf16>
    %269 = arith.truncf %266 : vector<18x8xf32> to vector<18x8xbf16>
    %cst_100 = arith.constant dense<0.000000e+00> : vector<18x32xf32>
    %270 = tpu.matmul %269, %268, %cst_100 {dimension_numbers = #tpu.dot_dimension_numbers<[1], [0], [0], [1], [0, 0, 1, 1], [], []>} : vector<18x8xbf16>, vector<8x32xbf16>, vector<18x32xf32> -> vector<18x32xf32>
    %271 = arith.addf %250, %270 : vector<18x32xf32>
    %272 = vector.extract_strided_slice %207 {offsets = [0, 24], sizes = [18, 8], strides = [1, 1]} : vector<18x96xf32> to vector<18x8xf32>
    %273 = vector.extract_strided_slice %207 {offsets = [0, 56], sizes = [18, 8], strides = [1, 1]} : vector<18x96xf32> to vector<18x8xf32>
    %274 = vector.extract_strided_slice %207 {offsets = [0, 88], sizes = [18, 8], strides = [1, 1]} : vector<18x96xf32> to vector<18x8xf32>
    %cst_101 = arith.constant dense<0.000000e+00> : vector<18x18xf32>
    %275 = tpu.matmul %272, %273, %cst_101 {dimension_numbers = #tpu.dot_dimension_numbers<[1], [1], [0], [0], [0, 0, 1, 0], [], []>} : vector<18x8xf32>, vector<18x8xf32>, vector<18x18xf32> -> vector<18x18xf32>
    %276 = arith.addf %275, %0 : vector<18x18xf32>
    %cst_102 = arith.constant dense<0xFF800000> : vector<18xf32>
    %277 = vector.multi_reduction <maximumf>, %276, %cst_102 [1] : vector<18x18xf32> to vector<18xf32>
    %278 = vector.shape_cast %277 : vector<18xf32> to vector<18x1xf32>
    %279 = vector.broadcast %278 : vector<18x1xf32> to vector<18x18xf32>
    %280 = arith.subf %276, %279 : vector<18x18xf32>
    %281 = math.exp %280 : vector<18x18xf32>
    %cst_103 = arith.constant dense<0.000000e+00> : vector<18xf32>
    %282 = vector.multi_reduction <add>, %281, %cst_103 [1] : vector<18x18xf32> to vector<18xf32>
    %283 = vector.shape_cast %282 : vector<18xf32> to vector<18x1xf32>
    %284 = tpu.reciprocal %283 {approx = true} : vector<18x1xf32> -> vector<18x1xf32>
    %285 = vector.broadcast %284 : vector<18x1xf32> to vector<18x18xf32>
    %286 = arith.mulf %281, %285 : vector<18x18xf32>
    %cst_104 = arith.constant dense<0.000000e+00> : vector<18x8xf32>
    %287 = tpu.matmul %286, %274, %cst_104 {dimension_numbers = #tpu.dot_dimension_numbers<[1], [0], [0], [1], [0, 0, 1, 1], [], []>} : vector<18x18xf32>, vector<18x8xf32>, vector<18x8xf32> -> vector<18x8xf32>
    %c1_105 = arith.constant 1 : index
    %c24_106 = arith.constant 24 : index
    %c0_107 = arith.constant 0 : index
    %288 = vector.load %arg5[%c1_105, %c24_106, %c0_107] : memref<2x32x32xbf16, #tpu.memory_space<vmem>>, vector<1x8x32xbf16>
    %289 = vector.shape_cast %288 : vector<1x8x32xbf16> to vector<8x32xbf16>
    %290 = arith.truncf %287 : vector<18x8xf32> to vector<18x8xbf16>
    %cst_108 = arith.constant dense<0.000000e+00> : vector<18x32xf32>
    %291 = tpu.matmul %290, %289, %cst_108 {dimension_numbers = #tpu.dot_dimension_numbers<[1], [0], [0], [1], [0, 0, 1, 1], [], []>} : vector<18x8xbf16>, vector<8x32xbf16>, vector<18x32xf32> -> vector<18x32xf32>
    %292 = arith.addf %271, %291 : vector<18x32xf32>
    %293 = arith.addf %174, %292 : vector<18x32xf32>
    %294 = vector.extract_strided_slice %176 {offsets = [3, 0], sizes = [1, 32], strides = [1, 1]} : vector<8x128xf32> to vector<1x32xf32>
    %295 = vector.broadcast %294 : vector<1x32xf32> to vector<18x32xf32>
    %296 = arith.addf %293, %295 : vector<18x32xf32>
    %297 = vector.extract_strided_slice %176 {offsets = [4, 0], sizes = [1, 32], strides = [1, 1]} : vector<8x128xf32> to vector<1x32xf32>
    %298 = vector.extract_strided_slice %176 {offsets = [5, 0], sizes = [1, 32], strides = [1, 1]} : vector<8x128xf32> to vector<1x32xf32>
    %cst_109 = arith.constant dense<0.000000e+00> : vector<18xf32>
    %299 = vector.multi_reduction <add>, %296, %cst_109 [1] : vector<18x32xf32> to vector<18xf32>
    %300 = vector.shape_cast %299 : vector<18xf32> to vector<18x1xf32>
    %cst_110 = arith.constant 3.200000e+01 : f32
    %301 = vector.broadcast %cst_110 : f32 to vector<18x1xf32>
    %302 = arith.divf %300, %301 : vector<18x1xf32>
    %303 = vector.broadcast %302 : vector<18x1xf32> to vector<18x32xf32>
    %304 = arith.subf %296, %303 : vector<18x32xf32>
    %305 = arith.mulf %304, %304 : vector<18x32xf32>
    %cst_111 = arith.constant dense<0.000000e+00> : vector<18xf32>
    %306 = vector.multi_reduction <add>, %305, %cst_111 [1] : vector<18x32xf32> to vector<18xf32>
    %307 = vector.shape_cast %306 : vector<18xf32> to vector<18x1xf32>
    %cst_112 = arith.constant 3.200000e+01 : f32
    %308 = vector.broadcast %cst_112 : f32 to vector<18x1xf32>
    %309 = arith.divf %307, %308 : vector<18x1xf32>
    %310 = vector.broadcast %302 : vector<18x1xf32> to vector<18x32xf32>
    %311 = arith.subf %296, %310 : vector<18x32xf32>
    %cst_113 = arith.constant 9.99999997E-7 : f32
    %312 = vector.broadcast %cst_113 : f32 to vector<18x1xf32>
    %313 = arith.addf %309, %312 : vector<18x1xf32>
    %314 = math.rsqrt %313 : vector<18x1xf32>
    %315 = vector.broadcast %314 : vector<18x1xf32> to vector<18x32xf32>
    %316 = arith.mulf %311, %315 : vector<18x32xf32>
    %317 = vector.broadcast %297 : vector<1x32xf32> to vector<18x32xf32>
    %318 = arith.mulf %316, %317 : vector<18x32xf32>
    %319 = vector.broadcast %298 : vector<1x32xf32> to vector<18x32xf32>
    %320 = arith.addf %318, %319 : vector<18x32xf32>
    %321 = arith.truncf %320 : vector<18x32xf32> to vector<18x32xbf16>
    %c1_114 = arith.constant 1 : index
    %c0_115 = arith.constant 0 : index
    %c0_116 = arith.constant 0 : index
    %322 = vector.load %arg6[%c1_114, %c0_115, %c0_116] : memref<2x32x128xbf16, #tpu.memory_space<vmem>>, vector<1x32x128xbf16>
    %323 = vector.shape_cast %322 : vector<1x32x128xbf16> to vector<32x128xbf16>
    %cst_117 = arith.constant dense<0.000000e+00> : vector<18x128xf32>
    %324 = tpu.matmul %321, %323, %cst_117 {dimension_numbers = #tpu.dot_dimension_numbers<[1], [0], [0], [1], [0, 0, 1, 1], [], []>} : vector<18x32xbf16>, vector<32x128xbf16>, vector<18x128xf32> -> vector<18x128xf32>
    %325 = vector.extract_strided_slice %176 {offsets = [6, 0], sizes = [1, 128], strides = [1, 1]} : vector<8x128xf32> to vector<1x128xf32>
    %326 = vector.broadcast %325 : vector<1x128xf32> to vector<18x128xf32>
    %327 = arith.addf %324, %326 : vector<18x128xf32>
    %cst_118 = arith.constant 5.000000e-01 : f32
    %328 = vector.broadcast %cst_118 : f32 to vector<18x128xf32>
    %329 = arith.mulf %328, %327 : vector<18x128xf32>
    %cst_119 = arith.constant 0.707106769 : f32
    %330 = vector.broadcast %cst_119 : f32 to vector<18x128xf32>
    %331 = arith.mulf %327, %330 : vector<18x128xf32>
    %332 = math.erf %331 : vector<18x128xf32>
    %cst_120 = arith.constant 1.000000e+00 : f32
    %333 = vector.broadcast %cst_120 : f32 to vector<18x128xf32>
    %334 = arith.addf %333, %332 : vector<18x128xf32>
    %335 = arith.mulf %329, %334 : vector<18x128xf32>
    %336 = arith.truncf %335 : vector<18x128xf32> to vector<18x128xbf16>
    %c1_121 = arith.constant 1 : index
    %c0_122 = arith.constant 0 : index
    %c0_123 = arith.constant 0 : index
    %337 = vector.load %arg7[%c1_121, %c0_122, %c0_123] : memref<2x128x32xbf16, #tpu.memory_space<vmem>>, vector<1x128x32xbf16>
    %338 = vector.shape_cast %337 : vector<1x128x32xbf16> to vector<128x32xbf16>
    %cst_124 = arith.constant dense<0.000000e+00> : vector<18x32xf32>
    %339 = tpu.matmul %336, %338, %cst_124 {dimension_numbers = #tpu.dot_dimension_numbers<[1], [0], [0], [1], [0, 0, 1, 1], [], []>} : vector<18x128xbf16>, vector<128x32xbf16>, vector<18x32xf32> -> vector<18x32xf32>
    %340 = arith.addf %296, %339 : vector<18x32xf32>
    %341 = vector.extract_strided_slice %176 {offsets = [7, 0], sizes = [1, 32], strides = [1, 1]} : vector<8x128xf32> to vector<1x32xf32>
    %342 = vector.broadcast %341 : vector<1x32xf32> to vector<18x32xf32>
    %343 = arith.addf %340, %342 : vector<18x32xf32>
    %c0_125 = arith.constant 0 : index
    %c0_126 = arith.constant 0 : index
    %344 = vector.load %arg12[%c0_125, %c0_126] : memref<8x128xf32, #tpu.memory_space<vmem>>, vector<8x128xf32>
    %345 = vector.extract_strided_slice %343 {offsets = [0, 0], sizes = [2, 32], strides = [1, 1]} : vector<18x32xf32> to vector<2x32xf32>
    %346 = vector.extract_strided_slice %344 {offsets = [0, 0], sizes = [1, 32], strides = [1, 1]} : vector<8x128xf32> to vector<1x32xf32>
    %347 = vector.extract_strided_slice %344 {offsets = [1, 0], sizes = [1, 32], strides = [1, 1]} : vector<8x128xf32> to vector<1x32xf32>
    %cst_127 = arith.constant dense<0.000000e+00> : vector<2xf32>
    %348 = vector.multi_reduction <add>, %345, %cst_127 [1] : vector<2x32xf32> to vector<2xf32>
    %349 = vector.shape_cast %348 : vector<2xf32> to vector<2x1xf32>
    %cst_128 = arith.constant 3.200000e+01 : f32
    %350 = vector.broadcast %cst_128 : f32 to vector<2x1xf32>
    %351 = arith.divf %349, %350 : vector<2x1xf32>
    %352 = vector.broadcast %351 : vector<2x1xf32> to vector<2x32xf32>
    %353 = arith.subf %345, %352 : vector<2x32xf32>
    %354 = arith.mulf %353, %353 : vector<2x32xf32>
    %cst_129 = arith.constant dense<0.000000e+00> : vector<2xf32>
    %355 = vector.multi_reduction <add>, %354, %cst_129 [1] : vector<2x32xf32> to vector<2xf32>
    %356 = vector.shape_cast %355 : vector<2xf32> to vector<2x1xf32>
    %cst_130 = arith.constant 3.200000e+01 : f32
    %357 = vector.broadcast %cst_130 : f32 to vector<2x1xf32>
    %358 = arith.divf %356, %357 : vector<2x1xf32>
    %359 = vector.broadcast %351 : vector<2x1xf32> to vector<2x32xf32>
    %360 = arith.subf %345, %359 : vector<2x32xf32>
    %cst_131 = arith.constant 9.99999997E-7 : f32
    %361 = vector.broadcast %cst_131 : f32 to vector<2x1xf32>
    %362 = arith.addf %358, %361 : vector<2x1xf32>
    %363 = math.rsqrt %362 : vector<2x1xf32>
    %364 = vector.broadcast %363 : vector<2x1xf32> to vector<2x32xf32>
    %365 = arith.mulf %360, %364 : vector<2x32xf32>
    %366 = vector.broadcast %346 : vector<1x32xf32> to vector<2x32xf32>
    %367 = arith.mulf %365, %366 : vector<2x32xf32>
    %368 = vector.broadcast %347 : vector<1x32xf32> to vector<2x32xf32>
    %369 = arith.addf %367, %368 : vector<2x32xf32>
    %370 = arith.truncf %369 : vector<2x32xf32> to vector<2x32xbf16>
    %c0_132 = arith.constant 0 : index
    %c0_133 = arith.constant 0 : index
    %371 = vector.load %arg9[%c0_132, %c0_133] : memref<32x1024xbf16, #tpu.memory_space<vmem>>, vector<32x1024xbf16>
    %cst_134 = arith.constant dense<0.000000e+00> : vector<2x1024xf32>
    %372 = tpu.matmul %370, %371, %cst_134 {dimension_numbers = #tpu.dot_dimension_numbers<[1], [0], [0], [1], [0, 0, 1, 1], [], []>} : vector<2x32xbf16>, vector<32x1024xbf16>, vector<2x1024xf32> -> vector<2x1024xf32>
    %c0_135 = arith.constant 0 : index
    %c0_136 = arith.constant 0 : index
    %373 = vector.load %arg10[%c0_135, %c0_136] : memref<1x1024xf32, #tpu.memory_space<vmem>>, vector<1x1024xf32>
    %374 = vector.broadcast %373 : vector<1x1024xf32> to vector<2x1024xf32>
    %375 = arith.addf %372, %374 : vector<2x1024xf32>
    %cst_137 = arith.constant 5.000000e-01 : f32
    %376 = vector.broadcast %cst_137 : f32 to vector<2x1024xf32>
    %377 = arith.mulf %376, %375 : vector<2x1024xf32>
    %cst_138 = arith.constant 0.707106769 : f32
    %378 = vector.broadcast %cst_138 : f32 to vector<2x1024xf32>
    %379 = arith.mulf %375, %378 : vector<2x1024xf32>
    %380 = math.erf %379 : vector<2x1024xf32>
    %cst_139 = arith.constant 1.000000e+00 : f32
    %381 = vector.broadcast %cst_139 : f32 to vector<2x1024xf32>
    %382 = arith.addf %381, %380 : vector<2x1024xf32>
    %383 = arith.mulf %377, %382 : vector<2x1024xf32>
    %384 = arith.truncf %383 : vector<2x1024xf32> to vector<2x1024xbf16>
    %c0_140 = arith.constant 0 : index
    %c0_141 = arith.constant 0 : index
    %385 = vector.load %arg11[%c0_140, %c0_141] : memref<1024x128xbf16, #tpu.memory_space<vmem>>, vector<1024x128xbf16>
    %cst_142 = arith.constant dense<0.000000e+00> : vector<2x128xf32>
    %386 = tpu.matmul %384, %385, %cst_142 {dimension_numbers = #tpu.dot_dimension_numbers<[1], [0], [0], [1], [0, 0, 1, 1], [], []>} : vector<2x1024xbf16>, vector<1024x128xbf16>, vector<2x128xf32> -> vector<2x128xf32>
    %387 = vector.extract_strided_slice %344 {offsets = [2, 0], sizes = [1, 128], strides = [1, 1]} : vector<8x128xf32> to vector<1x128xf32>
    %388 = vector.broadcast %387 : vector<1x128xf32> to vector<2x128xf32>
    %389 = arith.addf %386, %388 : vector<2x128xf32>
    %c0_143 = arith.constant 0 : index
    %c0_144 = arith.constant 0 : index
    %390 = vector.load %arg13[%c0_143, %c0_144] : memref<2x128xf32, #tpu.memory_space<vmem>>, vector<2x128xf32>
    tpu.vector_store %arg13[%c0_143, %c0_144], %389 {strides = array<i32>} : memref<2x128xf32, #tpu.memory_space<vmem>>, vector<2x128xf32>,
    return
  }
}

</mosaic_0001>

<bundles_post_ra>
// kernel: forward.1
= control target key start
LH: loop header
LB: loop body
LE: loop exit
PB: predicated region body
PF: predicated region fallthrough
CT: control target
= control target key end

     0   :  { %s8034_s0 = inlined_call_operand.vmem [shape: bf16[18,1024], index: 0, kind: input, shape index: {}]   ;;  %s8035_s1 = inlined_call_operand.vmem [shape: f32[18,32], index: 1, kind: input, shape index: {}]   ;;  %s8036_s2 = inlined_call_operand.vmem [shape: f32[18,18], index: 2, kind: input, shape index: {}]   ;;  %s8037_s3 = inlined_call_operand.vmem [shape: bf16[1024,32], index: 3, kind: input, shape index: {}]   ;;  %s8038_s4 = inlined_call_operand.vmem [shape: bf16[2,32,96], index: 4, kind: input, shape index: {}]   ;;  %s8039_s5 = inlined_call_operand.vmem [shape: bf16[2,32,32], index: 5, kind: input, shape index: {}]   ;;  %s8040_s6 = inlined_call_operand.vmem [shape: bf16[2,32,128], index: 6, kind: input, shape index: {}]   ;;  %s8041_s7 = inlined_call_operand.vmem [shape: bf16[2,128,32], index: 7, kind: input, shape index: {}]   ;;  %s8042_s8 = inlined_call_operand.vmem [shape: f32[2,8,128], index: 8, kind: input, shape index: {}]   ;;  %s8043_s9 = inlined_call_operand.vmem [shape: bf16[32,1024], index: 9, kind: input, shape index: {}]   ;;  %s8044_s10 = inlined_call_operand.vmem [shape: f32[1,1024], index: 10, kind: input, shape index: {}]   ;;  %s8045_s11 = inlined_call_operand.vmem [shape: bf16[1024,128], index: 11, kind: input, shape index: {}]   ;;  %s8046_s12 = inlined_call_operand.vmem [shape: f32[8,128], index: 12, kind: input, shape index: {}]   ;;  %s8047_s13 = inlined_call_operand.hbm [shape: f32[2,128], index: 13, kind: output, shape index: {}]  }
   0x1   :  { %v6303_v0 = vld [vmem:[%s8037_s3 + $0x40] sm:$0xff]   ;;  %v6307_v4 = vld [vmem:[%s8037_s3 + $0x48] sm:$0xff]   ;;  %v6311_v8 = vld [vmem:[%s8037_s3 + $0x50] sm:$0xff]  }
   0x2   :  { %v6304_v1 = vld [vmem:[%s8037_s3 + $0xc0] sm:$0xff]   ;;  %5423 = vmatprep.subr.bf16.mxu0 %v6303_v0  ;;  %v6308_v5 = vld [vmem:[%s8037_s3 + $0xc8] sm:$0xff]   ;;  %v6312_v9 = vld [vmem:[%s8037_s3 + $0xd0] sm:$0xff]  }
   0x3   :  { %v6305_v2 = vld [vmem:[%s8037_s3] sm:$0xff]   ;;  %5451 = vmatprep.subr.bf16.mxu1 %v6304_v1  ;;  %v6309_v6 = vld [vmem:[%s8037_s3 + $0x8] sm:$0xff]   ;;  %v6313_v10 = vld [vmem:[%s8037_s3 + $0x10] sm:$0xff]  }
   0x4   :  { %v6306_v3 = vld [vmem:[%s8037_s3 + $0x80] sm:$0xff]   ;;  %5424 = vmatpush3.bf16.msra.mxu0 %v6305_v2  ;;  %v6310_v7 = vld [vmem:[%s8037_s3 + $0x88] sm:$0xff]   ;;  %v6314_v11 = vld [vmem:[%s8037_s3 + $0x90] sm:$0xff]  }
   0x5   :  { %5452 = vmatpush3.bf16.msra.mxu1 %v6306_v3  ;;  %5425 = vmatprep.subr.bf16.mxu0 %v6307_v4  ;;  %v6315_v12 = vld [vmem:[%s8037_s3 + $0x58] sm:$0xff]   ;;  %v6319_v16 = vld [vmem:[%s8037_s3 + $0x60] sm:$0xff]   ;;  %v6323_v20 = vld [vmem:[%s8037_s3 + $0x68] sm:$0xff]  }
   0x6   :  { %5453 = vmatprep.subr.bf16.mxu1 %v6308_v5  ;;  %v6316_v13 = vld [vmem:[%s8037_s3 + $0xd8] sm:$0xff]   ;;  %v6320_v17 = vld [vmem:[%s8037_s3 + $0xe0] sm:$0xff]   ;;  %v6324_v21 = vld [vmem:[%s8037_s3 + $0xe8] sm:$0xff]  }
   0x7   :  { %v6317_v14 = vld [vmem:[%s8037_s3 + $0x18] sm:$0xff]   ;;  %v6321_v18 = vld [vmem:[%s8037_s3 + $0x20] sm:$0xff]   ;;  %v6325_v22 = vld [vmem:[%s8037_s3 + $0x28] sm:$0xff]  }
   0x8   :  { %5426 = vmatpush3.bf16.msra.mxu0 %v6309_v6  ;;  %v6318_v15 = vld [vmem:[%s8037_s3 + $0x98] sm:$0xff]   ;;  %v6322_v19 = vld [vmem:[%s8037_s3 + $0xa0] sm:$0xff]   ;;  %v6326_v23 = vld [vmem:[%s8037_s3 + $0xa8] sm:$0xff]  }
   0x9   :  { %5454 = vmatpush3.bf16.msra.mxu1 %v6310_v7  ;;  %5427 = vmatprep.subr.bf16.mxu0 %v6311_v8  ;;  %v6327_v24 = vld [vmem:[%s8037_s3 + $0x70] sm:$0xff]   ;;  %v6331_v28 = vld [vmem:[%s8037_s3 + $0x78] sm:$0xff]   ;;  %v49_v32 = vld [vmem:[%s8034_s0] sm:$0xff] }
   0xa   :  { %5455 = vmatprep.subr.bf16.mxu1 %v6312_v9  ;;  %v6328_v25 = vld [vmem:[%s8037_s3 + $0xf0] sm:$0xff]   ;;  %v6332_v29 = vld [vmem:[%s8037_s3 + $0xf8] sm:$0xff]   ;;  %v53_v33 = vld [vmem:[%s8034_s0 + $0x20] sm:$0xff] }
   0xb   :  { %v6329_v26 = vld [vmem:[%s8037_s3 + $0x30] sm:$0xff]   ;;  %v6333_v30 = vld [vmem:[%s8037_s3 + $0x38] sm:$0xff]   ;;  %v50_v34 = vld [vmem:[%s8034_s0 + $0x8] sm:$0xff]  ;;  %v5102_v35 = vcombine.low %v49_v32, %v53_v33  ;;  %v5103_v36 = vcombine.high %v49_v32, %v53_v33 }
   0xc   :  { %5428 = vmatpush3.bf16.msra.mxu0 %v6313_v10  ;;  %v6330_v27 = vld [vmem:[%s8037_s3 + $0xb0] sm:$0xff]   ;;  %v6334_v31 = vld [vmem:[%s8037_s3 + $0xb8] sm:$0xff]   ;;  %v54_v37 = vld [vmem:[%s8034_s0 + $0x28] sm:$0xff] }
   0xd   :  { %5456 = vmatpush3.bf16.msra.mxu1 %v6314_v11  ;;  %5429 = vmatprep.subr.bf16.mxu0 %v6315_v12  ;;  %v5104_v38 = vcombine.low %v50_v34, %v54_v37  ;;  %v5105_v39 = vcombine.high %v50_v34, %v54_v37  ;;  %v6335_v40 = vld [vmem:[%s8037_s3 + $0x140] sm:$0xff]   ;;  %v6339_v44 = vld [vmem:[%s8037_s3 + $0x148] sm:$0xff]   ;;  %v6343_v48 = vld [vmem:[%s8037_s3 + $0x150] sm:$0xff]  }
   0xe   :  { %5457 = vmatprep.subr.bf16.mxu1 %v6316_v13  ;;  %676 = vmatprep.mubr.bf16.mxu0 %v5103_v36  ;;  %v6336_v41 = vld [vmem:[%s8037_s3 + $0x1c0] sm:$0xff]   ;;  %v6340_v45 = vld [vmem:[%s8037_s3 + $0x1c8] sm:$0xff]   ;;  %v6344_v49 = vld [vmem:[%s8037_s3 + $0x1d0] sm:$0xff]  }
   0xf   :  { %724 = vmatprep.mubr.bf16.mxu1 %v5105_v39  ;;  %v6337_v42 = vld [vmem:[%s8037_s3 + $0x100] sm:$0xff]   ;;  %v6341_v46 = vld [vmem:[%s8037_s3 + $0x108] sm:$0xff]   ;;  %v6345_v50 = vld [vmem:[%s8037_s3 + $0x110] sm:$0xff]  }
  0x10   :  { %5430 = vmatpush3.bf16.msra.mxu0 %v6317_v14  ;;  %v6338_v43 = vld [vmem:[%s8037_s3 + $0x180] sm:$0xff]   ;;  %v6342_v47 = vld [vmem:[%s8037_s3 + $0x188] sm:$0xff]   ;;  %v6346_v51 = vld [vmem:[%s8037_s3 + $0x190] sm:$0xff]  }
  0x11   :  { %5458 = vmatpush3.bf16.msra.mxu1 %v6318_v15  ;;  %5431 = vmatprep.subr.bf16.mxu0 %v6319_v16  ;;  %v6347_v52 = vld [vmem:[%s8037_s3 + $0x158] sm:$0xff]   ;;  %v6351_v56 = vld [vmem:[%s8037_s3 + $0x160] sm:$0xff]   ;;  %v6356_v62 = vld [vmem:[%s8037_s3 + $0x168] sm:$0xff]  }
  0x12   :  { %5459 = vmatprep.subr.bf16.mxu1 %v6320_v17  ;;  %v6348_v53 = vld [vmem:[%s8037_s3 + $0x1d8] sm:$0xff]   ;;  %v6352_v57 = vld [vmem:[%s8037_s3 + $0x1e0] sm:$0xff]   ;;  %v6357_v0 = vld [vmem:[%s8037_s3 + $0x1e8] sm:$0xff]  }
  0x13   :  { %v6349_v54 = vld [vmem:[%s8037_s3 + $0x118] sm:$0xff]   ;;  %v6353_v58 = vld [vmem:[%s8037_s3 + $0x120] sm:$0xff]   ;;  %v6359_v1 = vld [vmem:[%s8037_s3 + $0x128] sm:$0xff]  }
  0x14   :  { %5432 = vmatpush3.bf16.msra.mxu0 %v6321_v18  ;;  %v6350_v55 = vld [vmem:[%s8037_s3 + $0x198] sm:$0xff]   ;;  %v6354_v59 = vld [vmem:[%s8037_s3 + $0x1a0] sm:$0xff]   ;;  %v6360_v2 = vld [vmem:[%s8037_s3 + $0x1a8] sm:$0xff]  }
  0x15   :  { %5460 = vmatpush3.bf16.msra.mxu1 %v6322_v19  ;;  %5433 = vmatprep.subr.bf16.mxu0 %v6323_v20  ;;  %v57_v60 = vld [vmem:[%s8034_s0 + $0x40] sm:$0x11]  ;;  %v58_v3 = vld [vmem:[%s8034_s0 + $0x48] sm:$0x11]  ;;  %v6363_v6 = vld [vmem:[%s8037_s3 + $0x170] sm:$0xff]  }
  0x16   :  { %5461 = vmatprep.subr.bf16.mxu1 %v6324_v21  ;;  %v5111_v61 = vcombine.high %v57_v60, %v57_v60  ;;  %v5110_v63 = vcombine.low %v57_v60, %v57_v60  ;;  %v5113_v4 = vcombine.high %v58_v3, %v58_v3  ;;  %v5112_v5 = vcombine.low %v58_v3, %v58_v3  ;;  %v6364_v7 = vld [vmem:[%s8037_s3 + $0x1f0] sm:$0xff]   ;;  %v6367_v10 = vld [vmem:[%s8037_s3 + $0x178] sm:$0xff]  }
  0x17   :  { %v6365_v8 = vld [vmem:[%s8037_s3 + $0x130] sm:$0xff]   ;;  %v6368_v11 = vld [vmem:[%s8037_s3 + $0x1f8] sm:$0xff]  }
  0x18   :  { %5434 = vmatpush3.bf16.msra.mxu0 %v6325_v22  ;;  %v6366_v9 = vld [vmem:[%s8037_s3 + $0x1b0] sm:$0xff]   ;;  %v6369_v12 = vld [vmem:[%s8037_s3 + $0x138] sm:$0xff]  }
  0x19   :  { %5462 = vmatpush3.bf16.msra.mxu1 %v6326_v23  ;;  %5435 = vmatprep.subr.bf16.mxu0 %v6327_v24  ;;  %v6370_v13 = vld [vmem:[%s8037_s3 + $0x1b8] sm:$0xff]   ;;  %v51_v14 = vld [vmem:[%s8034_s0 + $0x10] sm:$0xff] }
  0x1a   :  { %5463 = vmatprep.subr.bf16.mxu1 %v6328_v25  ;;  %v55_v15 = vld [vmem:[%s8034_s0 + $0x30] sm:$0xff]  ;;  %v52_v16 = vld [vmem:[%s8034_s0 + $0x18] sm:$0xff] }
  0x1b   :  { %v5106_v17 = vcombine.low %v51_v14, %v55_v15  ;;  %v5107_v18 = vcombine.high %v51_v14, %v55_v15  ;;  %v56_v19 = vld [vmem:[%s8034_s0 + $0x38] sm:$0xff]  ;;  %v59_v20 = vld [vmem:[%s8034_s0 + $0x50] sm:$0x11] }
  0x1c   :  { %5436 = vmatpush3.bf16.msra.mxu0 %v6329_v26  ;;  %v60_v21 = vld [vmem:[%s8034_s0 + $0x58] sm:$0x11]  ;;  %v5108_v22 = vcombine.low %v52_v16, %v56_v19  ;;  %v5109_v23 = vcombine.high %v52_v16, %v56_v19  ;;  %v5115_v24 = vcombine.high %v59_v20, %v59_v20  ;;  %v5114_v26 = vcombine.low %v59_v20, %v59_v20 }
  0x1d   :  { %5464 = vmatpush3.bf16.msra.mxu1 %v6330_v27  ;;  %5437 = vmatprep.subr.bf16.mxu0 %v6331_v28  ;;  %v5117_v25 = vcombine.high %v60_v21, %v60_v21  ;;  %v5116_v27 = vcombine.low %v60_v21, %v60_v21 }
  0x1e   :  { %5465 = vmatprep.subr.bf16.mxu1 %v6332_v29 }
  0x20   :  { %5438 = vmatpush3.bf16.msra.mxu0 %v6333_v30 }
  0x21   :  { %5466 = vmatpush3.bf16.msra.mxu1 %v6334_v31  ;;  %5479 = vmatprep.subr.bf16.mxu0 %v6335_v40 }
  0x22   :  { %5507 = vmatprep.subr.bf16.mxu1 %v6336_v41 }
  0x23   :  { %677 = vmatmul.mubr.bf16.vlgmr.msra.gmra.mrb[0].mxu0 %v5102_v35 }
  0x24   :  { %725 = vmatmul.mubr.bf16.vlgmr.msra.gmra.mrb[0].mxu1 %v5104_v38  ;;  %5480 = vmatpush3.bf16.msra.mxu0 %v6337_v42 }
  0x25   :  { %5508 = vmatpush3.bf16.msra.mxu1 %v6338_v43  ;;  %5481 = vmatprep.subr.bf16.mxu0 %v6339_v44 }
  0x26   :  { %5509 = vmatprep.subr.bf16.mxu1 %v6340_v45  ;;  %684 = vmatprep.mubr.bf16.mxu0 %v5111_v61 }
  0x27   :  { %732 = vmatprep.mubr.bf16.mxu1 %v5113_v4 }
  0x28   :  { %5482 = vmatpush3.bf16.msra.mxu0 %v6341_v46 }
  0x29   :  { %5510 = vmatpush3.bf16.msra.mxu1 %v6342_v47  ;;  %5483 = vmatprep.subr.bf16.mxu0 %v6343_v48 }
  0x2a   :  { %5511 = vmatprep.subr.bf16.mxu1 %v6344_v49 }
  0x2b   :  { %685 = vmatmul.mubr.bf16.gmra.mrb[4].mxu0 %v5110_v63 }
  0x2c   :  { %5484 = vmatpush3.bf16.msra.mxu0 %v6345_v50  ;;  %733 = vmatmul.mubr.bf16.gmra.mrb[4].mxu1 %v5112_v5 }
  0x2d   :  { %5512 = vmatpush3.bf16.msra.mxu1 %v6346_v51  ;;  %5485 = vmatprep.subr.bf16.mxu0 %v6347_v52 }
  0x2e   :  { %5513 = vmatprep.subr.bf16.mxu1 %v6348_v53  ;;  %772 = vmatprep.mubr.bf16.mxu0 %v5107_v18 }
  0x2f   :  { %820 = vmatprep.mubr.bf16.mxu1 %v5109_v23 }
  0x30   :  { %5486 = vmatpush3.bf16.msra.mxu0 %v6349_v54 }
  0x31   :  { %5514 = vmatpush3.bf16.msra.mxu1 %v6350_v55  ;;  %5487 = vmatprep.subr.bf16.mxu0 %v6351_v56 }
  0x32   :  { %5515 = vmatprep.subr.bf16.mxu1 %v6352_v57 }
  0x34   :  { %5488 = vmatpush3.bf16.msra.mxu0 %v6353_v58 }
  0x35   :  { %5516 = vmatpush3.bf16.msra.mxu1 %v6354_v59  ;;  %5489 = vmatprep.subr.bf16.mxu0 %v6356_v62 }
  0x36   :  { %5517 = vmatprep.subr.bf16.mxu1 %v6357_v0 }
  0x38   :  { %5490 = vmatpush3.bf16.msra.mxu0 %v6359_v1 }
  0x39   :  { %5518 = vmatpush3.bf16.msra.mxu1 %v6360_v2  ;;  %5491 = vmatprep.subr.bf16.mxu0 %v6363_v6 }
  0x3a   :  { %5519 = vmatprep.subr.bf16.mxu1 %v6364_v7 }
  0x3c   :  { %5492 = vmatpush3.bf16.msra.mxu0 %v6365_v8 }
  0x3d   :  { %5520 = vmatpush3.bf16.msra.mxu1 %v6366_v9  ;;  %5493 = vmatprep.subr.bf16.mxu0 %v6367_v10 }
  0x3e   :  { %5521 = vmatprep.subr.bf16.mxu1 %v6368_v11 }
  0x40   :  { %5494 = vmatpush3.bf16.msra.mxu0 %v6369_v12 }
  0x41   :  { %5522 = vmatpush3.bf16.msra.mxu1 %v6370_v13 }
  0x43   :  { %773 = vmatmul.mubr.bf16.vlgmr.msra.gmra.mrb[8].mxu0 %v5106_v17 }
  0x44   :  { %821 = vmatmul.mubr.bf16.vlgmr.msra.gmra.mrb[8].mxu1 %v5108_v22  ;;  %780 = vmatprep.mubr.bf16.mxu0 %v5115_v24 }
  0x45   :  { %828 = vmatprep.mubr.bf16.mxu1 %v5117_v25 }
  0x4b   :  { %781 = vmatmul.mubr.bf16.gmra.mrb[12].mxu0 %v5114_v26 }
  0x4c   :  { %829 = vmatmul.mubr.bf16.gmra.mrb[12].mxu1 %v5116_v27 }
  0x4d   :  { %18 = vsyncpa [#allocation3], 0  ;;  %v189_v30 = vld [vmem:[%s8035_s1] sm:$0xff]  ;;  %v190_v37 = vld [vmem:[%s8035_s1 + $0x8] sm:$0xff]  ;;  %vm837_vm0 = vcmask 261120   ;;  %vm844_vm1 = vcmask 254976  }
  0x4e   :  { %v191_v47 = vld [vmem:[%s8035_s1 + $0x10] sm:$0x3]  ;;  %s6643_s16 = smov 96   ;;  %s6644_s17 = smov 88   ;;  %vm6645_vm2 = vmmov 0   ;;  %vm978_vm3 = vcmask 64512  }
  0x4f   :  { %s6647_s18 = smov 120   ;;  %vm7045_vm4 = vmpackc.low %vm978_vm3, %vm978_vm3  ;;  %vm1071_vm5 = vcmask 146432   ;;  %vm1078_vm6 = vcmask 140288   ;;  %s6648_s24 = smov 64   ;;  %vm1123_vm7 = vcmask 1041408   ;;  %vm1454_vm8 = vcmask 1043456  }
  0x50   :  { %s6649_s0 = smov 56   ;;  %s6650_s25 = smov 80  }
  0x51   :  { %s6651_s26 = smov 112   ;;  %s6652_s30 = smov 48  }
  0x52   :  { %s6653_s14 = smov 72   ;;  %s6654_s15 = smov 104  }
  0x53   :  { %s6655_s20 = smov 40  }
  0xf6   :  { %v5439_v28 = vpop.f32.mrb[0].mxu0 }
  0xf7   :  { %v5467_v29 = vpop.f32.mrb[0].mxu1  ;;  %v5440_v31 = vpop.f32.mrb[1].mxu0 }
  0xf8   :  { %v5441_v32 = vadd.f32 %v5440_v31, %v5439_v28  ;;  %v5468_v33 = vpop.f32.mrb[1].mxu1  ;;  %v5442_v34 = vpop.f32.mrb[2].mxu0 }
  0xf9   :  { %v5469_v35 = vadd.f32 %v5468_v33, %v5467_v29  ;;  %v5470_v36 = vpop.f32.mrb[2].mxu1  ;;  %v5443_v38 = vpop.f32.mrb[3].mxu0 }
  0xfa   :  { %v679_v39 = vadd.f32 %v5441_v32, %v189_v30  ;;  %v5444_v40 = vadd.f32 %v5443_v38, %v5442_v34  ;;  %v5471_v41 = vpop.f32.mrb[3].mxu1 }
  0xfb   :  { %v5472_v42 = vadd.f32 %v5471_v41, %v5470_v36  ;;  %v6375_v41 = vld [vmem:[%s8038_s4] sm:$0xff]  }
  0xfc   :  { %v727_v43 = vadd.f32 %v5469_v35, %v679_v39  ;;  %v682_v44 = vadd.f32 %v5444_v40, %v190_v37  ;;  %5779 = vmatprep.subr.bf16.mxu0 %v6375_v41 }
  0xfd   :  { %5780 = vmatpush3.bf16.msra.mxu0 %v6375_v41 }
  0xfe   :  { %v730_v45 = vadd.f32 %v5472_v42, %v682_v44  ;;  %v5445_v46 = vpop.f32.mrb[4].mxu0  ;;  %v6376_v42 = vld [vmem:[%s8038_s4 + $0x8] sm:$0xff]  }
  0xff   :  { %v5446_v48 = vpop.f32.mrb[5].mxu0  ;;  %v5473_v53 = vpop.f32.mrb[4].mxu1  ;;  %5781 = vmatprep.subr.bf16.mxu0 %v6376_v42 }
 0x100   :  { %v5447_v49 = vadd.f32 %v5446_v48, %v5445_v46  ;;  %v5448_v50 = vpop.f32.mrb[6].mxu0  ;;  %v5474_v54 = vpop.f32.mrb[5].mxu1 }
 0x101   :  { %v5449_v51 = vpop.f32.mrb[7].mxu0  ;;  %v5475_v55 = vadd.f32 %v5474_v54, %v5473_v53  ;;  %v5476_v56 = vpop.f32.mrb[6].mxu1  ;;  %5782 = vmatpush3.bf16.msra.mxu0 %v6376_v42  ;;  %v7089_v42 = vld [vmem:[%s8036_s2 + $0x8] sm:$0xff] }
 0x102   :  { %v687_v52 = vadd.f32 %v5447_v49, %v191_v47  ;;  %v5477_v57 = vpop.f32.mrb[7].mxu1  ;;  %v879_v47 = vlaneseq }
 0x104   :  { %v735_v58 = vadd.f32 %v5475_v55, %v687_v52  ;;  %v6989_v50 = vshrl.u32 %v879_v47, 7  ;;  %v6997_v55 = vld [vmem:[%s8042_s8] sm:$0xff]  ;;  %v7096_v47 = vld [vmem:[%s8036_s2 + $0x10] sm:$0x3] }
 0x106   :  { %v6992_v54 = vsub.s32 0, %v6989_v50 }
 0x108   :  { %v882_v57 = vrot.slane %v6997_v55, %v6992_v54 }
 0x116   :  { %v5495_v59 = vpop.f32.mrb[8].mxu0 }
 0x117   :  { %v5523_v60 = vpop.f32.mrb[8].mxu1  ;;  %v5496_v61 = vpop.f32.mrb[9].mxu0 }
 0x118   :  { %v5497_v62 = vadd.f32 %v5496_v61, %v5495_v59  ;;  %v5524_v63 = vpop.f32.mrb[9].mxu1  ;;  %v5498_v0 = vpop.f32.mrb[10].mxu0  ;;  %v7002_v59 = vsub.s32 1, %v6989_v50 }
 0x119   :  { %v5525_v1 = vadd.f32 %v5524_v63, %v5523_v60  ;;  %v5526_v2 = vpop.f32.mrb[10].mxu1  ;;  %v5499_v3 = vpop.f32.mrb[11].mxu0 }
 0x11a   :  { %v775_v4 = vadd.f32 %v5497_v62, %v727_v43  ;;  %v5500_v5 = vadd.f32 %v5499_v3, %v5498_v0  ;;  %v5527_v6 = vpop.f32.mrb[11].mxu1  ;;  %v889_v63 = vrot.slane %v6997_v55, %v7002_v59 }
 0x11b   :  { %v5528_v7 = vadd.f32 %v5527_v6, %v5526_v2 }
 0x11c   :  { %v6965_v8 = vadd.f32 %v5525_v1, %v775_v4  ;;  %v778_v9 = vadd.f32 %v5500_v5, %v730_v45 }
 0x11e   :  { %v6967_v10 = vadd.f32 %v5528_v7, %v778_v9  ;;  %v5501_v11 = vpop.f32.mrb[12].mxu0  ;;  %v838_v12 = vsel %vm837_vm0, %v6965_v8, 0.0 }
 0x11f   :  { %v5529_v13 = vpop.f32.mrb[12].mxu1  ;;  %v5502_v14 = vpop.f32.mrb[13].mxu0  ;;  %839 = vadd.xlane.f32.xlu0 %v838_v12 }
 0x120   :  { %v5503_v15 = vadd.f32 %v5502_v14, %v5501_v11  ;;  %v5530_v16 = vpop.f32.mrb[13].mxu1  ;;  %v5504_v17 = vpop.f32.mrb[14].mxu0  ;;  %v841_v23 = vsel %vm837_vm0, %v6967_v10, 0.0  ;;  %v7009_v11 = vsub.s32 2, %v6989_v50 }
 0x121   :  { %v5531_v18 = vadd.f32 %v5530_v16, %v5529_v13  ;;  %v5532_v19 = vpop.f32.mrb[14].mxu1  ;;  %v5505_v20 = vpop.f32.mrb[15].mxu0  ;;  %v6642_v13 = vmov 0.0|0.0  }
 0x122   :  { %v783_v21 = vadd.f32 %v5503_v15, %v735_v58  ;;  %v5533_v22 = vpop.f32.mrb[15].mxu1  ;;  %v902_v12 = vrot.slane %v6997_v55, %v7009_v11  ;;  %6139 = vmatprep.subr.bf16.mxu1 %v6642_v13  ;;  %6143 = vmatprep.subr.bf16.mxu0 %v6642_v13 }
 0x123   :  { %842 = vadd.xlane.f32.xlu0 %v841_v23  ;;  %v6646_v22 = vmov 0.0  }
 0x124   :  { %v6973_v24 = vadd.f32 %v5531_v18, %v783_v21  ;;  %5793 = vmatprep.mubr.msk.f32.mxu1 %vm6645_vm2, %v6646_v22 }
 0x126   :  { %v845_v25 = vsel %vm844_vm1, %v6973_v24, 0.0 }
 0x127   :  { %846 = vadd.xlane.f32.xlu1 %v845_v25 }
 0x1ac   :  { %v840_v26 = vpop.xlane.xlu0 %839 }
 0x1ad   :  { %v849_v27 = vmul.f32 0.03125, %v840_v26 }
 0x1af   :  { %v852_v28 = vsub.f32 %v6965_v8, %v849_v27 }
 0x1b0   :  { %v843_v29 = vpop.xlane.xlu0 %842 }
 0x1b1   :  { %v850_v30 = vmul.f32 0.03125, %v843_v29  ;;  %v855_v31 = vmul.f32 %v852_v28, %v852_v28 }
 0x1b3   :  { %v853_v32 = vsub.f32 %v6967_v10, %v850_v30  ;;  %v858_v33 = vsel %vm837_vm0, %v855_v31, 0.0 }
 0x1b4   :  { %v847_v34 = vpop.xlane.xlu1 %846  ;;  %859 = vadd.xlane.f32.xlu1 %v858_v33 }
 0x1b5   :  { %v851_v35 = vmul.f32 0.03125, %v847_v34  ;;  %v856_v36 = vmul.f32 %v853_v32, %v853_v32 }
 0x1b7   :  { %v854_v37 = vsub.f32 %v6973_v24, %v851_v35  ;;  %v861_v38 = vsel %vm837_vm0, %v856_v36, 0.0 }
 0x1b8   :  { %862 = vadd.xlane.f32.xlu0 %v861_v38  ;;  %v7083_v38 = vld [vmem:[%s8036_s2] sm:$0xff] }
 0x1b9   :  { %v857_v39 = vmul.f32 %v854_v37, %v854_v37 }
 0x1bb   :  { %v864_v40 = vsel %vm844_vm1, %v857_v39, 0.0 }
 0x1bc   :  { %865 = vadd.xlane.f32.xlu1 %v864_v40 }
 0x241   :  { %v860_v43 = vpop.xlane.xlu1 %859 }
 0x242   :  { %v867_v44 = vmul.f32 0.03125, %v860_v43 }
 0x244   :  { %v870_v45 = vadd.f32 1e-06, %v867_v44 }
 0x245   :  { %v863_v46 = vpop.xlane.xlu0 %862 }
 0x246   :  { %6463 = vrsqrt.f32 %v870_v45  ;;  %v868_v48 = vmul.f32 0.03125, %v863_v46 }
 0x248   :  { %v871_v49 = vadd.f32 1e-06, %v868_v48 }
 0x249   :  { %v866_v51 = vpop.xlane.xlu1 %865 }
 0x24a   :  { %6465 = vrsqrt.f32 %v871_v49  ;;  %v869_v52 = vmul.f32 0.03125, %v866_v51 }
 0x24c   :  { %v872_v53 = vadd.f32 1e-06, %v869_v52 }
 0x24e   :  { %6467 = vrsqrt.f32 %v872_v53 }
 0x250   :  { %v6464_v56 = vpop.eup %6463 }
 0x251   :  { %v876_v58 = vmul.f32 %v6464_v56, %v852_v28 }
 0x253   :  { %v883_v62 = vmul.f32 %v882_v57, %v876_v58 }
 0x254   :  { %v6466_v60 = vpop.eup %6465 }
 0x255   :  { %v877_v61 = vmul.f32 %v6466_v60, %v853_v32  ;;  %v890_v3 = vadd.f32 %v889_v63, %v883_v62 }
 0x257   :  { %v884_v0 = vmul.f32 %v882_v57, %v877_v61 }
 0x258   :  { %v6468_v1 = vpop.eup %6467 }
 0x259   :  { %v878_v2 = vmul.f32 %v6468_v1, %v854_v37  ;;  %v891_v4 = vadd.f32 %v889_v63, %v884_v0 }
 0x25b   :  { %v885_v5 = vmul.f32 %v882_v57, %v878_v2  ;;  %v893_v6 = vpack.c.bf16 %v891_v4, %v890_v3 }
 0x25d   :  { %5783 = vmatprep.mubr.msk.bf16.mxu0 %vm837_vm0, %v893_v6  ;;  %v892_v7 = vadd.f32 %v889_v63, %v885_v5 }
 0x25f   :  { %v894_v9 = vpack.c.bf16 %v892_v7, %v892_v7 }
 0x261   :  { %5784 = vmatmul.mubr.msk.bf16.vlgmr.msra.gmra.mrb[16].mxu0 %vm837_vm0, %v894_v9 }
 0x262   :  { %5808 = vmatprep.mubr.msk.f32.mxu0 %vm6645_vm2, %v6646_v22 }
 0x334   :  { %v5785_v14 = vpop.f32.mrb[16].mxu0 }
 0x335   :  { %v7015_v15 = vadd.f32 %v5785_v14, %v902_v12  ;;  %v955_v16 = vpop.f32.mrb[17].mxu0 }
 0x336   :  { %v5786_v17 = vpop.f32.mrb[18].mxu0  ;;  %v7019_v19 = vadd.f32 %v955_v16, %v902_v12 }
 0x337   :  { %976 = vrot.lane.b32.xlu1 %v7015_v15, %s6643_s16  ;;  %v958_v18 = vpop.f32.mrb[19].mxu0 }
 0x338   :  { %v7021_v20 = vadd.f32 %v958_v18, %v902_v12 }
 0x33a   :  { %v7025_v21 = vpack.i.bf16 %v7021_v20, %v7019_v19 }
 0x33c   :  { %6229 = vrot.lane.b32.xlu1 %v7025_v21, %s6644_s17  ;;  %6224 = vrot.lane.b32.xlu0 %v7025_v21, %s6643_s16 }
 0x340   :  { %1219 = vrot.lane.b32.xlu1 %v7015_v15, %s6644_s17  ;;  %1209 = vrot.lane.b32.xlu0 %v7019_v19, %s6647_s18 }
 0x344   :  { %1211 = vrot.lane.b32.xlu1 %v7021_v20, %s6647_s18  ;;  %1213 = vrot.lane.b32.xlu0 %v7015_v15, %s6647_s18 }
 0x3a9   :  { %v977_v27 = vpop.permute.xlu1 %976 }
 0x3ae   :  { %v6225_v23 = vpop.permute.xlu0 %6224  ;;  %v6230_v30 = vpop.permute.xlu1 %6229 }
 0x3af   :  { %v6227_v25 = vunpack.i.h.bf16 %v6225_v23  ;;  %v6226_v26 = vunpack.i.l.bf16 %v6225_v23  ;;  %v6232_v31 = vunpack.i.h.bf16 %v6230_v30  ;;  %v6231_v32 = vunpack.i.l.bf16 %v6230_v30 }
 0x3b1   :  { %v6140_v29 = vpack.c.bf16 %v6227_v25, %v6226_v26  ;;  %v6147_v33 = vpack.c.bf16 %v6232_v31, %v6231_v32 }
 0x3b2   :  { %v1220_v34 = vpop.permute.xlu1 %1219  ;;  %v1210_v35 = vpop.permute.xlu0 %1209 }
 0x3b3   :  { %6142 = vmatpush3.bf16.xpose.msk.msra.mxu1 %vm7045_vm4, %v6140_v29 }
 0x3b4   :  { %5791 = vmatprep.subr.mxu1 %v6646_v22 }
 0x3b6   :  { %v1212_v36 = vpop.permute.xlu1 %1211  ;;  %v1214_v37 = vpop.permute.xlu0 %1213 }
 0x3bb   :  { %5792 = vmatpush3.xpose.msk.msra.mxu1 %vm978_vm3, %v977_v27 }
 0x3bc   :  { %6146 = vmatprep.subr.bf16.mxu1 %v6642_v13 }
 0x3be   :  { %5794 = vmatmul.mubr.msk.f32.vlgmr.msra.gmra.mrb[16].mxu1 %vm978_vm3, %v7019_v19 }
 0x3bf   :  { %6149 = vmatpush3.bf16.xpose.msk.msra.mxu1 %vm7045_vm4, %v6147_v33  ;;  %5796 = vmatprep.mubr.msk.f32.mxu1 %vm6645_vm2, %v6646_v22 }
 0x3c0   :  { %5821 = vmatprep.subr.mxu1 %v6646_v22 }
 0x3c2   :  { %5797 = vmatmul.mubr.msk.f32.gmra.mrb[18].mxu1 %vm978_vm3, %v7021_v20 }
 0x3c3   :  { %5799 = vmatprep.mubr.msk.f32.mxu1 %vm6645_vm2, %v6646_v22 }
 0x3c6   :  { %5800 = vmatmul.mubr.msk.f32.gmra.mrb[20].mxu1 %vm978_vm3, %v7015_v15 }
 0x3c7   :  { %5822 = vmatpush3.xpose.msk.msra.mxu1 %vm978_vm3, %v1220_v34  ;;  %5823 = vmatprep.mubr.msk.f32.mxu1 %vm6645_vm2, %v6646_v22 }
 0x3c8   :  { %6195 = vmatprep.subr.bf16.mxu1 %v6642_v13 }
 0x3ca   :  { %5824 = vmatmul.mubr.msk.f32.vlgmr.msra.gmra.mrb[22].mxu1 %vm978_vm3, %v1210_v35 }
 0x3cb   :  { %5826 = vmatprep.mubr.msk.f32.mxu1 %vm6645_vm2, %v6646_v22 }
 0x3ce   :  { %5827 = vmatmul.mubr.msk.f32.gmra.mrb[24].mxu1 %vm978_vm3, %v1212_v36 }
 0x3cf   :  { %5829 = vmatprep.mubr.msk.f32.mxu1 %vm6645_vm2, %v6646_v22 }
 0x3d2   :  { %5830 = vmatmul.mubr.msk.f32.gmra.mrb[26].mxu1 %vm978_vm3, %v1214_v37 }
 0x3d3   :  { %5844 = vmatprep.mubr.msk.f32.mxu1 %vm6645_vm2, %v6646_v22 }
 0x491   :  { %v1057_v39 = vpop.f32.mrb[16].mxu1 }
 0x492   :  { %v1058_v40 = vadd.f32 %v1057_v39, %v7083_v38  ;;  %v5795_v41 = vpop.f32.mrb[17].mxu1 }
 0x494   :  { %v1072_v43 = vsel %vm1071_vm5, %v1058_v40, -inf }
 0x495   :  { %v1062_v44 = vpop.f32.mrb[18].mxu1  ;;  %1073 = vmax.xlane.f32.xlu1 %v1072_v43 }
 0x496   :  { %v1063_v45 = vadd.f32 %v1062_v44, %v7089_v42  ;;  %v5798_v46 = vpop.f32.mrb[19].mxu1 }
 0x498   :  { %v1075_v48 = vsel %vm1071_vm5, %v1063_v45, -inf }
 0x499   :  { %v1067_v49 = vpop.f32.mrb[20].mxu1  ;;  %1076 = vmax.xlane.f32.xlu0 %v1075_v48 }
 0x49a   :  { %v1068_v51 = vadd.f32 %v1067_v49, %v7096_v47  ;;  %v5801_v52 = vpop.f32.mrb[21].mxu1 }
 0x49c   :  { %v1079_v53 = vsel %vm1078_vm6, %v1068_v51, -inf }
 0x49d   :  { %v1299_v56 = vpop.f32.mrb[22].mxu1  ;;  %1080 = vmax.xlane.f32.xlu0 %v1079_v53 }
 0x49e   :  { %v1300_v57 = vadd.f32 %v1299_v56, %v7083_v38  ;;  %v5825_v58 = vpop.f32.mrb[23].mxu1 }
 0x4a0   :  { %v1313_v60 = vsel %vm1071_vm5, %v1300_v57, -inf }
 0x4a1   :  { %v1304_v61 = vpop.f32.mrb[24].mxu1  ;;  %1314 = vmax.xlane.f32.xlu0 %v1313_v60 }
 0x4a2   :  { %v1305_v62 = vadd.f32 %v1304_v61, %v7089_v42  ;;  %v5828_v63 = vpop.f32.mrb[25].mxu1 }
 0x4a4   :  { %v1316_v0 = vsel %vm1071_vm5, %v1305_v62, -inf }
 0x4a5   :  { %v1309_v1 = vpop.f32.mrb[26].mxu1  ;;  %1317 = vmax.xlane.f32.xlu1 %v1316_v0 }
 0x4a6   :  { %v1310_v2 = vadd.f32 %v1309_v1, %v7096_v47  ;;  %v5831_v3 = vpop.f32.mrb[27].mxu1 }
 0x4a8   :  { %v1319_v4 = vsel %vm1078_vm6, %v1310_v2, -inf }
 0x4a9   :  { %1320 = vmax.xlane.f32.xlu0 %v1319_v4 }
 0x4b6   :  { %6234 = vrot.lane.b32.xlu1 %v7025_v21, %s6648_s24 }
 0x522   :  { %v1074_v5 = vpop.xlane.xlu1 %1073 }
 0x523   :  { %v1082_v6 = vsub.f32 %v1058_v40, %v1074_v5 }
 0x525   :  { %v1085_v7 = vmul.f32 1.442695, %v1082_v6 }
 0x526   :  { %v1077_v9 = vpop.xlane.xlu0 %1076 }
 0x527   :  { %6469 = vpow2.f32 %v1085_v7  ;;  %v1083_v12 = vsub.f32 %v1063_v45, %v1077_v9 }
 0x529   :  { %v1087_v14 = vmul.f32 1.442695, %v1083_v12 }
 0x52a   :  { %v1081_v16 = vpop.xlane.xlu0 %1080 }
 0x52b   :  { %6471 = vpow2.f32 %v1087_v14  ;;  %v1084_v17 = vsub.f32 %v1068_v51, %v1081_v16 }
 0x52d   :  { %v1089_v18 = vmul.f32 1.442695, %v1084_v17 }
 0x52e   :  { %v1315_v23 = vpop.xlane.xlu0 %1314 }
 0x52f   :  { %6473 = vpow2.f32 %v1089_v18  ;;  %v1322_v25 = vsub.f32 %v1300_v57, %v1315_v23 }
 0x531   :  { %v7109_v26 = vpop.eup %6469  ;;  %v1325_v27 = vmul.f32 1.442695, %v1322_v25 }
 0x532   :  { %v1318_v29 = vpop.xlane.xlu1 %1317  ;;  %v1091_v30 = vsel %vm1071_vm5, %v7109_v26, 0.0 }
 0x533   :  { %6475 = vpow2.f32 %v1325_v27  ;;  %v1323_v31 = vsub.f32 %v1305_v62, %v1318_v29  ;;  %1092 = vadd.xlane.f32.xlu1 %v1091_v30  ;;  %v1206_v27 = vld [vmem:[%s8039_s5] sm:$0xf]  ;;  %v1445_v30 = vld [vmem:[%s8039_s5 + $0x4] sm:$0xf] }
 0x534   :  { %v1513_v29 = vsel %vm1454_vm8, %v1206_v27, 0 }
 0x535   :  { %v7113_v32 = vpop.eup %6471  ;;  %v1327_v33 = vmul.f32 1.442695, %v1323_v31  ;;  %v1456_v31 = vsel %vm1454_vm8, %v1445_v30, 0 }
 0x536   :  { %v1321_v34 = vpop.xlane.xlu0 %1320  ;;  %v6235_v35 = vpop.permute.xlu1 %6234  ;;  %v1094_v36 = vsel %vm1071_vm5, %v7113_v32, 0.0 }
 0x537   :  { %6477 = vpow2.f32 %v1327_v33  ;;  %v1324_v37 = vsub.f32 %v1310_v2, %v1321_v34  ;;  %v6237_v39 = vunpack.i.h.bf16 %v6235_v35  ;;  %v6236_v40 = vunpack.i.l.bf16 %v6235_v35  ;;  %1095 = vadd.xlane.f32.xlu0 %v1094_v36 }
 0x539   :  { %v7117_v41 = vpop.eup %6473  ;;  %v1329_v43 = vmul.f32 1.442695, %v1324_v37  ;;  %v6144_v44 = vpack.c.bf16 %v6237_v39, %v6236_v40 }
 0x53a   :  { %v1097_v45 = vsel %vm1078_vm6, %v7117_v41, 0.0 }
 0x53b   :  { %6479 = vpow2.f32 %v1329_v43  ;;  %1098 = vadd.xlane.f32.xlu1 %v1097_v45  ;;  %6145 = vmatpush3.bf16.msra.mxu0 %v6144_v44 }
 0x53c   :  { %5806 = vmatprep.subr.mxu0 %v6646_v22 }
 0x53d   :  { %v7122_v46 = vpop.eup %6475 }
 0x53e   :  { %v1331_v48 = vsel %vm1071_vm5, %v7122_v46, 0.0 }
 0x53f   :  { %1332 = vadd.xlane.f32.xlu0 %v1331_v48 }
 0x541   :  { %v7126_v49 = vpop.eup %6477 }
 0x542   :  { %v1334_v51 = vsel %vm1071_vm5, %v7126_v49, 0.0 }
 0x543   :  { %1335 = vadd.xlane.f32.xlu1 %v1334_v51 }
 0x545   :  { %v6480_v52 = vpop.eup %6479 }
 0x546   :  { %v1337_v53 = vsel %vm1078_vm6, %v6480_v52, 0.0 }
 0x547   :  { %1338 = vadd.xlane.f32.xlu0 %v1337_v53 }
 0x554   :  { %6239 = vrot.lane.b32.xlu1 %v7025_v21, %s6649_s0 }
 0x558   :  { %1350 = vrot.lane.b32.xlu1 %v7015_v15, %s6649_s0 }
 0x55c   :  { %6244 = vrot.lane.b32.xlu1 %v7025_v21, %s6650_s25 }
 0x55d   :  { %1110 = vrot.lane.b32.xlu0 %v7015_v15, %s6648_s24 }
 0x560   :  { %1563 = vrot.lane.b32.xlu1 %v7019_v19, %s6651_s26 }
 0x561   :  { %1573 = vrot.lane.b32.xlu0 %v7015_v15, %s6650_s25 }
 0x564   :  { %1567 = vrot.lane.b32.xlu1 %v7015_v15, %s6651_s26 }
 0x565   :  { %1565 = vrot.lane.b32.xlu0 %v7021_v20, %s6651_s26 }
 0x5c0   :  { %v1093_v56 = vpop.xlane.xlu1 %1092 }
 0x5c1   :  { %6481 = vrcp.f32 %v1093_v56 }
 0x5c4   :  { %v1096_v57 = vpop.xlane.xlu0 %1095 }
 0x5c5   :  { %6483 = vrcp.f32 %v1096_v57 }
 0x5c8   :  { %v1099_v58 = vpop.xlane.xlu1 %1098 }
 0x5c9   :  { %6485 = vrcp.f32 %v1099_v58 }
 0x5cb   :  { %v6482_v0 = vpop.eup %6481 }
 0x5cc   :  { %v1333_v60 = vpop.xlane.xlu0 %1332  ;;  %v1103_v5 = vmul.f32 %v6482_v0, %v7109_v26 }
 0x5cf   :  { %v6484_v6 = vpop.eup %6483 }
 0x5d0   :  { %v1336_v61 = vpop.xlane.xlu1 %1335  ;;  %v1104_v9 = vmul.f32 %v6484_v6, %v7113_v32 }
 0x5d3   :  { %v6486_v12 = vpop.eup %6485 }
 0x5d4   :  { %v1339_v62 = vpop.xlane.xlu0 %1338  ;;  %v6240_v63 = vpop.permute.xlu1 %6239  ;;  %v1105_v17 = vmul.f32 %v6486_v12, %v7117_v41 }
 0x5d5   :  { %6487 = vrcp.f32 %v1339_v62  ;;  %v6242_v1 = vunpack.i.h.bf16 %v6240_v63  ;;  %v6241_v2 = vunpack.i.l.bf16 %v6240_v63 }
 0x5d6   :  { %6489 = vrcp.f32 %v1333_v60 }
 0x5d7   :  { %v6151_v3 = vpack.c.bf16 %v6242_v1, %v6241_v2  ;;  %6491 = vrcp.f32 %v1336_v61 }
 0x5d8   :  { %v1111_v4 = vpop.permute.xlu0 %1110  ;;  %v1351_v7 = vpop.permute.xlu1 %1350 }
 0x5d9   :  { %5807 = vmatpush3.msk.msra.mxu0 %vm1123_vm7, %v1111_v4  ;;  %6197 = vmatpush3.bf16.msra.mxu1 %v6151_v3 }
 0x5da   :  { %5809 = vmatmul.mubr.msk.f32.vlgmr.msra.gmra.mrb[20].mxu0 %vm1071_vm5, %v1103_v5  ;;  %6150 = vmatprep.subr.bf16.mxu0 %v6642_v13 }
 0x5db   :  { %6152 = vmatpush3.bf16.msra.mxu0 %v6151_v3  ;;  %6196 = vmatprep.subr.mxu1 %v6646_v22 }
 0x5dc   :  { %5811 = vmatprep.mubr.msk.f32.mxu0 %vm6645_vm2, %v6646_v22  ;;  %5836 = vmatprep.subr.mxu0 %v6646_v22  ;;  %v6245_v44 = vpop.permute.xlu1 %6244  ;;  %v1574_v58 = vpop.permute.xlu0 %1573 }
 0x5dd   :  { %6198 = vmatpush3.msk.msra.mxu1 %vm1123_vm7, %v1351_v7  ;;  %v6247_v48 = vunpack.i.h.bf16 %v6245_v44 }
 0x5de   :  { %5812 = vmatmul.mubr.msk.f32.gmra.mrb[22].mxu0 %vm1071_vm5, %v1104_v9  ;;  %6199 = vmatprep.subr.msk.bf16.mxu1 %vm1454_vm8, %v1445_v30 }
 0x5df   :  { %v6488_v14 = vpop.eup %6487  ;;  %5837 = vmatpush3.msk.msra.mxu0 %vm1123_vm7, %v1351_v7  ;;  %5814 = vmatprep.mubr.msk.f32.mxu0 %vm6645_vm2, %v6646_v22 }
 0x5e0   :  { %v1345_v16 = vmul.f32 %v6488_v14, %v6480_v52  ;;  %v6490_v18 = vpop.eup %6489  ;;  %6200 = vmatprep.subr.msk.bf16.mxu0 %vm1454_vm8, %v1206_v27  ;;  %v1564_v60 = vpop.permute.xlu1 %1563 }
 0x5e1   :  { %v1343_v23 = vmul.f32 %v6490_v18, %v7122_v46  ;;  %v6492_v25 = vpop.eup %6491  ;;  %v1566_v61 = vpop.permute.xlu0 %1565 }
 0x5e2   :  { %5815 = vmatmul.mubr.msk.f32.gmra.mrb[24].mxu0 %vm1071_vm5, %v1105_v17  ;;  %5845 = vmatmul.mubr.msk.f32.vlgmr.msra.gmra.mrb[28].mxu1 %vm1071_vm5, %v1345_v16  ;;  %v1344_v26 = vmul.f32 %v6492_v25, %v7126_v49  ;;  %v6246_v49 = vunpack.i.l.bf16 %v6245_v44 }
 0x5e3   :  { %5838 = vmatprep.mubr.msk.f32.mxu0 %vm6645_vm2, %v6646_v22  ;;  %5848 = vmatpush3.bf16.msra.mxu1 %v1456_v31 }
 0x5e4   :  { %6153 = vmatprep.subr.bf16.mxu1 %v6642_v13  ;;  %v6154_v57 = vpack.c.bf16 %v6247_v48, %v6246_v49  ;;  %v1568_v62 = vpop.permute.xlu1 %1567 }
 0x5e6   :  { %5839 = vmatmul.mubr.msk.f32.vlgmr.msra.gmra.mrb[26].mxu0 %vm1071_vm5, %v1343_v23 }
 0x5e7   :  { %5841 = vmatprep.mubr.msk.f32.mxu0 %vm6645_vm2, %v6646_v22  ;;  %5854 = vmatpush3.bf16.msra.mxu0 %v1513_v29 }
 0x5e8   :  { %6157 = vmatprep.subr.bf16.mxu0 %v6642_v13 }
 0x5ea   :  { %5842 = vmatmul.mubr.msk.f32.gmra.mrb[28].mxu0 %vm1071_vm5, %v1344_v26 }
 0x6ad   :  { %v1192_v32 = vpop.f32.mrb[20].mxu0 }
 0x6ae   :  { %v5810_v33 = vpop.f32.mrb[21].mxu0 }
 0x6b1   :  { %v1197_v34 = vpop.f32.mrb[22].mxu0 }
 0x6b2   :  { %v1207_v35 = vpack.c.bf16 %v1197_v34, %v1192_v32  ;;  %v5813_v36 = vpop.f32.mrb[23].mxu0 }
 0x6b4   :  { %5855 = vmatprep.mubr.msk.bf16.mxu0 %vm978_vm3, %v1207_v35 }
 0x6b5   :  { %v1202_v37 = vpop.f32.mrb[24].mxu0  ;;  %v1441_v39 = vpop.f32.mrb[28].mxu1 }
 0x6b6   :  { %v1208_v40 = vpack.c.bf16 %v1202_v37, %v1202_v37  ;;  %v5816_v41 = vpop.f32.mrb[25].mxu0  ;;  %v5846_v43 = vpop.f32.mrb[29].mxu1  ;;  %v1447_v56 = vpack.c.bf16 %v1441_v39, %v1441_v39 }
 0x6b8   :  { %5856 = vmatmul.mubr.msk.bf16.vlgmr.msra.gmra.mrb[32].mxu0 %vm978_vm3, %v1208_v40 }
 0x6b9   :  { %v1431_v45 = vpop.f32.mrb[26].mxu0  ;;  %5880 = vmatprep.mubr.msk.f32.mxu0 %vm6645_vm2, %v6646_v22 }
 0x6ba   :  { %v5840_v46 = vpop.f32.mrb[27].mxu0 }
 0x6bd   :  { %v1436_v51 = vpop.f32.mrb[28].mxu0 }
 0x6be   :  { %v1446_v52 = vpack.c.bf16 %v1436_v51, %v1431_v45  ;;  %v5843_v53 = vpop.f32.mrb[29].mxu0 }
 0x6c0   :  { %5849 = vmatprep.mubr.msk.bf16.mxu1 %vm978_vm3, %v1446_v52 }
 0x6c1   :  { %5850 = vmatmul.mubr.msk.bf16.vlgmr.msra.gmra.mrb[32].mxu1 %vm978_vm3, %v1447_v56 }
 0x6c2   :  { %6156 = vmatpush3.bf16.xpose.msk.msra.mxu1 %vm7045_vm4, %v6154_v57  ;;  %5865 = vmatprep.mubr.msk.f32.mxu1 %vm6645_vm2, %v6646_v22 }
 0x6c3   :  { %5863 = vmatprep.subr.mxu1 %v6646_v22 }
 0x6ca   :  { %5864 = vmatpush3.xpose.msk.msra.mxu1 %vm978_vm3, %v1574_v58 }
 0x6cd   :  { %5866 = vmatmul.mubr.msk.f32.vlgmr.msra.gmra.mrb[30].mxu1 %vm978_vm3, %v1564_v60 }
 0x6ce   :  { %5868 = vmatprep.mubr.msk.f32.mxu1 %vm6645_vm2, %v6646_v22 }
 0x6d1   :  { %5869 = vmatmul.mubr.msk.f32.gmra.mrb[36].mxu1 %vm978_vm3, %v1566_v61 }
 0x6d2   :  { %5871 = vmatprep.mubr.msk.f32.mxu1 %vm6645_vm2, %v6646_v22 }
 0x6d5   :  { %5872 = vmatmul.mubr.msk.f32.gmra.mrb[38].mxu1 %vm978_vm3, %v1568_v62 }
 0x78b   :  { %v5857_v63 = vpop.f32.mrb[32].mxu0 }
 0x78c   :  { %v1549_v0 = vpop.f32.mrb[33].mxu0 }
 0x78d   :  { %v5858_v1 = vpop.f32.mrb[34].mxu0 }
 0x78e   :  { %v1552_v2 = vpop.f32.mrb[35].mxu0 }
 0x794   :  { %v5851_v3 = vpop.f32.mrb[32].mxu1 }
 0x795   :  { %v7203_v4 = vadd.f32 %v5857_v63, %v5851_v3  ;;  %v1492_v5 = vpop.f32.mrb[33].mxu1 }
 0x796   :  { %v7205_v6 = vadd.f32 %v1549_v0, %v1492_v5  ;;  %v5852_v7 = vpop.f32.mrb[34].mxu1 }
 0x797   :  { %v1495_v9 = vpop.f32.mrb[35].mxu1 }
 0x798   :  { %v7207_v12 = vadd.f32 %v1552_v2, %v1495_v9 }
 0x7a0   :  { %v1653_v14 = vpop.f32.mrb[30].mxu1 }
 0x7a1   :  { %v1654_v16 = vadd.f32 %v1653_v14, %v7083_v38  ;;  %v5867_v17 = vpop.f32.mrb[31].mxu1 }
 0x7a3   :  { %v1667_v18 = vsel %vm1071_vm5, %v1654_v16, -inf }
 0x7a4   :  { %1668 = vmax.xlane.f32.xlu0 %v1667_v18  ;;  %v1658_v23 = vpop.f32.mrb[36].mxu1 }
 0x7a5   :  { %v1659_v25 = vadd.f32 %v1658_v23, %v7089_v42  ;;  %v5870_v26 = vpop.f32.mrb[37].mxu1  ;;  %v1799_v23 = vld [vmem:[%s8039_s5 + $0x8] sm:$0xf] }
 0x7a6   :  { %6201 = vmatprep.subr.msk.bf16.mxu1 %vm1454_vm8, %v1799_v23 }
 0x7a7   :  { %v1670_v27 = vsel %vm1071_vm5, %v1659_v25, -inf }
 0x7a8   :  { %1671 = vmax.xlane.f32.xlu1 %v1670_v27  ;;  %v1663_v29 = vpop.f32.mrb[38].mxu1 }
 0x7a9   :  { %v1664_v30 = vadd.f32 %v1663_v29, %v7096_v47  ;;  %v5873_v31 = vpop.f32.mrb[39].mxu1 }
 0x7ab   :  { %v1673_v32 = vsel %vm1078_vm6, %v1664_v30, -inf }
 0x7ac   :  { %1674 = vmax.xlane.f32.xlu0 %v1673_v32 }
 0x7b9   :  { %1704 = vrot.lane.b32.xlu1 %v7015_v15, %s6652_s30 }
 0x7bd   :  { %6254 = vrot.lane.b32.xlu1 %v7025_v21, %s6653_s14 }
 0x7c1   :  { %1872 = vrot.lane.b32.xlu1 %v7015_v15, %s6653_s14 }
 0x831   :  { %v1669_v33 = vpop.xlane.xlu0 %1668 }
 0x832   :  { %v1676_v34 = vsub.f32 %v1654_v16, %v1669_v33 }
 0x834   :  { %v1679_v35 = vmul.f32 1.442695, %v1676_v34 }
 0x835   :  { %v1672_v36 = vpop.xlane.xlu1 %1671 }
 0x836   :  { %6493 = vpow2.f32 %v1679_v35  ;;  %v1677_v37 = vsub.f32 %v1659_v25, %v1672_v36  ;;  %v1809_v25 = vsel %vm1454_vm8, %v1799_v23, 0 }
 0x837   :  { %5890 = vmatpush3.bf16.msra.mxu1 %v1809_v25 }
 0x838   :  { %v1681_v39 = vmul.f32 1.442695, %v1677_v37  ;;  %6164 = vmatprep.subr.bf16.mxu1 %v6642_v13 }
 0x839   :  { %v1675_v40 = vpop.xlane.xlu0 %1674  ;;  %v1705_v52 = vpop.permute.xlu1 %1704 }
 0x83a   :  { %6495 = vpow2.f32 %v1681_v39  ;;  %v1678_v41 = vsub.f32 %v1664_v30, %v1675_v40 }
 0x83c   :  { %v1683_v43 = vmul.f32 1.442695, %v1678_v41 }
 0x83d   :  { %v6255_v53 = vpop.permute.xlu1 %6254 }
 0x83e   :  { %6497 = vpow2.f32 %v1683_v43  ;;  %v6257_v2 = vunpack.i.h.bf16 %v6255_v53  ;;  %v6256_v3 = vunpack.i.l.bf16 %v6255_v53 }
 0x840   :  { %v6494_v44 = vpop.eup %6493  ;;  %v6161_v9 = vpack.c.bf16 %v6257_v2, %v6256_v3 }
 0x841   :  { %v1685_v45 = vsel %vm1071_vm5, %v6494_v44, 0.0  ;;  %v1873_v57 = vpop.permute.xlu1 %1872 }
 0x842   :  { %1686 = vadd.xlane.f32.xlu0 %v1685_v45 }
 0x844   :  { %v6496_v46 = vpop.eup %6495 }
 0x845   :  { %v1688_v48 = vsel %vm1071_vm5, %v6496_v46, 0.0 }
 0x846   :  { %1689 = vadd.xlane.f32.xlu0 %v1688_v48 }
 0x848   :  { %v6498_v49 = vpop.eup %6497 }
 0x849   :  { %v1691_v51 = vsel %vm1078_vm6, %v6498_v49, 0.0 }
 0x84a   :  { %1692 = vadd.xlane.f32.xlu1 %v1691_v51 }
 0x85b   :  { %1864 = vrot.lane.b32.xlu1 %v7021_v20, %s6654_s15 }
 0x85c   :  { %6249 = vrot.lane.b32.xlu0 %v7025_v21, %s6652_s30 }
 0x860   :  { %1862 = vrot.lane.b32.xlu0 %v7019_v19, %s6654_s15 }
 0x864   :  { %1866 = vrot.lane.b32.xlu0 %v7015_v15, %s6654_s15 }
 0x8cf   :  { %v1687_v56 = vpop.xlane.xlu0 %1686 }
 0x8d0   :  { %6499 = vrcp.f32 %v1687_v56 }
 0x8d3   :  { %v1690_v58 = vpop.xlane.xlu0 %1689 }
 0x8d4   :  { %6501 = vrcp.f32 %v1690_v58 }
 0x8d7   :  { %v1693_v60 = vpop.xlane.xlu1 %1692  ;;  %v6250_v61 = vpop.permute.xlu0 %6249 }
 0x8d8   :  { %v6252_v62 = vunpack.i.h.bf16 %v6250_v61  ;;  %v6251_v20 = vunpack.i.l.bf16 %v6250_v61  ;;  %6503 = vrcp.f32 %v1693_v60 }
 0x8da   :  { %v6158_v63 = vpack.c.bf16 %v6252_v62, %v6251_v20  ;;  %v6500_v0 = vpop.eup %6499 }
 0x8db   :  { %v1697_v19 = vmul.f32 %v6500_v0, %v6494_v44  ;;  %v1863_v16 = vpop.permute.xlu0 %1862  ;;  %v1865_v17 = vpop.permute.xlu1 %1864 }
 0x8dc   :  { %6159 = vmatpush3.bf16.msra.mxu0 %v6158_v63 }
 0x8dd   :  { %5878 = vmatprep.subr.mxu0 %v6646_v22 }
 0x8de   :  { %v6502_v1 = vpop.eup %6501 }
 0x8df   :  { %v1698_v5 = vmul.f32 %v6502_v1, %v6496_v46  ;;  %v1867_v18 = vpop.permute.xlu0 %1866 }
 0x8e0   :  { %5879 = vmatpush3.msk.msra.mxu0 %vm1123_vm7, %v1705_v52 }
 0x8e1   :  { %5881 = vmatmul.mubr.msk.f32.vlgmr.msra.gmra.mrb[30].mxu0 %vm1071_vm5, %v1697_v19  ;;  %6160 = vmatprep.subr.bf16.mxu0 %v6642_v13 }
 0x8e2   :  { %5883 = vmatprep.mubr.msk.f32.mxu0 %vm6645_vm2, %v6646_v22  ;;  %v6504_v7 = vpop.eup %6503 }
 0x8e3   :  { %v1699_v14 = vmul.f32 %v6504_v7, %v6498_v49 }
 0x8e5   :  { %5884 = vmatmul.mubr.msk.f32.gmra.mrb[36].mxu0 %vm1071_vm5, %v1698_v5 }
 0x8e6   :  { %5886 = vmatprep.mubr.msk.f32.mxu0 %vm6645_vm2, %v6646_v22 }
 0x8e7   :  { %6163 = vmatpush3.bf16.xpose.msk.msra.mxu0 %vm7045_vm4, %v6161_v9 }
 0x8e8   :  { %5899 = vmatprep.subr.mxu0 %v6646_v22 }
 0x8e9   :  { %5887 = vmatmul.mubr.msk.f32.gmra.mrb[38].mxu0 %vm1071_vm5, %v1699_v14 }
 0x8ea   :  { %5901 = vmatprep.mubr.msk.f32.mxu0 %vm6645_vm2, %v6646_v22 }
 0x8ef   :  { %5900 = vmatpush3.xpose.msk.msra.mxu0 %vm978_vm3, %v1873_v57 }
 0x8f2   :  { %5902 = vmatmul.mubr.msk.f32.vlgmr.msra.gmra.mrb[40].mxu0 %vm978_vm3, %v1863_v16 }
 0x8f3   :  { %5904 = vmatprep.mubr.msk.f32.mxu0 %vm6645_vm2, %v6646_v22 }
 0x8f6   :  { %5905 = vmatmul.mubr.msk.f32.gmra.mrb[42].mxu0 %vm978_vm3, %v1865_v17 }
 0x8f7   :  { %5907 = vmatprep.mubr.msk.f32.mxu0 %vm6645_vm2, %v6646_v22 }
 0x8fa   :  { %5908 = vmatmul.mubr.msk.f32.gmra.mrb[44].mxu0 %vm978_vm3, %v1867_v18 }
 0x9b4   :  { %v1785_v26 = vpop.f32.mrb[30].mxu0 }
 0x9b5   :  { %v5882_v27 = vpop.f32.mrb[31].mxu0 }
 0x9b8   :  { %v1790_v29 = vpop.f32.mrb[36].mxu0 }
 0x9b9   :  { %v1800_v30 = vpack.c.bf16 %v1790_v29, %v1785_v26  ;;  %v5885_v31 = vpop.f32.mrb[37].mxu0 }
 0x9bb   :  { %5891 = vmatprep.mubr.msk.bf16.mxu1 %vm978_vm3, %v1800_v30  ;;  %v2098_v30 = vld [vmem:[%s8039_s5 + $0xc] sm:$0xf] }
 0x9bc   :  { %v1795_v32 = vpop.f32.mrb[38].mxu0  ;;  %6202 = vmatprep.subr.msk.bf16.mxu0 %vm1454_vm8, %v2098_v30  ;;  %v2108_v31 = vsel %vm1454_vm8, %v2098_v30, 0  ;;  %v7341_v30 = vld [vmem:[%s8042_s8] sm:$0xff] }
 0x9bd   :  { %v1801_v33 = vpack.c.bf16 %v1795_v32, %v1795_v32  ;;  %v5888_v34 = vpop.f32.mrb[39].mxu0  ;;  %5926 = vmatpush3.bf16.msra.mxu0 %v2108_v31 }
 0x9bf   :  { %5892 = vmatmul.mubr.msk.bf16.vlgmr.msra.gmra.mrb[40].mxu1 %vm978_vm3, %v1801_v33 }
 0x9c0   :  { %5916 = vmatprep.mubr.msk.f32.mxu1 %vm6645_vm2, %v6646_v22 }
 0x9c5   :  { %v1952_v35 = vpop.f32.mrb[40].mxu0 }
 0x9c6   :  { %v1953_v36 = vadd.f32 %v1952_v35, %v7083_v38  ;;  %v5903_v37 = vpop.f32.mrb[41].mxu0 }
 0x9c8   :  { %v1966_v39 = vsel %vm1071_vm5, %v1953_v36, -inf }
 0x9c9   :  { %1967 = vmax.xlane.f32.xlu1 %v1966_v39  ;;  %v1957_v40 = vpop.f32.mrb[42].mxu0 }
 0x9ca   :  { %v1958_v41 = vadd.f32 %v1957_v40, %v7089_v42  ;;  %v5906_v43 = vpop.f32.mrb[43].mxu0 }
 0x9cc   :  { %v1969_v44 = vsel %vm1071_vm5, %v1958_v41, -inf }
 0x9cd   :  { %1970 = vmax.xlane.f32.xlu0 %v1969_v44  ;;  %v1962_v45 = vpop.f32.mrb[44].mxu0 }
 0x9ce   :  { %v1963_v46 = vadd.f32 %v1962_v45, %v7096_v47  ;;  %v5909_v48 = vpop.f32.mrb[45].mxu0 }
 0x9d0   :  { %v1972_v49 = vsel %vm1078_vm6, %v1963_v46, -inf }
 0x9d1   :  { %1973 = vmax.xlane.f32.xlu0 %v1972_v49 }
 0xa56   :  { %v1968_v51 = vpop.xlane.xlu1 %1967 }
 0xa57   :  { %v1975_v38 = vsub.f32 %v1953_v36, %v1968_v51 }
 0xa59   :  { %v1978_v52 = vmul.f32 1.442695, %v1975_v38 }
 0xa5a   :  { %v1971_v53 = vpop.xlane.xlu0 %1970 }
 0xa5b   :  { %6505 = vpow2.f32 %v1978_v52  ;;  %v1976_v56 = vsub.f32 %v1958_v41, %v1971_v53  ;;  %v7298_v41 = vsub.s32 3, %v6989_v50 }
 0xa5d   :  { %v1980_v57 = vmul.f32 1.442695, %v1976_v56 }
 0xa5e   :  { %v1974_v58 = vpop.xlane.xlu0 %1973 }
 0xa5f   :  { %6507 = vpow2.f32 %v1980_v57  ;;  %v1977_v42 = vsub.f32 %v1963_v46, %v1974_v58  ;;  %v2167_v46 = vrot.slane %v6997_v55, %v7298_v41 }
 0xa61   :  { %v1982_v60 = vmul.f32 1.442695, %v1977_v42 }
 0xa63   :  { %6509 = vpow2.f32 %v1982_v60 }
 0xa65   :  { %v6506_v61 = vpop.eup %6505 }
 0xa66   :  { %v1984_v62 = vsel %vm1071_vm5, %v6506_v61, 0.0 }
 0xa67   :  { %1985 = vadd.xlane.f32.xlu0 %v1984_v62 }
 0xa69   :  { %v6508_v47 = vpop.eup %6507 }
 0xa6a   :  { %v1987_v20 = vsel %vm1071_vm5, %v6508_v47, 0.0 }
 0xa6b   :  { %1988 = vadd.xlane.f32.xlu1 %v1987_v20 }
 0xa6d   :  { %v6510_v63 = vpop.eup %6509 }
 0xa6e   :  { %v1990_v0 = vsel %vm1078_vm6, %v6510_v63, 0.0 }
 0xa6f   :  { %1991 = vadd.xlane.f32.xlu0 %v1990_v0 }
 0xa7c   :  { %6259 = vrot.lane.b32.xlu1 %v7025_v21, %s6655_s20 }
 0xa85   :  { %2003 = vrot.lane.b32.xlu0 %v7015_v15, %s6655_s20 }
 0xa92   :  { %v5893_v19 = vpop.f32.mrb[40].mxu1 }
 0xa93   :  { %v1861_v1 = vadd.f32 %v5893_v19, %v7203_v4  ;;  %v1845_v2 = vpop.f32.mrb[41].mxu1 }
 0xa94   :  { %v1859_v3 = vadd.f32 %v1845_v2, %v7205_v6  ;;  %v5894_v5 = vpop.f32.mrb[42].mxu1 }
 0xa95   :  { %v1848_v7 = vpop.f32.mrb[43].mxu1 }
 0xa96   :  { %v1860_v9 = vadd.f32 %v1848_v7, %v7207_v12 }
 0xaf4   :  { %v1986_v14 = vpop.xlane.xlu0 %1985 }
 0xaf5   :  { %6511 = vrcp.f32 %v1986_v14  ;;  %v6377_v14 = vld [vmem:[%s8040_s6] sm:$0xff]  }
 0xaf8   :  { %v1989_v16 = vpop.xlane.xlu1 %1988 }
 0xaf9   :  { %6513 = vrcp.f32 %v1989_v16  ;;  %v6378_v16 = vld [vmem:[%s8040_s6 + $0x8] sm:$0xff]  }
 0xafc   :  { %v6260_v17 = vpop.permute.xlu1 %6259  ;;  %v1992_v18 = vpop.xlane.xlu0 %1991 }
 0xafd   :  { %v6262_v21 = vunpack.i.h.bf16 %v6260_v17  ;;  %v6261_v23 = vunpack.i.l.bf16 %v6260_v17  ;;  %6515 = vrcp.f32 %v1992_v18  ;;  %v6379_v17 = vld [vmem:[%s8041_s7] sm:$0xff]   ;;  %v6380_v18 = vld [vmem:[%s8041_s7 + $0x8] sm:$0xff]  }
 0xafe   :  { %5939 = vmatprep.subr.bf16.mxu0 %v6379_v17 }
 0xaff   :  { %v6165_v25 = vpack.c.bf16 %v6262_v21, %v6261_v23  ;;  %v6512_v15 = vpop.eup %6511 }
 0xb00   :  { %v1996_v4 = vmul.f32 %v6512_v15, %v6506_v61  ;;  %v2004_v6 = vpop.permute.xlu0 %2003 }
 0xb01   :  { %6166 = vmatpush3.bf16.msra.mxu1 %v6165_v25 }
 0xb02   :  { %5914 = vmatprep.subr.mxu1 %v6646_v22 }
 0xb03   :  { %v6514_v26 = vpop.eup %6513 }
 0xb04   :  { %v1997_v12 = vmul.f32 %v6514_v26, %v6508_v47 }
 0xb05   :  { %5915 = vmatpush3.msk.msra.mxu1 %vm1123_vm7, %v2004_v6 }
 0xb06   :  { %5917 = vmatmul.mubr.msk.f32.vlgmr.msra.gmra.mrb[44].mxu1 %vm1071_vm5, %v1996_v4  ;;  %5931 = vmatprep.subr.bf16.mxu1 %v6377_v14 }
 0xb07   :  { %5919 = vmatprep.mubr.msk.f32.mxu1 %vm6645_vm2, %v6646_v22  ;;  %v6516_v27 = vpop.eup %6515  ;;  %5932 = vmatpush3.bf16.msra.mxu1 %v6377_v14 }
 0xb08   :  { %v1998_v29 = vmul.f32 %v6516_v27, %v6510_v63  ;;  %5933 = vmatprep.subr.bf16.mxu1 %v6378_v16 }
 0xb0a   :  { %5920 = vmatmul.mubr.msk.f32.gmra.mrb[46].mxu1 %vm1071_vm5, %v1997_v12 }
 0xb0b   :  { %5922 = vmatprep.mubr.msk.f32.mxu1 %vm6645_vm2, %v6646_v22  ;;  %5934 = vmatpush3.bf16.msra.mxu1 %v6378_v16 }
 0xb0e   :  { %5923 = vmatmul.mubr.msk.f32.gmra.mrb[48].mxu1 %vm1071_vm5, %v1998_v29  ;;  %v7336_v29 = vsub.s32 4, %v6989_v50 }
 0xb10   :  { %v2213_v31 = vrot.slane %v7341_v30, %v7336_v29 }
 0xbd9   :  { %v2084_v32 = vpop.f32.mrb[44].mxu1 }
 0xbda   :  { %v5918_v33 = vpop.f32.mrb[45].mxu1 }
 0xbdd   :  { %v2089_v34 = vpop.f32.mrb[46].mxu1 }
 0xbde   :  { %v2099_v35 = vpack.c.bf16 %v2089_v34, %v2084_v32  ;;  %v5921_v36 = vpop.f32.mrb[47].mxu1  ;;  %v7346_v32 = vsub.s32 5, %v6989_v50 }
 0xbe0   :  { %5927 = vmatprep.mubr.msk.bf16.mxu0 %vm978_vm3, %v2099_v35 }
 0xbe1   :  { %v2094_v37 = vpop.f32.mrb[48].mxu1 }
 0xbe2   :  { %v2100_v39 = vpack.c.bf16 %v2094_v37, %v2094_v37  ;;  %v5924_v40 = vpop.f32.mrb[49].mxu1 }
 0xbe4   :  { %5928 = vmatmul.mubr.msk.bf16.vlgmr.msra.gmra.mrb[48].mxu0 %vm978_vm3, %v2100_v39  ;;  %v2220_v39 = vrot.slane %v7341_v30, %v7346_v32 }
 0xbe5   :  { %5940 = vmatpush3.bf16.msra.mxu0 %v6379_v17 }
 0xbe6   :  { %5941 = vmatprep.subr.bf16.mxu0 %v6380_v18 }
 0xbe9   :  { %5942 = vmatpush3.bf16.msra.mxu0 %v6380_v18 }
 0xcb7   :  { %v5929_v43 = vpop.f32.mrb[48].mxu0 }
 0xcb8   :  { %v2160_v44 = vadd.f32 %v5929_v43, %v1861_v1  ;;  %v2144_v45 = vpop.f32.mrb[49].mxu0 }
 0xcb9   :  { %v2158_v48 = vadd.f32 %v2144_v45, %v1859_v3  ;;  %v5930_v49 = vpop.f32.mrb[50].mxu0 }
 0xcba   :  { %v2147_v51 = vpop.f32.mrb[51].mxu0  ;;  %v2163_v38 = vadd.f32 %v2160_v44, %v6973_v24 }
 0xcbb   :  { %v2161_v52 = vadd.f32 %v2158_v48, %v6965_v8  ;;  %v2159_v53 = vadd.f32 %v2147_v51, %v1860_v9 }
 0xcbc   :  { %v7307_v58 = vadd.f32 %v2167_v46, %v2163_v38 }
 0xcbd   :  { %v7304_v56 = vadd.f32 %v2167_v46, %v2161_v52  ;;  %v2162_v57 = vadd.f32 %v2159_v53, %v6967_v10  ;;  %v6381_v52 = vld [vmem:[%s8041_s7 + $0x10] sm:$0xff]   ;;  %v6382_v53 = vld [vmem:[%s8041_s7 + $0x18] sm:$0xff]  }
 0xcbe   :  { %v2177_v8 = vsel %vm844_vm1, %v7307_v58, 0.0  ;;  %5943 = vmatprep.subr.bf16.mxu0 %v6381_v52 }
 0xcbf   :  { %v7309_v42 = vadd.f32 %v2167_v46, %v2162_v57  ;;  %v2171_v60 = vsel %vm837_vm0, %v7304_v56, 0.0  ;;  %5944 = vmatpush3.bf16.msra.mxu0 %v6381_v52  ;;  %v6383_v57 = vld [vmem:[%s8041_s7 + $0x20] sm:$0xff]  }
 0xcc0   :  { %2172 = vadd.xlane.f32.xlu1 %v2171_v60  ;;  %5945 = vmatprep.subr.bf16.mxu0 %v6382_v53  ;;  %v6384_v60 = vld [vmem:[%s8041_s7 + $0x28] sm:$0xff]  }
 0xcc1   :  { %v2174_v55 = vsel %vm837_vm0, %v7309_v42, 0.0 }
 0xcc2   :  { %2175 = vadd.xlane.f32.xlu0 %v2174_v55  ;;  %v6385_v55 = vld [vmem:[%s8041_s7 + $0x30] sm:$0xff]  }
 0xcc3   :  { %5946 = vmatpush3.bf16.msra.mxu0 %v6382_v53 }
 0xcc4   :  { %2178 = vadd.xlane.f32.xlu1 %v2177_v8  ;;  %5947 = vmatprep.subr.bf16.mxu0 %v6383_v57  ;;  %v6386_v8 = vld [vmem:[%s8041_s7 + $0x38] sm:$0xff]  }
 0xcc7   :  { %5948 = vmatpush3.bf16.msra.mxu0 %v6383_v57 }
 0xcc8   :  { %5949 = vmatprep.subr.bf16.mxu0 %v6384_v60 }
 0xccb   :  { %5950 = vmatpush3.bf16.msra.mxu0 %v6384_v60 }
 0xccc   :  { %5951 = vmatprep.subr.bf16.mxu0 %v6385_v55 }
 0xccf   :  { %5952 = vmatpush3.bf16.msra.mxu0 %v6385_v55 }
 0xcd0   :  { %5953 = vmatprep.subr.bf16.mxu0 %v6386_v8 }
 0xcd3   :  { %5954 = vmatpush3.bf16.msra.mxu0 %v6386_v8 }
 0xcd4   :  { %6174 = vmatprep.subr.bf16.mxu0 %v6642_v13 }
 0xd4d   :  { %v2173_v24 = vpop.xlane.xlu1 %2172 }
 0xd4e   :  { %v2180_v61 = vmul.f32 0.03125, %v2173_v24  ;;  %v7372_v24 = vsub.s32 6, %v6989_v50 }
 0xd4f   :  { %v2176_v62 = vpop.xlane.xlu0 %2175 }
 0xd50   :  { %v2183_v10 = vsub.f32 %v7304_v56, %v2180_v61  ;;  %v2181_v47 = vmul.f32 0.03125, %v2176_v62  ;;  %v2233_v61 = vrot.slane %v7341_v30, %v7372_v24 }
 0xd51   :  { %v2179_v20 = vpop.xlane.xlu1 %2178 }
 0xd52   :  { %v2184_v63 = vsub.f32 %v7309_v42, %v2181_v47  ;;  %v2182_v0 = vmul.f32 0.03125, %v2179_v20  ;;  %v2186_v19 = vmul.f32 %v2183_v10, %v2183_v10 }
 0xd54   :  { %v2185_v1 = vsub.f32 %v7307_v58, %v2182_v0  ;;  %v2189_v2 = vsel %vm837_vm0, %v2186_v19, 0.0  ;;  %v2187_v3 = vmul.f32 %v2184_v63, %v2184_v63 }
 0xd55   :  { %2190 = vadd.xlane.f32.xlu0 %v2189_v2 }
 0xd56   :  { %v2192_v5 = vsel %vm837_vm0, %v2187_v3, 0.0  ;;  %v2188_v7 = vmul.f32 %v2185_v1, %v2185_v1 }
 0xd57   :  { %2193 = vadd.xlane.f32.xlu1 %v2192_v5 }
 0xd58   :  { %v2195_v9 = vsel %vm844_vm1, %v2188_v7, 0.0 }
 0xd59   :  { %2196 = vadd.xlane.f32.xlu0 %v2195_v9 }
 0xde2   :  { %v2191_v21 = vpop.xlane.xlu0 %2190 }
 0xde3   :  { %v2198_v23 = vmul.f32 0.03125, %v2191_v21 }
 0xde4   :  { %v2194_v25 = vpop.xlane.xlu1 %2193 }
 0xde5   :  { %v2201_v15 = vadd.f32 1e-06, %v2198_v23  ;;  %v2199_v4 = vmul.f32 0.03125, %v2194_v25 }
 0xde6   :  { %v2197_v6 = vpop.xlane.xlu0 %2196 }
 0xde7   :  { %6517 = vrsqrt.f32 %v2201_v15  ;;  %v2202_v26 = vadd.f32 1e-06, %v2199_v4  ;;  %v2200_v12 = vmul.f32 0.03125, %v2197_v6 }
 0xde9   :  { %6519 = vrsqrt.f32 %v2202_v26  ;;  %v2203_v27 = vadd.f32 1e-06, %v2200_v12  ;;  %v7379_v12 = vsub.s32 7, %v6989_v50 }
 0xdeb   :  { %6521 = vrsqrt.f32 %v2203_v27 }
 0xdf1   :  { %v6518_v33 = vpop.eup %6517 }
 0xdf2   :  { %v2207_v34 = vmul.f32 %v6518_v33, %v2183_v10 }
 0xdf3   :  { %v6520_v35 = vpop.eup %6519 }
 0xdf4   :  { %v2208_v36 = vmul.f32 %v6520_v35, %v2184_v63  ;;  %v2214_v37 = vmul.f32 %v2213_v31, %v2207_v34 }
 0xdf5   :  { %v6522_v40 = vpop.eup %6521 }
 0xdf6   :  { %v2209_v43 = vmul.f32 %v6522_v40, %v2185_v1  ;;  %v2215_v44 = vmul.f32 %v2213_v31, %v2208_v36  ;;  %v2221_v46 = vadd.f32 %v2220_v39, %v2214_v37 }
 0xdf8   :  { %v2216_v45 = vmul.f32 %v2213_v31, %v2209_v43  ;;  %v2222_v48 = vadd.f32 %v2220_v39, %v2215_v44  ;;  %v2435_v31 = vrot.slane %v7341_v30, %v7379_v12 }
 0xdfa   :  { %v2224_v49 = vpack.c.bf16 %v2222_v48, %v2221_v46  ;;  %v2223_v51 = vadd.f32 %v2220_v39, %v2216_v45 }
 0xdfc   :  { %5935 = vmatprep.mubr.msk.bf16.mxu1 %vm837_vm0, %v2224_v49  ;;  %v2225_v38 = vpack.c.bf16 %v2223_v51, %v2223_v51 }
 0xdfe   :  { %5936 = vmatmul.mubr.msk.bf16.vlgmr.msra.gmra.mrb[52].mxu1 %vm837_vm0, %v2225_v38 }
 0xed1   :  { %v5937_v62 = vpop.f32.mrb[52].mxu1 }
 0xed2   :  { %v2295_v10 = vadd.f32 %v5937_v62, %v2233_v61  ;;  %v2286_v47 = vpop.f32.mrb[53].mxu1  ;;  %v6387_v62 = vld [vmem:[%s8038_s4 + $0x10] sm:$0xff]  }
 0xed3   :  { %v2287_v20 = vadd.f32 %v2286_v47, %v2233_v61  ;;  %v5938_v63 = vpop.f32.mrb[54].mxu1  ;;  %5959 = vmatprep.subr.bf16.mxu1 %v6387_v62 }
 0xed4   :  { %v2305_v0 = vmul.f32 0.70710677, %v2295_v10  ;;  %v2289_v19 = vpop.f32.mrb[55].mxu1  ;;  %v2302_v17 = vmul.f32 0.5, %v2295_v10  ;;  %v6388_v10 = vld [vmem:[%s8038_s4 + $0x18] sm:$0xff]   ;;  %5960 = vmatpush3.bf16.msra.mxu1 %v6387_v62 }
 0xed5   :  { %v2303_v1 = vmul.f32 0.70710677, %v2287_v20  ;;  %v2290_v2 = vadd.f32 %v2289_v19, %v2233_v61  ;;  %v2300_v18 = vmul.f32 0.5, %v2287_v20  ;;  %5961 = vmatprep.subr.bf16.mxu1 %v6388_v10 }
 0xed6   :  { %6523 = verf.f32 %v2305_v0 }
 0xed7   :  { %6525 = verf.f32 %v2303_v1  ;;  %v2304_v3 = vmul.f32 0.70710677, %v2290_v2  ;;  %v2301_v21 = vmul.f32 0.5, %v2290_v2 }
 0xed8   :  { %5962 = vmatpush3.bf16.msra.mxu1 %v6388_v10  ;;  %v7481_v10 = vld [vmem:[%s8036_s2] sm:$0xff] }
 0xed9   :  { %6527 = verf.f32 %v2304_v3  ;;  %6167 = vmatprep.subr.bf16.mxu1 %v6642_v13 }
 0xee0   :  { %v6524_v5 = vpop.eup %6523 }
 0xee1   :  { %v6526_v7 = vpop.eup %6525  ;;  %v2311_v9 = vadd.f32 1.0, %v6524_v5 }
 0xee2   :  { %v2309_v14 = vadd.f32 1.0, %v6526_v7  ;;  %v7414_v7 = vld [vmem:[%s8042_s8 + $0x8] sm:$0xff] }
 0xee3   :  { %v6528_v16 = vpop.eup %6527  ;;  %v2314_v25 = vmul.f32 %v2311_v9, %v2302_v17  ;;  %v2483_v9 = vrot.slane %v7414_v7, %v6992_v54 }
 0xee4   :  { %v2310_v23 = vadd.f32 1.0, %v6528_v16  ;;  %v2312_v15 = vmul.f32 %v2309_v14, %v2300_v18 }
 0xee5   :  { %v2316_v26 = vpack.c.bf16 %v2314_v25, %v2314_v25 }
 0xee6   :  { %v2313_v4 = vmul.f32 %v2310_v23, %v2301_v21  ;;  %v2490_v23 = vrot.slane %v7414_v7, %v7002_v59 }
 0xee8   :  { %v2315_v6 = vpack.c.bf16 %v2313_v4, %v2312_v15 }
 0xeea   :  { %5955 = vmatprep.mubr.bf16.mxu0 %v2315_v6 }
 0xeeb   :  { %5956 = vmatmul.mubr.bf16.vlgmr.msra.gmra.mrb[52].mxu0 %v2316_v26 }
 0xeec   :  { %6003 = vmatprep.mubr.msk.f32.mxu0 %vm6645_vm2, %v6646_v22 }
 0xfbe   :  { %v5957_v27 = vpop.f32.mrb[52].mxu0 }
 0xfbf   :  { %v2415_v33 = vpop.f32.mrb[53].mxu0  ;;  %v2431_v34 = vadd.f32 %v5957_v27, %v7307_v58 }
 0xfc0   :  { %v2429_v35 = vadd.f32 %v2415_v33, %v7304_v56  ;;  %v5958_v36 = vpop.f32.mrb[54].mxu0 }
 0xfc1   :  { %v2418_v37 = vpop.f32.mrb[55].mxu0  ;;  %v7388_v43 = vadd.f32 %v2435_v31, %v2431_v34 }
 0xfc2   :  { %v7385_v39 = vadd.f32 %v2435_v31, %v2429_v35  ;;  %v2430_v40 = vadd.f32 %v2418_v37, %v7309_v42  ;;  %v2504_v35 = vrot.slane %v7414_v7, %v7009_v11 }
 0xfc3   :  { %v2447_v56 = vsel %vm844_vm1, %v7388_v43, 0.0 }
 0xfc4   :  { %v7390_v44 = vadd.f32 %v2435_v31, %v2430_v40  ;;  %v2441_v50 = vsel %vm837_vm0, %v7385_v39, 0.0 }
 0xfc5   :  { %2442 = vadd.xlane.f32.xlu1 %v2441_v50 }
 0xfc6   :  { %v2444_v30 = vsel %vm837_vm0, %v7390_v44, 0.0 }
 0xfc7   :  { %2445 = vadd.xlane.f32.xlu0 %v2444_v30 }
 0xfc9   :  { %2448 = vadd.xlane.f32.xlu1 %v2447_v56 }
0x1052   :  { %v2443_v58 = vpop.xlane.xlu1 %2442 }
0x1053   :  { %v2450_v45 = vmul.f32 0.03125, %v2443_v58 }
0x1054   :  { %v2446_v46 = vpop.xlane.xlu0 %2445 }
0x1055   :  { %v2453_v42 = vsub.f32 %v7385_v39, %v2450_v45  ;;  %v2451_v48 = vmul.f32 0.03125, %v2446_v46 }
0x1056   :  { %v2449_v49 = vpop.xlane.xlu1 %2448 }
0x1057   :  { %v2454_v51 = vsub.f32 %v7390_v44, %v2451_v48  ;;  %v2452_v38 = vmul.f32 0.03125, %v2449_v49  ;;  %v2456_v52 = vmul.f32 %v2453_v42, %v2453_v42 }
0x1059   :  { %v2455_v53 = vsub.f32 %v7388_v43, %v2452_v38  ;;  %v2459_v57 = vsel %vm837_vm0, %v2456_v52, 0.0  ;;  %v2457_v60 = vmul.f32 %v2454_v51, %v2454_v51 }
0x105a   :  { %2460 = vadd.xlane.f32.xlu0 %v2459_v57 }
0x105b   :  { %v2462_v55 = vsel %vm837_vm0, %v2457_v60, 0.0  ;;  %v2458_v8 = vmul.f32 %v2455_v53, %v2455_v53 }
0x105c   :  { %2463 = vadd.xlane.f32.xlu1 %v2462_v55 }
0x105d   :  { %v2465_v61 = vsel %vm844_vm1, %v2458_v8, 0.0 }
0x105e   :  { %2466 = vadd.xlane.f32.xlu0 %v2465_v61 }
0x10e7   :  { %v2461_v47 = vpop.xlane.xlu0 %2460 }
0x10e8   :  { %v2468_v20 = vmul.f32 0.03125, %v2461_v47 }
0x10e9   :  { %v2464_v63 = vpop.xlane.xlu1 %2463 }
0x10ea   :  { %v2471_v0 = vadd.f32 1e-06, %v2468_v20  ;;  %v2469_v19 = vmul.f32 0.03125, %v2464_v63 }
0x10eb   :  { %v2467_v1 = vpop.xlane.xlu0 %2466 }
0x10ec   :  { %6529 = vrsqrt.f32 %v2471_v0  ;;  %v2472_v2 = vadd.f32 1e-06, %v2469_v19  ;;  %v2470_v3 = vmul.f32 0.03125, %v2467_v1  ;;  %v7488_v1 = vld [vmem:[%s8036_s2 + $0x8] sm:$0xff] }
0x10ee   :  { %6531 = vrsqrt.f32 %v2472_v2  ;;  %v2473_v5 = vadd.f32 1e-06, %v2470_v3 }
0x10f0   :  { %6533 = vrsqrt.f32 %v2473_v5 }
0x10f6   :  { %v6530_v14 = vpop.eup %6529 }
0x10f7   :  { %v2477_v16 = vmul.f32 %v6530_v14, %v2453_v42 }
0x10f8   :  { %v6532_v17 = vpop.eup %6531 }
0x10f9   :  { %v2478_v18 = vmul.f32 %v6532_v17, %v2454_v51  ;;  %v2484_v21 = vmul.f32 %v2483_v9, %v2477_v16  ;;  %v7495_v17 = vld [vmem:[%s8036_s2 + $0x10] sm:$0x3] }
0x10fa   :  { %v6534_v25 = vpop.eup %6533 }
0x10fb   :  { %v2479_v15 = vmul.f32 %v6534_v25, %v2455_v53  ;;  %v2485_v4 = vmul.f32 %v2483_v9, %v2478_v18  ;;  %v2491_v6 = vadd.f32 %v2490_v23, %v2484_v21 }
0x10fd   :  { %v2492_v26 = vadd.f32 %v2490_v23, %v2485_v4  ;;  %v2486_v27 = vmul.f32 %v2483_v9, %v2479_v15 }
0x10ff   :  { %v2494_v31 = vpack.c.bf16 %v2492_v26, %v2491_v6  ;;  %v2493_v33 = vadd.f32 %v2490_v23, %v2486_v27 }
0x1101   :  { %5963 = vmatprep.mubr.msk.bf16.mxu1 %vm837_vm0, %v2494_v31  ;;  %v2495_v34 = vpack.c.bf16 %v2493_v33, %v2493_v33 }
0x1103   :  { %5964 = vmatmul.mubr.msk.bf16.vlgmr.msra.gmra.mrb[56].mxu1 %vm837_vm0, %v2495_v34 }
0x1104   :  { %5973 = vmatprep.mubr.msk.f32.mxu1 %vm6645_vm2, %v6646_v22 }
0x11d6   :  { %v5965_v36 = vpop.f32.mrb[56].mxu1 }
0x11d7   :  { %v7426_v37 = vadd.f32 %v5965_v36, %v2504_v35  ;;  %v2557_v40 = vpop.f32.mrb[57].mxu1 }
0x11d8   :  { %v5966_v50 = vpop.f32.mrb[58].mxu1  ;;  %v7430_v56 = vadd.f32 %v2557_v40, %v2504_v35 }
0x11d9   :  { %2578 = vrot.lane.b32.xlu0 %v7426_v37, %s6643_s16  ;;  %v2560_v30 = vpop.f32.mrb[59].mxu1 }
0x11da   :  { %v7432_v58 = vadd.f32 %v2560_v30, %v2504_v35 }
0x11dc   :  { %v7436_v45 = vpack.i.bf16 %v7432_v58, %v7430_v56 }
0x11dd   :  { %2810 = vrot.lane.b32.xlu0 %v7432_v58, %s6647_s18 }
0x11de   :  { %6264 = vrot.lane.b32.xlu1 %v7436_v45, %s6643_s16 }
0x11e2   :  { %6269 = vrot.lane.b32.xlu1 %v7436_v45, %s6644_s17 }
0x11e6   :  { %2818 = vrot.lane.b32.xlu1 %v7426_v37, %s6644_s17 }
0x11ea   :  { %2808 = vrot.lane.b32.xlu1 %v7430_v56, %s6647_s18 }
0x11ee   :  { %2812 = vrot.lane.b32.xlu1 %v7426_v37, %s6647_s18 }
0x124b   :  { %v2579_v57 = vpop.permute.xlu0 %2578 }
0x124f   :  { %v2811_v8 = vpop.permute.xlu0 %2810 }
0x1250   :  { %v6265_v46 = vpop.permute.xlu1 %6264 }
0x1251   :  { %v6267_v42 = vunpack.i.h.bf16 %v6265_v46  ;;  %v6266_v48 = vunpack.i.l.bf16 %v6265_v46 }
0x1253   :  { %v6168_v49 = vpack.c.bf16 %v6267_v42, %v6266_v48 }
0x1254   :  { %v6270_v51 = vpop.permute.xlu1 %6269 }
0x1255   :  { %v6272_v38 = vunpack.i.h.bf16 %v6270_v51  ;;  %v6271_v52 = vunpack.i.l.bf16 %v6270_v51  ;;  %6170 = vmatpush3.bf16.xpose.msk.msra.mxu1 %vm7045_vm4, %v6168_v49 }
0x1256   :  { %5971 = vmatprep.subr.mxu1 %v6646_v22 }
0x1257   :  { %v6175_v53 = vpack.c.bf16 %v6272_v38, %v6271_v52 }
0x1258   :  { %v2819_v60 = vpop.permute.xlu1 %2818 }
0x1259   :  { %6177 = vmatpush3.bf16.xpose.msk.msra.mxu0 %vm7045_vm4, %v6175_v53 }
0x125a   :  { %6001 = vmatprep.subr.mxu0 %v6646_v22 }
0x125c   :  { %v2809_v55 = vpop.permute.xlu1 %2808 }
0x125d   :  { %5972 = vmatpush3.xpose.msk.msra.mxu1 %vm978_vm3, %v2579_v57 }
0x125e   :  { %6171 = vmatprep.subr.bf16.mxu1 %v6642_v13 }
0x1260   :  { %5974 = vmatmul.mubr.msk.f32.vlgmr.msra.gmra.mrb[50].mxu1 %vm978_vm3, %v7430_v56  ;;  %v2813_v61 = vpop.permute.xlu1 %2812 }
0x1261   :  { %6002 = vmatpush3.xpose.msk.msra.mxu0 %vm978_vm3, %v2819_v60  ;;  %5976 = vmatprep.mubr.msk.f32.mxu1 %vm6645_vm2, %v6646_v22 }
0x1264   :  { %5977 = vmatmul.mubr.msk.f32.gmra.mrb[60].mxu1 %vm978_vm3, %v7432_v58  ;;  %6004 = vmatmul.mubr.msk.f32.vlgmr.msra.gmra.mrb[46].mxu0 %vm978_vm3, %v2809_v55 }
0x1265   :  { %5979 = vmatprep.mubr.msk.f32.mxu1 %vm6645_vm2, %v6646_v22  ;;  %6006 = vmatprep.mubr.msk.f32.mxu0 %vm6645_vm2, %v6646_v22 }
0x1268   :  { %5980 = vmatmul.mubr.msk.f32.gmra.mrb[62].mxu1 %vm978_vm3, %v7426_v37  ;;  %6007 = vmatmul.mubr.msk.f32.gmra.mrb[56].mxu0 %vm978_vm3, %v2811_v8 }
0x1269   :  { %6009 = vmatprep.mubr.msk.f32.mxu0 %vm6645_vm2, %v6646_v22  ;;  %5988 = vmatprep.mubr.msk.f32.mxu1 %vm6645_vm2, %v6646_v22 }
0x126c   :  { %6010 = vmatmul.mubr.msk.f32.gmra.mrb[58].mxu0 %vm978_vm3, %v2813_v61 }
0x1333   :  { %v2658_v62 = vpop.f32.mrb[50].mxu1 }
0x1334   :  { %v2659_v47 = vadd.f32 %v7481_v10, %v2658_v62  ;;  %v5975_v20 = vpop.f32.mrb[51].mxu1 }
0x1336   :  { %v2672_v63 = vsel %vm1071_vm5, %v2659_v47, -inf }
0x1337   :  { %v2898_v0 = vpop.f32.mrb[46].mxu0  ;;  %2673 = vmax.xlane.f32.xlu0 %v2672_v63  ;;  %v2663_v19 = vpop.f32.mrb[60].mxu1 }
0x1338   :  { %v2664_v2 = vadd.f32 %v7488_v1, %v2663_v19  ;;  %v5978_v3 = vpop.f32.mrb[61].mxu1  ;;  %v6005_v5 = vpop.f32.mrb[47].mxu0  ;;  %v2899_v25 = vadd.f32 %v7481_v10, %v2898_v0 }
0x133a   :  { %v2675_v9 = vsel %vm1071_vm5, %v2664_v2, -inf  ;;  %v2912_v33 = vsel %vm1071_vm5, %v2899_v25, -inf }
0x133b   :  { %v2903_v14 = vpop.f32.mrb[56].mxu0  ;;  %2676 = vmax.xlane.f32.xlu1 %v2675_v9  ;;  %v2668_v16 = vpop.f32.mrb[62].mxu1 }
0x133c   :  { %v2669_v18 = vadd.f32 %v7495_v17, %v2668_v16  ;;  %v5981_v21 = vpop.f32.mrb[63].mxu1  ;;  %v6008_v23 = vpop.f32.mrb[57].mxu0  ;;  %v2904_v27 = vadd.f32 %v7488_v1, %v2903_v14 }
0x133e   :  { %v2678_v15 = vsel %vm1078_vm6, %v2669_v18, -inf  ;;  %v2915_v34 = vsel %vm1071_vm5, %v2904_v27, -inf }
0x133f   :  { %v2908_v4 = vpop.f32.mrb[58].mxu0  ;;  %2679 = vmax.xlane.f32.xlu0 %v2678_v15 }
0x1340   :  { %v2909_v6 = vadd.f32 %v7495_v17, %v2908_v4  ;;  %v6011_v26 = vpop.f32.mrb[59].mxu0 }
0x1342   :  { %v2918_v31 = vsel %vm1078_vm6, %v2909_v6, -inf }
0x1343   :  { %2919 = vmax.xlane.f32.xlu1 %v2918_v31  ;;  %2913 = vmax.xlane.f32.xlu0 %v2912_v33 }
0x1347   :  { %2916 = vmax.xlane.f32.xlu0 %v2915_v34 }
0x1354   :  { %6274 = vrot.lane.b32.xlu1 %v7436_v45, %s6648_s24 }
0x13c4   :  { %v2674_v35 = vpop.xlane.xlu0 %2673 }
0x13c5   :  { %v2681_v36 = vsub.f32 %v2659_v47, %v2674_v35 }
0x13c7   :  { %v2684_v40 = vmul.f32 1.442695, %v2681_v36 }
0x13c8   :  { %v2677_v50 = vpop.xlane.xlu1 %2676 }
0x13c9   :  { %6535 = vpow2.f32 %v2684_v40  ;;  %v2682_v46 = vsub.f32 %v2664_v2, %v2677_v50 }
0x13cb   :  { %v2686_v53 = vmul.f32 1.442695, %v2682_v46 }
0x13cc   :  { %v2680_v30 = vpop.xlane.xlu0 %2679 }
0x13cd   :  { %v2683_v38 = vsub.f32 %v2669_v18, %v2680_v30 }
0x13cf   :  { %v2688_v47 = vmul.f32 1.442695, %v2683_v38 }
0x13d0   :  { %v2920_v42 = vpop.xlane.xlu1 %2919  ;;  %v2914_v48 = vpop.xlane.xlu0 %2913 }
0x13d1   :  { %v2921_v49 = vsub.f32 %v2899_v25, %v2914_v48  ;;  %v2923_v20 = vsub.f32 %v2909_v6, %v2920_v42 }
0x13d3   :  { %v6536_v51 = vpop.eup %6535  ;;  %v2924_v52 = vmul.f32 1.442695, %v2921_v49  ;;  %v2928_v19 = vmul.f32 1.442695, %v2923_v20 }
0x13d4   :  { %v6275_v57 = vpop.permute.xlu1 %6274  ;;  %v2917_v60 = vpop.xlane.xlu0 %2916  ;;  %v2690_v55 = vsel %vm1071_vm5, %v6536_v51, 0.0 }
0x13d5   :  { %v6277_v8 = vunpack.i.h.bf16 %v6275_v57  ;;  %v6276_v61 = vunpack.i.l.bf16 %v6275_v57  ;;  %v2922_v62 = vsub.f32 %v2904_v27, %v2917_v60  ;;  %2691 = vadd.xlane.f32.xlu0 %v2690_v55  ;;  %6537 = vpow2.f32 %v2924_v52 }
0x13d6   :  { %6539 = vpow2.f32 %v2686_v53 }
0x13d7   :  { %v6172_v63 = vpack.c.bf16 %v6277_v8, %v6276_v61  ;;  %v2926_v0 = vmul.f32 1.442695, %v2922_v62  ;;  %v5265_v8 = vld [vmem:[%s8039_s5 + $0x10] sm:$0xf]  ;;  %v5276_v62 = vld [vmem:[%s8039_s5 + $0x14] sm:$0xf] }
0x13d8   :  { %v3111_v61 = vsel %vm1454_vm8, %v5265_v8, 0  ;;  %6203 = vmatprep.subr.msk.bf16.mxu0 %vm1454_vm8, %v5276_v62 }
0x13d9   :  { %6541 = vpow2.f32 %v2926_v0  ;;  %6173 = vmatpush3.bf16.msra.mxu1 %v6172_v63 }
0x13da   :  { %5986 = vmatprep.subr.mxu1 %v6646_v22  ;;  %6543 = vpow2.f32 %v2688_v47  ;;  %v3054_v47 = vsel %vm1454_vm8, %v5276_v62, 0 }
0x13db   :  { %6545 = vpow2.f32 %v2928_v19  ;;  %6028 = vmatpush3.bf16.msra.mxu0 %v3054_v47 }
0x13dc   :  { %6181 = vmatprep.subr.bf16.mxu0 %v6642_v13 }
0x13df   :  { %v6538_v2 = vpop.eup %6537 }
0x13e0   :  { %v2930_v3 = vsel %vm1071_vm5, %v6538_v2, 0.0  ;;  %v6540_v5 = vpop.eup %6539 }
0x13e1   :  { %2931 = vadd.xlane.f32.xlu1 %v2930_v3  ;;  %v2693_v18 = vsel %vm1071_vm5, %v6540_v5, 0.0 }
0x13e3   :  { %v6542_v9 = vpop.eup %6541 }
0x13e4   :  { %v2933_v14 = vsel %vm1071_vm5, %v6542_v9, 0.0  ;;  %v6544_v16 = vpop.eup %6543 }
0x13e5   :  { %2934 = vadd.xlane.f32.xlu0 %v2933_v14  ;;  %2694 = vadd.xlane.f32.xlu1 %v2693_v18  ;;  %v2696_v21 = vsel %vm1078_vm6, %v6544_v16, 0.0  ;;  %v6546_v23 = vpop.eup %6545 }
0x13e6   :  { %v2936_v25 = vsel %vm1078_vm6, %v6546_v23, 0.0 }
0x13e9   :  { %2697 = vadd.xlane.f32.xlu0 %v2696_v21 }
0x13ed   :  { %2937 = vadd.xlane.f32.xlu0 %v2936_v25 }
0x13f6   :  { %6279 = vrot.lane.b32.xlu1 %v7436_v45, %s6649_s0 }
0x13fa   :  { %2949 = vrot.lane.b32.xlu1 %v7426_v37, %s6649_s0 }
0x13fe   :  { %6284 = vrot.lane.b32.xlu1 %v7436_v45, %s6650_s25 }
0x1402   :  { %3171 = vrot.lane.b32.xlu1 %v7426_v37, %s6650_s25 }
0x1403   :  { %2709 = vrot.lane.b32.xlu0 %v7426_v37, %s6648_s24 }
0x1406   :  { %3163 = vrot.lane.b32.xlu1 %v7432_v58, %s6651_s26 }
0x1407   :  { %3161 = vrot.lane.b32.xlu0 %v7430_v56, %s6651_s26 }
0x140b   :  { %3165 = vrot.lane.b32.xlu0 %v7426_v37, %s6651_s26 }
0x1462   :  { %v2692_v15 = vpop.xlane.xlu0 %2691 }
0x1463   :  { %6547 = vrcp.f32 %v2692_v15 }
0x146d   :  { %v6548_v34 = vpop.eup %6547 }
0x146e   :  { %v2932_v4 = vpop.xlane.xlu1 %2931  ;;  %v2702_v40 = vmul.f32 %v6548_v34, %v6536_v51 }
0x1472   :  { %v2935_v6 = vpop.xlane.xlu0 %2934  ;;  %v2695_v26 = vpop.xlane.xlu1 %2694 }
0x1473   :  { %6549 = vrcp.f32 %v2695_v26 }
0x1476   :  { %v2698_v27 = vpop.xlane.xlu0 %2697  ;;  %v6280_v31 = vpop.permute.xlu1 %6279 }
0x1477   :  { %6551 = vrcp.f32 %v2698_v27  ;;  %v6282_v35 = vunpack.i.h.bf16 %v6280_v31  ;;  %v6281_v36 = vunpack.i.l.bf16 %v6280_v31 }
0x1478   :  { %6553 = vrcp.f32 %v2932_v4 }
0x1479   :  { %v6179_v46 = vpack.c.bf16 %v6282_v35, %v6281_v36  ;;  %6555 = vrcp.f32 %v2935_v6 }
0x147a   :  { %v2938_v33 = vpop.xlane.xlu0 %2937  ;;  %v2950_v49 = vpop.permute.xlu1 %2949 }
0x147b   :  { %6557 = vrcp.f32 %v2938_v33 }
0x147d   :  { %v6550_v30 = vpop.eup %6549 }
0x147e   :  { %v2710_v50 = vpop.permute.xlu0 %2709  ;;  %v2703_v42 = vmul.f32 %v6550_v30, %v6540_v5  ;;  %v6285_v18 = vpop.permute.xlu1 %6284 }
0x147f   :  { %5987 = vmatpush3.msk.msra.mxu1 %vm1123_vm7, %v2710_v50  ;;  %v6287_v15 = vunpack.i.h.bf16 %v6285_v18  ;;  %v6286_v4 = vunpack.i.l.bf16 %v6285_v18 }
0x1480   :  { %5989 = vmatmul.mubr.msk.f32.vlgmr.msra.gmra.mrb[64].mxu1 %vm1071_vm5, %v2702_v40  ;;  %6178 = vmatprep.subr.bf16.mxu1 %v6642_v13 }
0x1481   :  { %6180 = vmatpush3.bf16.msra.mxu1 %v6179_v46  ;;  %5991 = vmatprep.mubr.msk.f32.mxu1 %vm6645_vm2, %v6646_v22  ;;  %v6552_v48 = vpop.eup %6551  ;;  %v6182_v31 = vpack.c.bf16 %v6287_v15, %v6286_v4 }
0x1482   :  { %6016 = vmatprep.subr.mxu1 %v6646_v22  ;;  %v2704_v51 = vmul.f32 %v6552_v48, %v6544_v16  ;;  %v6554_v38 = vpop.eup %6553  ;;  %v3172_v33 = vpop.permute.xlu1 %3171 }
0x1483   :  { %v2942_v52 = vmul.f32 %v6554_v38, %v6538_v2  ;;  %v6556_v53 = vpop.eup %6555  ;;  %v3162_v34 = vpop.permute.xlu0 %3161 }
0x1484   :  { %5992 = vmatmul.mubr.msk.f32.gmra.mrb[66].mxu1 %vm1071_vm5, %v2703_v42  ;;  %v2943_v57 = vmul.f32 %v6556_v53, %v6542_v9 }
0x1485   :  { %6017 = vmatpush3.msk.msra.mxu1 %vm1123_vm7, %v2950_v49  ;;  %5994 = vmatprep.mubr.msk.f32.mxu1 %vm6645_vm2, %v6646_v22  ;;  %v6558_v60 = vpop.eup %6557 }
0x1486   :  { %v2944_v55 = vmul.f32 %v6558_v60, %v6546_v23  ;;  %6204 = vmatprep.subr.msk.bf16.mxu1 %vm1454_vm8, %v5265_v8  ;;  %v3164_v35 = vpop.permute.xlu1 %3163 }
0x1487   :  { %v3166_v36 = vpop.permute.xlu0 %3165 }
0x1488   :  { %5995 = vmatmul.mubr.msk.f32.gmra.mrb[68].mxu1 %vm1071_vm5, %v2704_v51 }
0x1489   :  { %6018 = vmatprep.mubr.msk.f32.mxu1 %vm6645_vm2, %v6646_v22 }
0x148c   :  { %6019 = vmatmul.mubr.msk.f32.vlgmr.msra.gmra.mrb[70].mxu1 %vm1071_vm5, %v2942_v52 }
0x148d   :  { %6021 = vmatprep.mubr.msk.f32.mxu1 %vm6645_vm2, %v6646_v22  ;;  %6034 = vmatpush3.bf16.msra.mxu1 %v3111_v61 }
0x148e   :  { %6185 = vmatprep.subr.bf16.mxu1 %v6642_v13 }
0x1490   :  { %6022 = vmatmul.mubr.msk.f32.gmra.mrb[72].mxu1 %vm1071_vm5, %v2943_v57 }
0x1491   :  { %6024 = vmatprep.mubr.msk.f32.mxu1 %vm6645_vm2, %v6646_v22 }
0x1494   :  { %6025 = vmatmul.mubr.msk.f32.gmra.mrb[74].mxu1 %vm1071_vm5, %v2944_v55 }
0x1553   :  { %v2790_v20 = vpop.f32.mrb[64].mxu1 }
0x1554   :  { %v5990_v63 = vpop.f32.mrb[65].mxu1 }
0x1557   :  { %v2795_v0 = vpop.f32.mrb[66].mxu1 }
0x1558   :  { %v2806_v19 = vpack.c.bf16 %v2795_v0, %v2790_v20  ;;  %v5993_v2 = vpop.f32.mrb[67].mxu1 }
0x155a   :  { %6035 = vmatprep.mubr.msk.bf16.mxu1 %vm978_vm3, %v2806_v19 }
0x155b   :  { %v2800_v3 = vpop.f32.mrb[68].mxu1 }
0x155c   :  { %v2807_v5 = vpack.c.bf16 %v2800_v3, %v2800_v3  ;;  %v5996_v9 = vpop.f32.mrb[69].mxu1 }
0x155e   :  { %6036 = vmatmul.mubr.msk.bf16.vlgmr.msra.gmra.mrb[76].mxu1 %vm978_vm3, %v2807_v5 }
0x155f   :  { %v3030_v14 = vpop.f32.mrb[70].mxu1  ;;  %6060 = vmatprep.mubr.msk.f32.mxu1 %vm6645_vm2, %v6646_v22 }
0x1560   :  { %v6020_v16 = vpop.f32.mrb[71].mxu1 }
0x1563   :  { %v3035_v21 = vpop.f32.mrb[72].mxu1 }
0x1564   :  { %v3045_v23 = vpack.c.bf16 %v3035_v21, %v3030_v14  ;;  %v6023_v25 = vpop.f32.mrb[73].mxu1 }
0x1566   :  { %6029 = vmatprep.mubr.msk.bf16.mxu0 %vm978_vm3, %v3045_v23 }
0x1567   :  { %v3040_v6 = vpop.f32.mrb[74].mxu1 }
0x1568   :  { %v3046_v26 = vpack.c.bf16 %v3040_v6, %v3040_v6  ;;  %v6026_v27 = vpop.f32.mrb[75].mxu1 }
0x156a   :  { %6030 = vmatmul.mubr.msk.bf16.vlgmr.msra.gmra.mrb[60].mxu0 %vm978_vm3, %v3046_v26 }
0x156b   :  { %6184 = vmatpush3.bf16.xpose.msk.msra.mxu0 %vm7045_vm4, %v6182_v31  ;;  %6045 = vmatprep.mubr.msk.f32.mxu0 %vm6645_vm2, %v6646_v22 }
0x156c   :  { %6043 = vmatprep.subr.mxu0 %v6646_v22 }
0x1573   :  { %6044 = vmatpush3.xpose.msk.msra.mxu0 %vm978_vm3, %v3172_v33 }
0x1576   :  { %6046 = vmatmul.mubr.msk.f32.vlgmr.msra.gmra.mrb[64].mxu0 %vm978_vm3, %v3162_v34 }
0x1577   :  { %6048 = vmatprep.mubr.msk.f32.mxu0 %vm6645_vm2, %v6646_v22 }
0x157a   :  { %6049 = vmatmul.mubr.msk.f32.gmra.mrb[66].mxu0 %vm978_vm3, %v3164_v35 }
0x157b   :  { %6051 = vmatprep.mubr.msk.f32.mxu0 %vm6645_vm2, %v6646_v22 }
0x157e   :  { %6052 = vmatmul.mubr.msk.f32.gmra.mrb[68].mxu0 %vm978_vm3, %v3166_v36 }
0x1631   :  { %v6037_v40 = vpop.f32.mrb[76].mxu1 }
0x1632   :  { %v3147_v50 = vpop.f32.mrb[77].mxu1 }
0x1633   :  { %v6038_v30 = vpop.f32.mrb[78].mxu1 }
0x1634   :  { %v3150_v46 = vpop.f32.mrb[79].mxu1 }
0x163d   :  { %v6031_v42 = vpop.f32.mrb[60].mxu0 }
0x163e   :  { %v7581_v48 = vadd.f32 %v6037_v40, %v6031_v42  ;;  %v3090_v49 = vpop.f32.mrb[61].mxu0 }
0x163f   :  { %v7583_v51 = vadd.f32 %v3147_v50, %v3090_v49  ;;  %v6032_v38 = vpop.f32.mrb[62].mxu0 }
0x1640   :  { %v3093_v52 = vpop.f32.mrb[63].mxu0 }
0x1641   :  { %v7585_v53 = vadd.f32 %v3150_v46, %v3093_v52 }
0x1649   :  { %v3251_v57 = vpop.f32.mrb[64].mxu0 }
0x164a   :  { %v3252_v60 = vadd.f32 %v7481_v10, %v3251_v57  ;;  %v6047_v55 = vpop.f32.mrb[65].mxu0 }
0x164c   :  { %v3265_v8 = vsel %vm1071_vm5, %v3252_v60, -inf }
0x164d   :  { %3266 = vmax.xlane.f32.xlu1 %v3265_v8  ;;  %v3256_v61 = vpop.f32.mrb[66].mxu0 }
0x164e   :  { %v3257_v62 = vadd.f32 %v7488_v1, %v3256_v61  ;;  %v6050_v47 = vpop.f32.mrb[67].mxu0 }
0x1650   :  { %v3268_v20 = vsel %vm1071_vm5, %v3257_v62, -inf }
0x1651   :  { %3269 = vmax.xlane.f32.xlu0 %v3268_v20  ;;  %v3261_v63 = vpop.f32.mrb[68].mxu0  ;;  %v5291_v20 = vld [vmem:[%s8039_s5 + $0x18] sm:$0xf] }
0x1652   :  { %v3262_v0 = vadd.f32 %v7495_v17, %v3261_v63  ;;  %v6053_v19 = vpop.f32.mrb[69].mxu0  ;;  %6205 = vmatprep.subr.msk.bf16.mxu0 %vm1454_vm8, %v5291_v20  ;;  %v3407_v63 = vsel %vm1454_vm8, %v5291_v20, 0 }
0x1653   :  { %6070 = vmatpush3.bf16.msra.mxu0 %v3407_v63 }
0x1654   :  { %v3271_v2 = vsel %vm1078_vm6, %v3262_v0, -inf  ;;  %6192 = vmatprep.subr.bf16.mxu0 %v6642_v13 }
0x1655   :  { %3272 = vmax.xlane.f32.xlu0 %v3271_v2 }
0x165e   :  { %6289 = vrot.lane.b32.xlu1 %v7436_v45, %s6652_s30 }
0x16da   :  { %v3267_v3 = vpop.xlane.xlu1 %3266 }
0x16db   :  { %v3274_v5 = vsub.f32 %v3252_v60, %v3267_v3 }
0x16dd   :  { %v3277_v9 = vmul.f32 1.442695, %v3274_v5 }
0x16de   :  { %v6290_v14 = vpop.permute.xlu1 %6289  ;;  %v3270_v16 = vpop.xlane.xlu0 %3269 }
0x16df   :  { %6559 = vpow2.f32 %v3277_v9  ;;  %v6292_v18 = vunpack.i.h.bf16 %v6290_v14  ;;  %v6291_v21 = vunpack.i.l.bf16 %v6290_v14  ;;  %v3275_v23 = vsub.f32 %v3257_v62, %v3270_v16 }
0x16e1   :  { %v6186_v25 = vpack.c.bf16 %v6292_v18, %v6291_v21  ;;  %v3279_v15 = vmul.f32 1.442695, %v3275_v23 }
0x16e2   :  { %v3273_v4 = vpop.xlane.xlu0 %3272 }
0x16e3   :  { %6561 = vpow2.f32 %v3279_v15  ;;  %v3276_v6 = vsub.f32 %v3262_v0, %v3273_v4  ;;  %6187 = vmatpush3.bf16.msra.mxu1 %v6186_v25 }
0x16e4   :  { %6058 = vmatprep.subr.mxu1 %v6646_v22 }
0x16e5   :  { %v3281_v26 = vmul.f32 1.442695, %v3276_v6 }
0x16e7   :  { %6563 = vpow2.f32 %v3281_v26 }
0x16e9   :  { %v6560_v27 = vpop.eup %6559 }
0x16ea   :  { %v3283_v31 = vsel %vm1071_vm5, %v6560_v27, 0.0 }
0x16eb   :  { %3284 = vadd.xlane.f32.xlu0 %v3283_v31 }
0x16ed   :  { %v6562_v33 = vpop.eup %6561 }
0x16ee   :  { %v3286_v34 = vsel %vm1071_vm5, %v6562_v33, 0.0 }
0x16ef   :  { %3287 = vadd.xlane.f32.xlu1 %v3286_v34 }
0x16f1   :  { %v6564_v35 = vpop.eup %6563 }
0x16f2   :  { %v3289_v36 = vsel %vm1078_vm6, %v6564_v35, 0.0 }
0x16f3   :  { %3290 = vadd.xlane.f32.xlu0 %v3289_v36 }
0x1700   :  { %6294 = vrot.lane.b32.xlu1 %v7436_v45, %s6653_s14 }
0x1704   :  { %3470 = vrot.lane.b32.xlu1 %v7426_v37, %s6653_s14 }
0x1708   :  { %3460 = vrot.lane.b32.xlu1 %v7430_v56, %s6654_s15 }
0x1709   :  { %3302 = vrot.lane.b32.xlu0 %v7426_v37, %s6652_s30 }
0x170c   :  { %3464 = vrot.lane.b32.xlu1 %v7426_v37, %s6654_s15 }
0x170d   :  { %3462 = vrot.lane.b32.xlu0 %v7432_v58, %s6654_s15 }
0x1778   :  { %v3285_v40 = vpop.xlane.xlu0 %3284 }
0x1779   :  { %6565 = vrcp.f32 %v3285_v40 }
0x177c   :  { %v3288_v50 = vpop.xlane.xlu1 %3287 }
0x177d   :  { %6567 = vrcp.f32 %v3288_v50 }
0x1780   :  { %v3291_v30 = vpop.xlane.xlu0 %3290  ;;  %v6295_v42 = vpop.permute.xlu1 %6294 }
0x1781   :  { %6569 = vrcp.f32 %v3291_v30  ;;  %v6297_v56 = vunpack.i.h.bf16 %v6295_v42  ;;  %v6296_v52 = vunpack.i.l.bf16 %v6295_v42 }
0x1783   :  { %v6566_v46 = vpop.eup %6565  ;;  %v6189_v60 = vpack.c.bf16 %v6297_v56, %v6296_v52 }
0x1784   :  { %v3295_v49 = vmul.f32 %v6566_v46, %v6560_v27  ;;  %v3303_v38 = vpop.permute.xlu0 %3302  ;;  %v3471_v61 = vpop.permute.xlu1 %3470 }
0x1785   :  { %6059 = vmatpush3.msk.msra.mxu1 %vm1123_vm7, %v3303_v38 }
0x1786   :  { %6061 = vmatmul.mubr.msk.f32.vlgmr.msra.gmra.mrb[80].mxu1 %vm1071_vm5, %v3295_v49  ;;  %6188 = vmatprep.subr.bf16.mxu1 %v6642_v13 }
0x1787   :  { %v6568_v57 = vpop.eup %6567  ;;  %6063 = vmatprep.mubr.msk.f32.mxu1 %vm6645_vm2, %v6646_v22 }
0x1788   :  { %v3296_v58 = vmul.f32 %v6568_v57, %v6562_v33  ;;  %v3461_v62 = vpop.permute.xlu1 %3460  ;;  %v3463_v47 = vpop.permute.xlu0 %3462 }
0x178a   :  { %6064 = vmatmul.mubr.msk.f32.gmra.mrb[82].mxu1 %vm1071_vm5, %v3296_v58 }
0x178b   :  { %v6570_v55 = vpop.eup %6569  ;;  %6066 = vmatprep.mubr.msk.f32.mxu1 %vm6645_vm2, %v6646_v22 }
0x178c   :  { %6191 = vmatpush3.bf16.xpose.msk.msra.mxu1 %vm7045_vm4, %v6189_v60  ;;  %v3297_v8 = vmul.f32 %v6570_v55, %v6564_v35  ;;  %v3465_v28 = vpop.permute.xlu1 %3464 }
0x178d   :  { %6079 = vmatprep.subr.mxu1 %v6646_v22 }
0x178e   :  { %6067 = vmatmul.mubr.msk.f32.gmra.mrb[84].mxu1 %vm1071_vm5, %v3297_v8 }
0x178f   :  { %6081 = vmatprep.mubr.msk.f32.mxu1 %vm6645_vm2, %v6646_v22 }
0x1794   :  { %6080 = vmatpush3.xpose.msk.msra.mxu1 %vm978_vm3, %v3471_v61 }
0x1797   :  { %6082 = vmatmul.mubr.msk.f32.vlgmr.msra.gmra.mrb[86].mxu1 %vm978_vm3, %v3461_v62 }
0x1798   :  { %6084 = vmatprep.mubr.msk.f32.mxu1 %vm6645_vm2, %v6646_v22 }
0x179b   :  { %6085 = vmatmul.mubr.msk.f32.gmra.mrb[88].mxu1 %vm978_vm3, %v3463_v47 }
0x179c   :  { %6087 = vmatprep.mubr.msk.f32.mxu1 %vm6645_vm2, %v6646_v22 }
0x179f   :  { %6088 = vmatmul.mubr.msk.f32.gmra.mrb[90].mxu1 %vm978_vm3, %v3465_v28 }
0x1859   :  { %v3383_v0 = vpop.f32.mrb[80].mxu1 }
0x185a   :  { %v6062_v19 = vpop.f32.mrb[81].mxu1 }
0x185d   :  { %v3388_v2 = vpop.f32.mrb[82].mxu1 }
0x185e   :  { %v3398_v3 = vpack.c.bf16 %v3388_v2, %v3383_v0  ;;  %v6065_v5 = vpop.f32.mrb[83].mxu1 }
0x1860   :  { %6071 = vmatprep.mubr.msk.bf16.mxu0 %vm978_vm3, %v3398_v3 }
0x1861   :  { %v3393_v9 = vpop.f32.mrb[84].mxu1 }
0x1862   :  { %v3399_v14 = vpack.c.bf16 %v3393_v9, %v3393_v9  ;;  %v6068_v16 = vpop.f32.mrb[85].mxu1  ;;  %v5304_v9 = vld [vmem:[%s8039_s5 + $0x1c] sm:$0xf] }
0x1863   :  { %6206 = vmatprep.subr.msk.bf16.mxu1 %vm1454_vm8, %v5304_v9 }
0x1864   :  { %6072 = vmatmul.mubr.msk.bf16.vlgmr.msra.gmra.mrb[72].mxu0 %vm978_vm3, %v3399_v14  ;;  %v3706_v14 = vsel %vm1454_vm8, %v5304_v9, 0 }
0x1865   :  { %6096 = vmatprep.mubr.msk.f32.mxu0 %vm6645_vm2, %v6646_v22  ;;  %6106 = vmatpush3.bf16.msra.mxu1 %v3706_v14 }
0x186a   :  { %v3550_v18 = vpop.f32.mrb[86].mxu1 }
0x186b   :  { %v3551_v21 = vadd.f32 %v7481_v10, %v3550_v18  ;;  %v6083_v23 = vpop.f32.mrb[87].mxu1 }
0x186d   :  { %v3564_v13 = vsel %vm1071_vm5, %v3551_v21, -inf }
0x186e   :  { %3565 = vmax.xlane.f32.xlu0 %v3564_v13  ;;  %v3555_v25 = vpop.f32.mrb[88].mxu1 }
0x186f   :  { %v3556_v15 = vadd.f32 %v7488_v1, %v3555_v25  ;;  %v6086_v4 = vpop.f32.mrb[89].mxu1 }
0x1871   :  { %v3567_v6 = vsel %vm1071_vm5, %v3556_v15, -inf }
0x1872   :  { %3568 = vmax.xlane.f32.xlu1 %v3567_v6  ;;  %v3560_v26 = vpop.f32.mrb[90].mxu1 }
0x1873   :  { %v3561_v27 = vadd.f32 %v7495_v17, %v3560_v26  ;;  %v6089_v31 = vpop.f32.mrb[91].mxu1 }
0x1874   :  { %v3765_v31 = vrot.slane %v7414_v7, %v7298_v41 }
0x1875   :  { %v3570_v33 = vsel %vm1078_vm6, %v3561_v27, -inf }
0x1876   :  { %3571 = vmax.xlane.f32.xlu0 %v3570_v33 }
0x18fb   :  { %v3566_v34 = vpop.xlane.xlu0 %3565 }
0x18fc   :  { %v3573_v10 = vsub.f32 %v3551_v21, %v3566_v34 }
0x18fe   :  { %v3576_v35 = vmul.f32 1.442695, %v3573_v10 }
0x18ff   :  { %v3569_v36 = vpop.xlane.xlu1 %3568 }
0x1900   :  { %6571 = vpow2.f32 %v3576_v35  ;;  %v3574_v40 = vsub.f32 %v3556_v15, %v3569_v36 }
0x1902   :  { %v3578_v50 = vmul.f32 1.442695, %v3574_v40 }
0x1903   :  { %v3572_v30 = vpop.xlane.xlu0 %3571 }
0x1904   :  { %6573 = vpow2.f32 %v3578_v50  ;;  %v3575_v1 = vsub.f32 %v3561_v27, %v3572_v30 }
0x1906   :  { %v3580_v46 = vmul.f32 1.442695, %v3575_v1 }
0x1908   :  { %6575 = vpow2.f32 %v3580_v46 }
0x190a   :  { %v6572_v42 = vpop.eup %6571 }
0x190b   :  { %v3582_v49 = vsel %vm1071_vm5, %v6572_v42, 0.0 }
0x190c   :  { %3583 = vadd.xlane.f32.xlu0 %v3582_v49 }
0x190e   :  { %v6574_v17 = vpop.eup %6573 }
0x190f   :  { %v3585_v38 = vsel %vm1071_vm5, %v6574_v17, 0.0 }
0x1910   :  { %3586 = vadd.xlane.f32.xlu0 %v3585_v38 }
0x1912   :  { %v6576_v56 = vpop.eup %6575 }
0x1913   :  { %v3588_v52 = vsel %vm1078_vm6, %v6576_v56, 0.0 }
0x1914   :  { %3589 = vadd.xlane.f32.xlu1 %v3588_v52 }
0x1925   :  { %3601 = vrot.lane.b32.xlu1 %v7426_v37, %s6655_s20 }
0x1926   :  { %6299 = vrot.lane.b32.xlu0 %v7436_v45, %s6655_s20 }
0x1937   :  { %v6073_v57 = vpop.f32.mrb[72].mxu0 }
0x1938   :  { %v3459_v58 = vadd.f32 %v6073_v57, %v7581_v48  ;;  %v3443_v60 = vpop.f32.mrb[73].mxu0 }
0x1939   :  { %v3457_v55 = vadd.f32 %v3443_v60, %v7583_v51  ;;  %v6074_v8 = vpop.f32.mrb[74].mxu0 }
0x193a   :  { %v3446_v61 = vpop.f32.mrb[75].mxu0 }
0x193b   :  { %v3458_v62 = vadd.f32 %v3446_v61, %v7585_v53 }
0x1999   :  { %v3584_v47 = vpop.xlane.xlu0 %3583 }
0x199a   :  { %6577 = vrcp.f32 %v3584_v47  ;;  %v6389_v47 = vld [vmem:[%s8040_s6 + $0x10] sm:$0xff]  }
0x199d   :  { %v3587_v28 = vpop.xlane.xlu0 %3586 }
0x199e   :  { %6579 = vrcp.f32 %v3587_v28  ;;  %v6390_v28 = vld [vmem:[%s8040_s6 + $0x18] sm:$0xff]  }
0x19a1   :  { %v3590_v20 = vpop.xlane.xlu1 %3589  ;;  %v6300_v63 = vpop.permute.xlu0 %6299 }
0x19a2   :  { %v6302_v37 = vunpack.i.h.bf16 %v6300_v63  ;;  %v6301_v0 = vunpack.i.l.bf16 %v6300_v63  ;;  %6581 = vrcp.f32 %v3590_v20  ;;  %v6391_v20 = vld [vmem:[%s8041_s7 + $0x40] sm:$0xff]   ;;  %v6392_v63 = vld [vmem:[%s8041_s7 + $0x48] sm:$0xff]  }
0x19a3   :  { %6119 = vmatprep.subr.bf16.mxu1 %v6391_v20 }
0x19a4   :  { %v6193_v45 = vpack.c.bf16 %v6302_v37, %v6301_v0  ;;  %v6578_v19 = vpop.eup %6577 }
0x19a5   :  { %v3594_v48 = vmul.f32 %v6578_v19, %v6572_v42  ;;  %v3602_v51 = vpop.permute.xlu1 %3601 }
0x19a6   :  { %6194 = vmatpush3.bf16.msra.mxu0 %v6193_v45 }
0x19a7   :  { %6094 = vmatprep.subr.mxu0 %v6646_v22 }
0x19a8   :  { %v6580_v2 = vpop.eup %6579 }
0x19a9   :  { %v3595_v53 = vmul.f32 %v6580_v2, %v6574_v17 }
0x19aa   :  { %6095 = vmatpush3.msk.msra.mxu0 %vm1123_vm7, %v3602_v51 }
0x19ab   :  { %6097 = vmatmul.mubr.msk.f32.vlgmr.msra.gmra.mrb[70].mxu0 %vm1071_vm5, %v3594_v48  ;;  %6111 = vmatprep.subr.bf16.mxu0 %v6389_v47 }
0x19ac   :  { %6099 = vmatprep.mubr.msk.f32.mxu0 %vm6645_vm2, %v6646_v22  ;;  %v6582_v3 = vpop.eup %6581  ;;  %6112 = vmatpush3.bf16.msra.mxu0 %v6389_v47 }
0x19ad   :  { %v3596_v5 = vmul.f32 %v6582_v3, %v6576_v56  ;;  %6113 = vmatprep.subr.bf16.mxu0 %v6390_v28 }
0x19af   :  { %6100 = vmatmul.mubr.msk.f32.gmra.mrb[76].mxu0 %vm1071_vm5, %v3595_v53 }
0x19b0   :  { %6102 = vmatprep.mubr.msk.f32.mxu0 %vm6645_vm2, %v6646_v22  ;;  %6114 = vmatpush3.bf16.msra.mxu0 %v6390_v28 }
0x19b3   :  { %6103 = vmatmul.mubr.msk.f32.gmra.mrb[78].mxu0 %vm1071_vm5, %v3596_v5  ;;  %v7705_v5 = vld [vmem:[%s8042_s8 + $0x8] sm:$0xff] }
0x19b4   :  { %v3811_v9 = vrot.slane %v7705_v5, %v7336_v29 }
0x1a7e   :  { %v3682_v16 = vpop.f32.mrb[70].mxu0 }
0x1a7f   :  { %v6098_v18 = vpop.f32.mrb[71].mxu0 }
0x1a82   :  { %v3687_v21 = vpop.f32.mrb[76].mxu0 }
0x1a83   :  { %v3697_v23 = vpack.c.bf16 %v3687_v21, %v3682_v16  ;;  %v6101_v13 = vpop.f32.mrb[77].mxu0 }
0x1a84   :  { %v3818_v13 = vrot.slane %v7705_v5, %v7346_v32 }
0x1a85   :  { %6107 = vmatprep.mubr.msk.bf16.mxu1 %vm978_vm3, %v3697_v23 }
0x1a86   :  { %v3692_v22 = vpop.f32.mrb[78].mxu0 }
0x1a87   :  { %v3698_v25 = vpack.c.bf16 %v3692_v22, %v3692_v22  ;;  %v6104_v15 = vpop.f32.mrb[79].mxu0 }
0x1a89   :  { %6108 = vmatmul.mubr.msk.bf16.vlgmr.msra.gmra.mrb[92].mxu1 %vm978_vm3, %v3698_v25 }
0x1a8a   :  { %6120 = vmatpush3.bf16.msra.mxu1 %v6391_v20 }
0x1a8b   :  { %6121 = vmatprep.subr.bf16.mxu1 %v6392_v63 }
0x1a8e   :  { %6122 = vmatpush3.bf16.msra.mxu1 %v6392_v63 }
0x1b5c   :  { %v6109_v4 = vpop.f32.mrb[92].mxu1 }
0x1b5d   :  { %v3758_v6 = vadd.f32 %v6109_v4, %v3459_v58  ;;  %v3742_v26 = vpop.f32.mrb[93].mxu1 }
0x1b5e   :  { %v3756_v27 = vadd.f32 %v3742_v26, %v3457_v55  ;;  %v6110_v33 = vpop.f32.mrb[94].mxu1 }
0x1b5f   :  { %v3745_v34 = vpop.f32.mrb[95].mxu1  ;;  %v3761_v36 = vadd.f32 %v3758_v6, %v7388_v43 }
0x1b60   :  { %v3759_v10 = vadd.f32 %v3756_v27, %v7385_v39  ;;  %v3757_v35 = vadd.f32 %v3745_v34, %v3458_v62  ;;  %v6393_v34 = vld [vmem:[%s8041_s7 + $0x50] sm:$0xff]  }
0x1b61   :  { %v3768_v42 = vadd.f32 %v3765_v31, %v3761_v36  ;;  %6123 = vmatprep.subr.bf16.mxu1 %v6393_v34  ;;  %v6396_v36 = vld [vmem:[%s8041_s7 + $0x68] sm:$0xff]  }
0x1b62   :  { %v7679_v40 = vadd.f32 %v3765_v31, %v3759_v10  ;;  %v3760_v50 = vadd.f32 %v3757_v35, %v7390_v44  ;;  %6124 = vmatpush3.bf16.msra.mxu1 %v6393_v34  ;;  %v6394_v10 = vld [vmem:[%s8041_s7 + $0x58] sm:$0xff]   ;;  %v6395_v35 = vld [vmem:[%s8041_s7 + $0x60] sm:$0xff]  }
0x1b63   :  { %v3775_v7 = vsel %vm844_vm1, %v3768_v42, 0.0  ;;  %6125 = vmatprep.subr.bf16.mxu1 %v6394_v10 }
0x1b64   :  { %v3769_v30 = vsel %vm837_vm0, %v7679_v40, 0.0  ;;  %v3767_v1 = vadd.f32 %v3765_v31, %v3760_v50  ;;  %v6397_v50 = vld [vmem:[%s8041_s7 + $0x70] sm:$0xff]  }
0x1b65   :  { %3770 = vadd.xlane.f32.xlu1 %v3769_v30  ;;  %v6398_v30 = vld [vmem:[%s8041_s7 + $0x78] sm:$0xff]  }
0x1b66   :  { %v3772_v46 = vsel %vm837_vm0, %v3767_v1, 0.0  ;;  %6126 = vmatpush3.bf16.msra.mxu1 %v6394_v10  ;;  %v6399_v10 = vld [vmem:[%s8045_s11 + $0x40] sm:$0xff]  }
0x1b67   :  { %3773 = vadd.xlane.f32.xlu0 %v3772_v46  ;;  %6127 = vmatprep.subr.bf16.mxu1 %v6395_v35 }
0x1b6a   :  { %6128 = vmatpush3.bf16.msra.mxu1 %v6395_v35  ;;  %v6400_v35 = vld [vmem:[%s8045_s11] sm:$0xff]  }
0x1b6b   :  { %3776 = vadd.xlane.f32.xlu0 %v3775_v7  ;;  %6129 = vmatprep.subr.bf16.mxu1 %v6396_v36 }
0x1b6e   :  { %6130 = vmatpush3.bf16.msra.mxu1 %v6396_v36  ;;  %v6401_v36 = vld [vmem:[%s8045_s11 + $0x48] sm:$0xff]  }
0x1b6f   :  { %6131 = vmatprep.subr.bf16.mxu1 %v6397_v50 }
0x1b72   :  { %6132 = vmatpush3.bf16.msra.mxu1 %v6397_v50  ;;  %v6402_v50 = vld [vmem:[%s8045_s11 + $0x8] sm:$0xff]  }
0x1b73   :  { %6133 = vmatprep.subr.bf16.mxu1 %v6398_v30 }
0x1b76   :  { %6134 = vmatpush3.bf16.msra.mxu1 %v6398_v30  ;;  %v6403_v30 = vld [vmem:[%s8045_s11 + $0x50] sm:$0xff]  }
0x1b77   :  { %5691 = vmatprep.subr.bf16.mxu1 %v6399_v10  ;;  %v6424_v10 = vld [vmem:[%s8045_s11 + $0xe8] sm:$0xff]  }
0x1bf2   :  { %v3771_v39 = vpop.xlane.xlu1 %3770 }
0x1bf3   :  { %v3778_v49 = vmul.f32 0.03125, %v3771_v39 }
0x1bf4   :  { %v3774_v17 = vpop.xlane.xlu0 %3773 }
0x1bf5   :  { %v3781_v43 = vsub.f32 %v7679_v40, %v3778_v49  ;;  %v3779_v38 = vmul.f32 0.03125, %v3774_v17 }
0x1bf7   :  { %v3782_v56 = vsub.f32 %v3767_v1, %v3779_v38  ;;  %v3784_v44 = vmul.f32 %v3781_v43, %v3781_v43  ;;  %v3832_v1 = vrot.slane %v7705_v5, %v7372_v24 }
0x1bf8   :  { %v3777_v52 = vpop.xlane.xlu0 %3776 }
0x1bf9   :  { %v3780_v57 = vmul.f32 0.03125, %v3777_v52  ;;  %v3787_v58 = vsel %vm837_vm0, %v3784_v44, 0.0  ;;  %v3785_v60 = vmul.f32 %v3782_v56, %v3782_v56 }
0x1bfa   :  { %3788 = vadd.xlane.f32.xlu1 %v3787_v58 }
0x1bfb   :  { %v3783_v55 = vsub.f32 %v3768_v42, %v3780_v57  ;;  %v3790_v8 = vsel %vm837_vm0, %v3785_v60, 0.0 }
0x1bfc   :  { %3791 = vadd.xlane.f32.xlu0 %v3790_v8 }
0x1bfd   :  { %v3786_v61 = vmul.f32 %v3783_v55, %v3783_v55 }
0x1bff   :  { %v3793_v62 = vsel %vm844_vm1, %v3786_v61, 0.0 }
0x1c00   :  { %3794 = vadd.xlane.f32.xlu1 %v3793_v62 }
0x1c87   :  { %v3789_v37 = vpop.xlane.xlu1 %3788 }
0x1c88   :  { %v3796_v0 = vmul.f32 0.03125, %v3789_v37 }
0x1c89   :  { %v3792_v45 = vpop.xlane.xlu0 %3791 }
0x1c8a   :  { %v3799_v19 = vadd.f32 1e-06, %v3796_v0  ;;  %v3797_v48 = vmul.f32 0.03125, %v3792_v45 }
0x1c8c   :  { %6583 = vrsqrt.f32 %v3799_v19  ;;  %v3800_v51 = vadd.f32 1e-06, %v3797_v48  ;;  %v4031_v19 = vrot.slane %v7705_v5, %v7379_v12  ;;  %v4058_v5 = vld [vmem:[%s8043_s9] sm:$0xff] }
0x1c8d   :  { %v3795_v2 = vpop.xlane.xlu1 %3794 }
0x1c8e   :  { %6585 = vrsqrt.f32 %v3800_v51  ;;  %v3798_v53 = vmul.f32 0.03125, %v3795_v2 }
0x1c90   :  { %v3801_v3 = vadd.f32 1e-06, %v3798_v53 }
0x1c92   :  { %6587 = vrsqrt.f32 %v3801_v3 }
0x1c96   :  { %v6584_v14 = vpop.eup %6583 }
0x1c97   :  { %v3805_v16 = vmul.f32 %v6584_v14, %v3781_v43 }
0x1c98   :  { %v6586_v18 = vpop.eup %6585 }
0x1c99   :  { %v3806_v21 = vmul.f32 %v6586_v18, %v3782_v56  ;;  %v3812_v23 = vmul.f32 %v3811_v9, %v3805_v16 }
0x1c9b   :  { %v3813_v22 = vmul.f32 %v3811_v9, %v3806_v21  ;;  %v3819_v4 = vadd.f32 %v3818_v13, %v3812_v23 }
0x1c9c   :  { %v6588_v25 = vpop.eup %6587 }
0x1c9d   :  { %v3807_v15 = vmul.f32 %v6588_v25, %v3783_v55  ;;  %v3820_v6 = vadd.f32 %v3818_v13, %v3813_v22  ;;  %v4066_v25 = vld [vmem:[%s8043_s9 + $0x40] sm:$0xff] }
0x1c9f   :  { %v3814_v26 = vmul.f32 %v3811_v9, %v3807_v15  ;;  %v3822_v27 = vpack.c.bf16 %v3820_v6, %v3819_v4  ;;  %v4070_v15 = vld [vmem:[%s8043_s9 + $0x60] sm:$0xff] }
0x1ca0   :  { %v5347_v4 = vcombine.low %v4066_v25, %v4070_v15  ;;  %v5348_v6 = vcombine.high %v4066_v25, %v4070_v15  ;;  %v6415_v25 = vld [vmem:[%s8045_s11 + $0x68] sm:$0xff]   ;;  %v6416_v15 = vld [vmem:[%s8045_s11 + $0xd8] sm:$0xff]  }
0x1ca1   :  { %6115 = vmatprep.mubr.msk.bf16.mxu0 %vm837_vm0, %v3822_v27  ;;  %v3821_v31 = vadd.f32 %v3818_v13, %v3814_v26  ;;  %v6656_v26 = vmov 0   ;;  %v4059_v27 = vld [vmem:[%s8043_s9 + $0x8] sm:$0xff] }
0x1ca3   :  { %v3823_v33 = vpack.c.bf16 %v3821_v31, %v3821_v31  ;;  %v4063_v31 = vld [vmem:[%s8043_s9 + $0x28] sm:$0xff] }
0x1ca4   :  { %v5341_v34 = vcombine.low %v4059_v27, %v4063_v31 }
0x1ca5   :  { %6116 = vmatmul.mubr.msk.bf16.vlgmr.msra.gmra.mrb[80].mxu0 %vm837_vm0, %v3823_v33  ;;  %v5342_v33 = vcombine.high %v4059_v27, %v4063_v31  ;;  %v6420_v27 = vld [vmem:[%s8045_s11 + $0xe0] sm:$0xff]   ;;  %v6421_v31 = vld [vmem:[%s8045_s11 + $0x30] sm:$0xff]  }
0x1ca6   :  { %4231 = vmatprep.mubr.bf16.mxu0 %v6656_v26 }
0x1d78   :  { %v6117_v46 = vpop.f32.mrb[80].mxu0 }
0x1d79   :  { %v3894_v42 = vadd.f32 %v6117_v46, %v3832_v1  ;;  %v3885_v7 = vpop.f32.mrb[81].mxu0 }
0x1d7a   :  { %v3886_v39 = vadd.f32 %v3885_v7, %v3832_v1  ;;  %v6118_v49 = vpop.f32.mrb[82].mxu0  ;;  %v7775_v7 = vld [vmem:[%s8046_s12] sm:$0xff] }
0x1d7b   :  { %v3904_v17 = vmul.f32 0.70710677, %v3894_v42  ;;  %v3888_v43 = vpop.f32.mrb[83].mxu0  ;;  %v3901_v8 = vmul.f32 0.5, %v3894_v42 }
0x1d7c   :  { %v3902_v38 = vmul.f32 0.70710677, %v3886_v39  ;;  %v3889_v56 = vadd.f32 %v3888_v43, %v3832_v1  ;;  %v3899_v61 = vmul.f32 0.5, %v3886_v39  ;;  %v4050_v39 = vrot.slane %v7775_v7, %v6992_v54 }
0x1d7d   :  { %6589 = verf.f32 %v3904_v17  ;;  %v4055_v43 = vrot.slane %v7775_v7, %v7002_v59 }
0x1d7e   :  { %6591 = verf.f32 %v3902_v38  ;;  %v3903_v44 = vmul.f32 0.70710677, %v3889_v56  ;;  %v3900_v62 = vmul.f32 0.5, %v3889_v56  ;;  %v4067_v56 = vld [vmem:[%s8043_s9 + $0x48] sm:$0xff] }
0x1d80   :  { %6593 = verf.f32 %v3903_v44  ;;  %v4071_v44 = vld [vmem:[%s8043_s9 + $0x68] sm:$0xff] }
0x1d87   :  { %v6590_v52 = vpop.eup %6589 }
0x1d88   :  { %v6592_v57 = vpop.eup %6591  ;;  %v3910_v58 = vadd.f32 1.0, %v6590_v52 }
0x1d89   :  { %v3908_v60 = vadd.f32 1.0, %v6592_v57 }
0x1d8a   :  { %v6594_v55 = vpop.eup %6593  ;;  %v3913_v28 = vmul.f32 %v3910_v58, %v3901_v8  ;;  %v5350_v58 = vcombine.high %v4067_v56, %v4071_v44  ;;  %v5349_v8 = vcombine.low %v4067_v56, %v4071_v44 }
0x1d8b   :  { %v3909_v47 = vadd.f32 1.0, %v6594_v55  ;;  %v3911_v20 = vmul.f32 %v3908_v60, %v3899_v61  ;;  %v4060_v60 = vld [vmem:[%s8043_s9 + $0x10] sm:$0xff] }
0x1d8c   :  { %v3915_v0 = vpack.c.bf16 %v3913_v28, %v3913_v28  ;;  %v4064_v55 = vld [vmem:[%s8043_s9 + $0x30] sm:$0xff] }
0x1d8d   :  { %v3912_v63 = vmul.f32 %v3909_v47, %v3900_v62  ;;  %v5344_v61 = vcombine.high %v4060_v60, %v4064_v55  ;;  %v4068_v62 = vld [vmem:[%s8043_s9 + $0x50] sm:$0xff]  ;;  %v5343_v28 = vcombine.low %v4060_v60, %v4064_v55 }
0x1d8e   :  { %v4072_v47 = vld [vmem:[%s8043_s9 + $0x70] sm:$0xff] }
0x1d8f   :  { %v3914_v37 = vpack.c.bf16 %v3912_v63, %v3911_v20  ;;  %v5352_v20 = vcombine.high %v4068_v62, %v4072_v47  ;;  %v4061_v63 = vld [vmem:[%s8043_s9 + $0x18] sm:$0xff] }
0x1d91   :  { %6135 = vmatprep.mubr.bf16.mxu1 %v3914_v37  ;;  %v4065_v37 = vld [vmem:[%s8043_s9 + $0x38] sm:$0xff] }
0x1d92   :  { %6136 = vmatmul.mubr.bf16.vlgmr.msra.gmra.mrb[96].mxu1 %v3915_v0  ;;  %v5351_v0 = vcombine.low %v4068_v62, %v4072_v47 }
0x1d93   :  { %5692 = vmatpush3.bf16.msra.mxu1 %v6400_v35  ;;  %v6425_v35 = vld [vmem:[%s8045_s11 + $0x38] sm:$0xff]  }
0x1d94   :  { %5693 = vmatprep.subr.bf16.mxu1 %v6401_v36  ;;  %v6426_v36 = vld [vmem:[%s8045_s11 + $0xa8] sm:$0xff]  }
0x1d97   :  { %5694 = vmatpush3.bf16.msra.mxu1 %v6402_v50  ;;  %v6427_v50 = vld [vmem:[%s8045_s11 + $0xf0] sm:$0xff]  }
0x1d98   :  { %5695 = vmatprep.subr.bf16.mxu1 %v6403_v30  ;;  %v6428_v30 = vld [vmem:[%s8045_s11 + $0x140] sm:$0xff]  }
0x1e65   :  { %v6137_v45 = vpop.f32.mrb[96].mxu1 }
0x1e66   :  { %v4015_v48 = vpop.f32.mrb[97].mxu1  ;;  %v5346_v45 = vcombine.high %v4061_v63, %v4065_v37 }
0x1e67   :  { %v4027_v51 = vadd.f32 %v4015_v48, %v7679_v40  ;;  %v6138_v2 = vpop.f32.mrb[98].mxu1  ;;  %v4062_v40 = vld [vmem:[%s8043_s9 + $0x20] sm:$0xff]  ;;  %v4073_v48 = vld [vmem:[%s8043_s9 + $0x78] sm:$0xff] }
0x1e68   :  { %v4018_v53 = vpop.f32.mrb[99].mxu1  ;;  %v5340_v13 = vcombine.high %v4058_v5, %v4062_v40  ;;  %v5339_v22 = vcombine.low %v4058_v5, %v4062_v40  ;;  %v6411_v5 = vld [vmem:[%s8045_s11 + $0x60] sm:$0xff]   ;;  %v6412_v40 = vld [vmem:[%s8045_s11 + $0xd0] sm:$0xff]  }
0x1e69   :  { %v4032_v3 = vadd.f32 %v4031_v19, %v4027_v51  ;;  %v4069_v19 = vld [vmem:[%s8043_s9 + $0x58] sm:$0xff]  ;;  %v5345_v51 = vcombine.low %v4061_v63, %v4065_v37 }
0x1e6a   :  { %4199 = vmatprep.subr.bf16.mxu0 %v5340_v13  ;;  %v5354_v2 = vcombine.high %v4069_v19, %v4073_v48  ;;  %v5353_v53 = vcombine.low %v4069_v19, %v4073_v48  ;;  %v6413_v13 = vld [vmem:[%s8045_s11 + $0x20] sm:$0xff]  }
0x1e6b   :  { %v4034_v9 = vsel %vm844_vm1, %v4032_v3, 0.0  ;;  %4200 = vmatpush1.bf16.msra.mxu0 %v5339_v22  ;;  %v6414_v22 = vld [vmem:[%s8045_s11 + $0x90] sm:$0xff]  }
0x1e6c   :  { %4035 = vadd.xlane.f32.xlu0 %v4034_v9  ;;  %4201 = vmatprep.subr.bf16.mxu0 %v5348_v6  ;;  %v6405_v9 = vld [vmem:[%s8045_s11 + $0x10] sm:$0xff]   ;;  %v6418_v6 = vld [vmem:[%s8045_s11 + $0x98] sm:$0xff]  }
0x1e6d   :  { %5696 = vmatpush3.bf16.msra.mxu1 %v6405_v9 }
0x1e6f   :  { %4202 = vmatpush1.bf16.msra.mxu0 %v5347_v4  ;;  %v6417_v4 = vld [vmem:[%s8045_s11 + $0x28] sm:$0xff]  }
0x1e70   :  { %4240 = vmatprep.subr.bf16.mxu0 %v5342_v33  ;;  %v6422_v33 = vld [vmem:[%s8045_s11 + $0xa0] sm:$0xff]  }
0x1ef9   :  { %v4036_v14 = vpop.xlane.xlu0 %4035 }
0x1efa   :  { %v4037_v16 = vmul.f32 0.03125, %v4036_v14  ;;  %v6406_v14 = vld [vmem:[%s8045_s11 + $0x80] sm:$0xff]  }
0x1efc   :  { %v4038_v18 = vsub.f32 %v4032_v3, %v4037_v16  ;;  %v6404_v3 = vld [vmem:[%s8045_s11 + $0xc0] sm:$0xff]   ;;  %v6407_v16 = vld [vmem:[%s8045_s11 + $0x58] sm:$0xff]  }
0x1efd   :  { %5697 = vmatprep.subr.bf16.mxu1 %v6407_v16 }
0x1efe   :  { %v4039_v21 = vmul.f32 %v4038_v18, %v4038_v18 }
0x1f00   :  { %v4040_v23 = vsel %vm844_vm1, %v4039_v21, 0.0  ;;  %v6409_v21 = vld [vmem:[%s8045_s11 + $0x18] sm:$0xff]  }
0x1f01   :  { %4041 = vadd.xlane.f32.xlu1 %v4040_v23  ;;  %v6410_v23 = vld [vmem:[%s8045_s11 + $0x88] sm:$0xff]   ;;  %5698 = vmatpush3.bf16.msra.mxu1 %v6409_v21 }
0x1f02   :  { %5699 = vmatprep.subr.bf16.mxu1 %v6411_v5 }
0x1f05   :  { %5700 = vmatpush3.bf16.msra.mxu1 %v6413_v13 }
0x1f06   :  { %5701 = vmatprep.subr.bf16.mxu1 %v6415_v25  ;;  %v6432_v25 = vld [vmem:[%s8045_s11 + $0x148] sm:$0xff]  }
0x1f09   :  { %5702 = vmatpush3.bf16.msra.mxu1 %v6417_v4 }
0x1f8e   :  { %v4042_v1 = vpop.xlane.xlu1 %4041 }
0x1f8f   :  { %v4043_v46 = vmul.f32 0.03125, %v4042_v1  ;;  %v6429_v1 = vld [vmem:[%s8045_s11 + $0xb0] sm:$0xff]  }
0x1f91   :  { %v4044_v42 = vadd.f32 1e-06, %v4043_v46  ;;  %v6431_v46 = vld [vmem:[%s8045_s11 + $0xf8] sm:$0xff]  }
0x1f93   :  { %6595 = vrsqrt.f32 %v4044_v42  ;;  %v6433_v42 = vld [vmem:[%s8045_s11 + $0xb8] sm:$0xff]  }
0x1f9d   :  { %v6596_v49 = vpop.eup %6595 }
0x1f9e   :  { %v4046_v17 = vmul.f32 %v6596_v49, %v4038_v18  ;;  %v6408_v18 = vld [vmem:[%s8045_s11 + $0xc8] sm:$0xff]   ;;  %v7908_v49 = vld [vmem:[%s8044_s10] sm:$0xff] }
0x1f9f   :  { %v4095_v5 = vrot.slane %v7908_v49, %v7336_v29 }
0x1fa0   :  { %v4051_v38 = vmul.f32 %v4050_v39, %v4046_v17  ;;  %v6436_v39 = vld [vmem:[%s8045_s11 + $0x1c0] sm:$0xff]   ;;  %v4079_v17 = vrot.slane %v7908_v49, %v6992_v54 }
0x1fa2   :  { %v4056_v52 = vadd.f32 %v4055_v43, %v4051_v38  ;;  %v4083_v43 = vrot.slane %v7908_v49, %v7002_v59 }
0x1fa4   :  { %v4057_v57 = vpack.c.bf16 %v4056_v52, %v4056_v52 }
0x1fa6   :  { %5355 = vmatmul.mubr.msk.bf16.vlgmr.msra.gmra.mrb[84].mxu0 %vm837_vm0, %v4057_v57 }
0x1fa7   :  { %4241 = vmatpush1.bf16.msra.mxu0 %v5341_v34  ;;  %4272 = vmatprep.mubr.bf16.mxu0 %v6656_v26  ;;  %v6423_v34 = vld [vmem:[%s8045_s11 + $0x78] sm:$0xff]  }
0x1fa8   :  { %4242 = vmatprep.subr.bf16.mxu0 %v5350_v58 }
0x1fab   :  { %4243 = vmatpush1.bf16.msra.mxu0 %v5349_v8  ;;  %v4087_v8 = vrot.slane %v7908_v49, %v7009_v11 }
0x1fac   :  { %4281 = vmatprep.subr.bf16.mxu0 %v5344_v61  ;;  %v4091_v61 = vrot.slane %v7908_v49, %v7298_v41 }
0x1fae   :  { %5356 = vmatmul.mubr.msk.bf16.vlgmr.msra.gmra.mrb[88].mxu0 %vm837_vm0, %v4057_v57 }
0x1faf   :  { %4282 = vmatpush1.bf16.msra.mxu0 %v5343_v28  ;;  %4313 = vmatprep.mubr.bf16.mxu0 %v6656_v26 }
0x1fb0   :  { %4283 = vmatprep.subr.bf16.mxu0 %v5352_v20 }
0x1fb3   :  { %4284 = vmatpush1.bf16.msra.mxu0 %v5351_v0  ;;  %v4099_v0 = vrot.slane %v7908_v49, %v7346_v32  ;;  %v6430_v32 = vld [vmem:[%s8045_s11 + $0x100] sm:$0xff]  }
0x1fb4   :  { %4322 = vmatprep.subr.bf16.mxu0 %v5346_v45 }
0x1fb6   :  { %5357 = vmatmul.mubr.msk.bf16.vlgmr.msra.gmra.mrb[92].mxu0 %vm837_vm0, %v4057_v57 }
0x1fb7   :  { %4323 = vmatpush1.bf16.msra.mxu0 %v5345_v51  ;;  %4354 = vmatprep.mubr.bf16.mxu0 %v6656_v26  ;;  %v6419_v26 = vld [vmem:[%s8045_s11 + $0x70] sm:$0xff]  }
0x1fb8   :  { %4324 = vmatprep.subr.bf16.mxu0 %v5354_v2  ;;  %5703 = vmatprep.subr.bf16.mxu1 %v6419_v26 }
0x1fb9   :  { %5704 = vmatpush3.bf16.msra.mxu1 %v6421_v31 }
0x1fba   :  { %5705 = vmatprep.subr.bf16.mxu1 %v6423_v34 }
0x1fbb   :  { %4325 = vmatpush1.bf16.msra.mxu0 %v5353_v53 }
0x1fbc   :  { %5713 = vmatprep.subr.bf16.mxu0 %v6404_v3 }
0x1fbd   :  { %5706 = vmatpush3.bf16.msra.mxu1 %v6425_v35 }
0x1fbe   :  { %5358 = vmatmul.mubr.msk.bf16.vlgmr.msra.gmra.mrb[96].mxu0 %vm837_vm0, %v4057_v57  ;;  %5735 = vmatprep.subr.bf16.mxu1 %v6428_v30 }
0x1fbf   :  { %5714 = vmatpush3.bf16.msra.mxu0 %v6406_v14 }
0x1fc0   :  { %5715 = vmatprep.subr.bf16.mxu0 %v6408_v18 }
0x1fc3   :  { %5716 = vmatpush3.bf16.msra.mxu0 %v6410_v23 }
0x1fc4   :  { %5717 = vmatprep.subr.bf16.mxu0 %v6412_v40 }
0x1fc7   :  { %5718 = vmatpush3.bf16.msra.mxu0 %v6414_v22  ;;  %v4107_v22 = vrot.slane %v7908_v49, %v7379_v12  ;;  %v6434_v12 = vld [vmem:[%s8045_s11 + $0x108] sm:$0xff]  }
0x1fc8   :  { %5719 = vmatprep.subr.bf16.mxu0 %v6416_v15 }
0x1fcb   :  { %5720 = vmatpush3.bf16.msra.mxu0 %v6418_v6 }
0x1fcc   :  { %5721 = vmatprep.subr.bf16.mxu0 %v6420_v27 }
0x1fcf   :  { %5722 = vmatpush3.bf16.msra.mxu0 %v6422_v33 }
0x1fd0   :  { %5723 = vmatprep.subr.bf16.mxu0 %v6424_v10 }
0x1fd3   :  { %5724 = vmatpush3.bf16.msra.mxu0 %v6426_v36 }
0x1fd4   :  { %5725 = vmatprep.subr.bf16.mxu0 %v6427_v50  ;;  %v6435_v50 = vld [vmem:[%s8045_s11 + $0x150] sm:$0xff]  }
0x1fd7   :  { %5726 = vmatpush3.bf16.msra.mxu0 %v6429_v1 }
0x1fd8   :  { %5727 = vmatprep.subr.bf16.mxu0 %v6431_v46 }
0x1fdb   :  { %5728 = vmatpush3.bf16.msra.mxu0 %v6433_v42 }
0x1fdc   :  { %5757 = vmatprep.subr.bf16.mxu0 %v6436_v39  ;;  %v4103_v39 = vrot.slane %v7908_v49, %v7372_v24  ;;  %v6440_v24 = vld [vmem:[%s8045_s11 + $0x1c8] sm:$0xff]  }
0x2079   :  { %v4233_v38 = vpop.f32.mrb[84].mxu0 }
0x207a   :  { %v4234_v56 = vadd.f32 %v4233_v38, %v4079_v17  ;;  %v4235_v44 = vpop.f32.mrb[85].mxu0  ;;  %v6438_v38 = vld [vmem:[%s8045_s11 + $0x180] sm:$0xff]  }
0x207b   :  { %v4236_v52 = vadd.f32 %v4235_v44, %v4083_v43  ;;  %v4237_v57 = vpop.f32.mrb[86].mxu0  ;;  %v6437_v43 = vld [vmem:[%s8045_s11 + $0x110] sm:$0xff]   ;;  %v6439_v44 = vld [vmem:[%s8045_s11 + $0x158] sm:$0xff]  }
0x207c   :  { %v4371_v58 = vmul.f32 0.70710677, %v4234_v56  ;;  %v4238_v60 = vpop.f32.mrb[87].mxu0  ;;  %v4363_v48 = vmul.f32 0.5, %v4234_v56 }
0x207d   :  { %v4372_v55 = vmul.f32 0.70710677, %v4236_v52  ;;  %v4364_v53 = vmul.f32 0.5, %v4236_v52  ;;  %v6441_v60 = vld [vmem:[%s8045_s11 + $0x118] sm:$0xff]  }
0x207e   :  { %6597 = verf.f32 %v4371_v58 }
0x207f   :  { %6599 = verf.f32 %v4372_v55  ;;  %v6442_v55 = vld [vmem:[%s8045_s11 + $0x188] sm:$0xff]  }
0x2081   :  { %v4274_v54 = vpop.f32.mrb[88].mxu0 }
0x2082   :  { %v4275_v62 = vadd.f32 %v4274_v54, %v4087_v8  ;;  %v4276_v47 = vpop.f32.mrb[89].mxu0  ;;  %v6443_v8 = vld [vmem:[%s8045_s11 + $0x160] sm:$0xff]  }
0x2083   :  { %v4277_v59 = vadd.f32 %v4276_v47, %v4091_v61  ;;  %v4278_v28 = vpop.f32.mrb[90].mxu0  ;;  %v6444_v61 = vld [vmem:[%s8045_s11 + $0x1d0] sm:$0xff]  }
0x2084   :  { %v4373_v20 = vmul.f32 0.70710677, %v4275_v62  ;;  %v4279_v63 = vpop.f32.mrb[91].mxu0  ;;  %v4365_v6 = vmul.f32 0.5, %v4275_v62  ;;  %v6446_v28 = vld [vmem:[%s8045_s11 + $0x190] sm:$0xff]  }
0x2085   :  { %v4374_v37 = vmul.f32 0.70710677, %v4277_v59  ;;  %v4366_v27 = vmul.f32 0.5, %v4277_v59  ;;  %v6445_v59 = vld [vmem:[%s8045_s11 + $0x120] sm:$0xff]   ;;  %v6448_v63 = vld [vmem:[%s8045_s11 + $0x1d8] sm:$0xff]  }
0x2086   :  { %6601 = verf.f32 %v4373_v20  ;;  %v6447_v20 = vld [vmem:[%s8045_s11 + $0x168] sm:$0xff]  }
0x2087   :  { %6603 = verf.f32 %v4374_v37 }
0x2088   :  { %v6598_v45 = vpop.eup %6597 }
0x2089   :  { %v6600_v19 = vpop.eup %6599  ;;  %v4387_v51 = vadd.f32 1.0, %v6598_v45  ;;  %v4315_v2 = vpop.f32.mrb[92].mxu0 }
0x208a   :  { %v4388_v41 = vadd.f32 1.0, %v6600_v19  ;;  %v4317_v3 = vpop.f32.mrb[93].mxu0  ;;  %v7930_v33 = vadd.f32 %v4315_v2, %v4095_v5  ;;  %v6449_v19 = vld [vmem:[%s8045_s11 + $0x128] sm:$0xff]   ;;  %v6452_v2 = vld [vmem:[%s8045_s11 + $0x1e0] sm:$0xff]   ;;  %v6457_v5 = vld [vmem:[%s8045_s11 + $0x138] sm:$0xff]  }
0x208b   :  { %v4395_v9 = vmul.f32 %v4387_v51, %v4363_v48  ;;  %v4318_v14 = vadd.f32 %v4317_v3, %v4099_v0  ;;  %v4319_v16 = vpop.f32.mrb[94].mxu0  ;;  %v6450_v48 = vld [vmem:[%s8045_s11 + $0x198] sm:$0xff]   ;;  %v6451_v51 = vld [vmem:[%s8045_s11 + $0x170] sm:$0xff]  }
0x208c   :  { %v4320_v18 = vpop.f32.mrb[95].mxu0  ;;  %v4396_v21 = vmul.f32 %v4388_v41, %v4364_v53  ;;  %v4375_v42 = vmul.f32 0.70710677, %v7930_v33 }
0x208d   :  { %v4376_v23 = vmul.f32 0.70710677, %v4318_v14  ;;  %v4403_v13 = vpack.c.bf16 %v4395_v9, %v4395_v9  ;;  %v4368_v52 = vmul.f32 0.5, %v4318_v14  ;;  %v6453_v9 = vld [vmem:[%s8045_s11 + $0x130] sm:$0xff]   ;;  %v6454_v14 = vld [vmem:[%s8045_s11 + $0x1a0] sm:$0xff]   ;;  %v6455_v18 = vld [vmem:[%s8045_s11 + $0x178] sm:$0xff]  }
0x208e   :  { %v4404_v40 = vpack.c.bf16 %v4396_v21, %v4396_v21  ;;  %v6456_v21 = vld [vmem:[%s8045_s11 + $0x1e8] sm:$0xff]  }
0x208f   :  { %6605 = verf.f32 %v4376_v23  ;;  %v4367_v23 = vmul.f32 0.5, %v7930_v33 }
0x2090   :  { %v6602_v15 = vpop.eup %6601  ;;  %4959 = vmatprep.mubr.bf16.mxu1 %v4404_v40  ;;  %v6458_v40 = vld [vmem:[%s8045_s11 + $0x1a8] sm:$0xff]  }
0x2091   :  { %v6604_v4 = vpop.eup %6603  ;;  %v4389_v26 = vadd.f32 1.0, %v6602_v15  ;;  %v4356_v29 = vpop.f32.mrb[96].mxu0  ;;  %4960 = vmatmul.mubr.bf16.vlgmr.msra.gmra.mrb[100].mxu1 %v4403_v13  ;;  %v6459_v13 = vld [vmem:[%s8045_s11 + $0x1f0] sm:$0xff]  }
0x2092   :  { %v4390_v31 = vadd.f32 1.0, %v6604_v4  ;;  %5736 = vmatpush3.bf16.msra.mxu1 %v6430_v32  ;;  %v4358_v34 = vpop.f32.mrb[97].mxu0  ;;  %v4357_v58 = vadd.f32 %v4356_v29, %v4103_v39  ;;  %v6462_v29 = vld [vmem:[%s8045_s11 + $0x1b8] sm:$0xff]  }
0x2093   :  { %v4397_v10 = vmul.f32 %v4389_v26, %v4365_v6  ;;  %v4359_v35 = vadd.f32 %v4358_v34, %v4107_v22  ;;  %v4360_v36 = vpop.f32.mrb[98].mxu0  ;;  %5737 = vmatprep.subr.bf16.mxu1 %v6432_v25  ;;  %v6460_v25 = vld [vmem:[%s8045_s11 + $0x1b0] sm:$0xff]   ;;  %v6461_v6 = vld [vmem:[%s8045_s11 + $0x1f8] sm:$0xff]   ;;  %s6657_s11 = smov [#allocation2]  }
0x2094   :  { %v4361_v30 = vpop.f32.mrb[99].mxu0  ;;  %v4398_v1 = vmul.f32 %v4390_v31, %v4366_v27  ;;  %v4377_v62 = vmul.f32 0.70710677, %v4357_v58  ;;  %v4369_v26 = vmul.f32 0.5, %v4357_v58  ;;  %v4542_v36 = vrot.slane %v7775_v7, %v7009_v11  ;;  %s5094_s2 = sshll.u32 %s6657_s11, 4  ;;  %s5095_s2 = int_to_ptr.vmem [resolvable:$true] %s5094_s2 }
0x2095   :  { %v4378_v46 = vmul.f32 0.70710677, %v4359_v35  ;;  %v4405_v56 = vpack.c.bf16 %v4397_v10, %v4397_v10  ;;  %v4370_v0 = vmul.f32 0.5, %v4359_v35  ;;  %s6618_s24 = scalar_lea.vmem %s5095_s2, 32  ;;  %p6623_p1 = scmp.lt.s32.totalorder %s5095_s2, %s5095_s2 }
0x2096   :  { %5738 = vmatpush3.bf16.msra.mxu1 %v6434_v12  ;;  %v4406_v17 = vpack.c.bf16 %v4398_v1, %v4398_v1  ;;  %p6619_p0 = scmp.ne.s32.totalorder %s5095_s2, %s6618_s24  ;;  %p6624_p2 = scmp.lt.s32.totalorder %s6618_s24, %s6618_s24 }
0x2097   :  { %6607 = verf.f32 %v4378_v46  ;;  %5739 = vmatprep.subr.bf16.mxu1 %v6435_v50 }
0x2098   :  { %4999 = vmatprep.mubr.bf16.mxu0 %v4406_v17  ;;  %6609 = verf.f32 %v4375_v42  ;;  %p6625_p3 = por %p6624_p2, %p6623_p1 }
0x2099   :  { %v6606_v49 = vpop.eup %6605  ;;  %5000 = vmatmul.mubr.bf16.vlgmr.msra.gmra.mrb[100].mxu0 %v4405_v56  ;;  %6611 = verf.f32 %v4377_v62 }
0x209a   :  { %v4392_v57 = vadd.f32 1.0, %v6606_v49  ;;  %5740 = vmatpush3.bf16.msra.mxu1 %v6437_v43  ;;  %5758 = vmatpush3.bf16.msra.mxu0 %v6438_v38  ;;  %p6626_p4 = pnand %p6625_p3, %p6619_p0 }
0x209b   :  { %5741 = vmatprep.subr.bf16.mxu1 %v6439_v44  ;;  %5759 = vmatprep.subr.bf16.mxu0 %v6440_v24 }
0x209c   :  { %v4400_v54 = vmul.f32 %v4392_v57, %v4368_v52 }
0x209e   :  { %5742 = vmatpush3.bf16.msra.mxu1 %v6441_v60  ;;  %5760 = vmatpush3.bf16.msra.mxu0 %v6442_v55  ;;  %v4408_v47 = vpack.c.bf16 %v4400_v54, %v4400_v54 }
0x209f   :  { %5743 = vmatprep.subr.bf16.mxu1 %v6443_v8  ;;  %5761 = vmatprep.subr.bf16.mxu0 %v6444_v61 }
0x20a0   :  { %5039 = vmatprep.mubr.bf16.mxu1 %v4408_v47 }
0x20a1   :  { %v6608_v37 = vpop.eup %6607 }
0x20a2   :  { %v4394_v45 = vadd.f32 1.0, %v6608_v37  ;;  %5744 = vmatpush3.bf16.msra.mxu1 %v6445_v59  ;;  %5762 = vmatpush3.bf16.msra.mxu0 %v6446_v28  ;;  %v6610_v53 = vpop.eup %6609 }
0x20a3   :  { %5745 = vmatprep.subr.bf16.mxu1 %v6447_v20  ;;  %5763 = vmatprep.subr.bf16.mxu0 %v6448_v63  ;;  %v4391_v16 = vadd.f32 1.0, %v6610_v53  ;;  %v6612_v22 = vpop.eup %6611 }
0x20a4   :  { %v4402_v41 = vmul.f32 %v4394_v45, %v4370_v0  ;;  %v4393_v4 = vadd.f32 1.0, %v6612_v22 }
0x20a5   :  { %v4399_v32 = vmul.f32 %v4391_v16, %v4367_v23 }
0x20a6   :  { %5746 = vmatpush3.bf16.msra.mxu1 %v6449_v19  ;;  %5764 = vmatpush3.bf16.msra.mxu0 %v6450_v48  ;;  %v4410_v3 = vpack.c.bf16 %v4402_v41, %v4402_v41  ;;  %v4401_v27 = vmul.f32 %v4393_v4, %v4369_v26 }
0x20a7   :  { %5747 = vmatprep.subr.bf16.mxu1 %v6451_v51  ;;  %5765 = vmatprep.subr.bf16.mxu0 %v6452_v2  ;;  %v4407_v15 = vpack.c.bf16 %v4399_v32, %v4399_v32 }
0x20a8   :  { %5079 = vmatprep.mubr.bf16.mxu0 %v4410_v3  ;;  %v4409_v31 = vpack.c.bf16 %v4401_v27, %v4401_v27 }
0x20aa   :  { %5748 = vmatpush3.bf16.msra.mxu1 %v6453_v9  ;;  %5766 = vmatpush3.bf16.msra.mxu0 %v6454_v14 }
0x20ab   :  { %5749 = vmatprep.subr.bf16.mxu1 %v6455_v18  ;;  %5767 = vmatprep.subr.bf16.mxu0 %v6456_v21 }
0x20ae   :  { %5750 = vmatpush3.bf16.msra.mxu1 %v6457_v5  ;;  %5768 = vmatpush3.bf16.msra.mxu0 %v6458_v40 }
0x20af   :  { %5769 = vmatprep.subr.bf16.mxu0 %v6459_v13 }
0x20b1   :  { %5040 = vmatmul.mubr.bf16.vlgmr.msra.gmra.mrb[104].mxu1 %v4407_v15 }
0x20b2   :  { %5770 = vmatpush3.bf16.msra.mxu0 %v6460_v25 }
0x20b3   :  { %5771 = vmatprep.subr.bf16.mxu0 %v6461_v6 }
0x20b6   :  { %5772 = vmatpush3.bf16.msra.mxu0 %v6462_v29 }
0x20b9   :  { %5080 = vmatmul.mubr.bf16.vlgmr.msra.gmra.mrb[104].mxu0 %v4409_v31 }
0x2164   :  { %v5707_v33 = vpop.f32.mrb[100].mxu1 }
0x2165   :  { %v5708_v34 = vpop.f32.mrb[101].mxu1 }
0x2166   :  { %v5709_v12 = vadd.f32 %v5708_v34, %v5707_v33  ;;  %v5710_v10 = vpop.f32.mrb[102].mxu1 }
0x2167   :  { %v5711_v35 = vpop.f32.mrb[103].mxu1 }
0x2168   :  { %v4962_v1 = vadd.f32 %v5709_v12, %v4542_v36 }
0x216c   :  { %v5729_v50 = vpop.f32.mrb[100].mxu0 }
0x216d   :  { %v5730_v30 = vpop.f32.mrb[101].mxu0 }
0x216e   :  { %v5731_v46 = vadd.f32 %v5730_v30, %v5729_v50  ;;  %v5732_v42 = vpop.f32.mrb[102].mxu0 }
0x216f   :  { %v5733_v39 = vpop.f32.mrb[103].mxu0 }
0x2170   :  { %v5002_v17 = vadd.f32 %v5731_v46, %v4962_v1 }
0x2184   :  { %v5751_v43 = vpop.f32.mrb[104].mxu1 }
0x2185   :  { %v5752_v38 = vpop.f32.mrb[105].mxu1 }
0x2186   :  { %v5753_v56 = vadd.f32 %v5752_v38, %v5751_v43  ;;  %v5754_v44 = vpop.f32.mrb[106].mxu1 }
0x2187   :  { %v5755_v24 = vpop.f32.mrb[107].mxu1 }
0x2188   :  { %v5042_v49 = vadd.f32 %v5753_v56, %v5002_v17 }
0x218c   :  { %v5773_v52 = vpop.f32.mrb[104].mxu0 }
0x218d   :  { %v5774_v57 = vpop.f32.mrb[105].mxu0 }
0x218e   :  { %v5775_v58 = vadd.f32 %v5774_v57, %v5773_v52  ;;  %v5776_v60 = vpop.f32.mrb[106].mxu0 }
0x218f   :  { %v5777_v11 = vpop.f32.mrb[107].mxu0 }
0x2190   :  { %v5082_v7 = vadd.f32 %v5775_v58, %v5042_v49 }
0x2192   :  { %5087 = vst [vmem:[#allocation2] sm:$0x3] %v5082_v7 }
0x2193   :  { %6629 = shalt.err (!%p6626_p4)
}
0x2194   :  { %s6630_s26 = scalar_lea.hbm %s8047_s13, 32 }
0x2195   :  { %p6631_p5 = scmp.ne.s32.totalorder %s8047_s13, %s6630_s26  ;;  %p6634_p6 = scmp.lt.u32.totalorder %s6630_s26, %s8047_s13 }
0x2197   :  { %p6636_p7 = pnand %p6634_p6, %p6631_p5 }
0x2199   :  { %6639 = shalt.err (!%p6636_p7)
}
0x219a   :  { %5097 = dma.vmem_to_hbm [thread:$0]  %s5095_s2, 32, %s8047_s13, [#allocation3]  }
0x219b   :  { %6640 = dma.done.wait [#allocation3], 32  }
0x219c   :  { %6641 = vsyncadd [#allocation3], 4294967264 }
0x219d   :  { %5101 = vsyncpa [#allocation3], 1 }

</bundles_post_ra>
